<compile_context>
chip_gen: v7x
topology: tpu7x:2x2x1
jax: 0.10.0
libtpu: 0.0.40
codegen_flags: <defaults>
</compile_context>

<pallas_src>
import math

import jax
import jax.numpy as jnp
from jax.experimental import pallas as pl
from jax.experimental.pallas import tpu as pltpu

# ---------------- model hyper-parameters (small, RoBERTa-shaped) -------------
VOCAB = 100         # vocab size (synthetic)
PAD_ID = 1          # RoBERTa padding_idx
B, S, H = 2, 8, 32  # batch, seq len, hidden
NH, DH = 4, 8       # num heads, head dim (NH * DH == H)
FF = 64             # intermediate (FFN) size
ADAPTER = 8         # adapter bottleneck dim
NUM_LABELS = 5      # kwargs['num_classes']
NUM_LABELS_PAD = 128  # lane-dense classifier output width (real labels in [:NUM_LABELS])
NUM_LAYERS = 2      # encoder layers
LN_EPS = 1e-5
BS = B * S
ZB = NH * B         # flattened (head, batch) axis; z = h*B + b

# per-layer refs: wq,bq, wk,bk, wv,bv (head-split), wo_z,bo, ln1g,ln1b,
#                 wi,bi, wf,bf, adw,adb, auw,aub, ln2g,ln2b
PER_LAYER = 20


# ------------------------------ kernel helpers --------------------------------
def _ln(x, g, b):
    """Two-pass LayerNorm over the last axis (mean, then centered variance)."""
    mean = jnp.mean(x, axis=-1, keepdims=True)
    xc = x - mean
    var = jnp.mean(xc * xc, axis=-1, keepdims=True)
    return xc * jax.lax.rsqrt(var + LN_EPS) * g + b


def fused_forward_kernel(*refs):
    """Embedding LayerNorm + NUM_LAYERS encoder layers (head-batched self-attn,
    FFN, Pfeiffer bottleneck adapter after the FFN output dense with its own
    residual, then add+LN) + tagging head, all on the (B*S, H) slab."""
    out_ref = refs[-1]
    x_ref, mask_ref, eg_ref, eb_ref = refs[:4]
    layer_refs = refs[4:4 + NUM_LAYERS * PER_LAYER]
    cw_ref, cb_ref = refs[4 + NUM_LAYERS * PER_LAYER:-1]

    x = x_ref[...]                                    # (BS, H)
    mask = mask_ref[...]                              # (B, S), 1.0 keep / 0.0 pad
    # attention bias, built once and reused by every layer; z = h*B + b ordering
    neg = ((1.0 - mask) * -1e9)[:, None, :]           # (B, 1, S)
    bias_z = jnp.concatenate([neg] * NH, axis=0)      # (ZB, 1, S)

    # --- embedding LayerNorm ---------------------------------------------------
    x = _ln(x, eg_ref[...], eb_ref[...])

    for l in range(NUM_LAYERS):                       # static, unrolled (tiny model)
        (wq, bq, wk, bk, wv, bv, wo_z, bo, g1, b1, wi, bi, wf, bf,
         adw, adb, auw, aub, g2, b2) = [
            r[...] for r in layer_refs[l * PER_LAYER:(l + 1) * PER_LAYER]]

        # --- self-attention: head-batched contractions over z = (head, batch) ---
        x3 = x.reshape(B, S, H)
        x_z = jnp.concatenate([x3] * NH, axis=0)      # (ZB, S, H), x_z[h*B+b] = x3[b]

        # head-split projections; 1/sqrt(DH) already folded into wq/bq
        q = jnp.einsum('zsk,zkd->zsd', x_z, wq,
                       preferred_element_type=jnp.float32) + bq       # (ZB, S, DH)
        k = jnp.einsum('zsk,zkd->zsd', x_z, wk,
                       preferred_element_type=jnp.float32) + bk
        v = jnp.einsum('zsk,zkd->zsd', x_z, wv,
                       preferred_element_type=jnp.float32) + bv

        s = jnp.einsum('zqd,zkd->zqk', q, k,
                       preferred_element_type=jnp.float32)            # (ZB, S, S)
        s = s + bias_z
        s = s - jnp.max(s, axis=-1, keepdims=True)
        p = jnp.exp(s)
        p = p * pl.reciprocal(jnp.sum(p, axis=-1, keepdims=True), approx=True)
        ctx = jnp.einsum('zqk,zkd->zqd', p, v,
                         preferred_element_type=jnp.float32)          # (ZB, S, DH)

        # per-head slice of the output projection, then sum contributions over
        # heads (static leading-dim slices; equivalent to concat(ctx_h) @ Wo)
        oh = jnp.einsum('zqd,zdj->zqj', ctx, wo_z,
                        preferred_element_type=jnp.float32)           # (ZB, S, H)
        attn = oh[0:B]
        for h in range(1, NH):
            attn = attn + oh[h * B:(h + 1) * B]
        attn_out = attn.reshape(BS, H) + bo

        x = _ln(attn_out + x, g1, b1)

        # --- feed-forward --------------------------------------------------------
        # TODO(synk): HF RoBERTa uses exact erf-GELU; tanh approximation used here
        # for guaranteed Mosaic lowering (numerically near-identical).
        inter = jax.nn.gelu(
            jnp.dot(x, wi, preferred_element_type=jnp.float32) + bi,
            approximate=True)
        ff = jnp.dot(inter, wf, preferred_element_type=jnp.float32) + bf

        # --- bottleneck adapter (down-proj, ReLU, up-proj, residual) -------------
        ad = jax.nn.relu(
            jnp.dot(ff, adw, preferred_element_type=jnp.float32) + adb)
        ad = jnp.dot(ad, auw, preferred_element_type=jnp.float32) + aub
        ff = ff + ad

        x = _ln(ff + x, g2, b2)

    # --- tagging head: Dropout (identity) + Linear, lane-dense padded output ----
    out_ref[...] = jnp.dot(x, cw_ref[...],
                           preferred_element_type=jnp.float32) + cb_ref[...]


# ------------------------------ pallas wrapper ---------------------------------
def _resident(shape):
    """Full-array VMEM-resident block (single block under grid=(1,))."""
    nd = len(shape)
    return pl.BlockSpec(shape, lambda i, _nd=nd: (0,) * _nd)


def fused_forward(emb, mask_f, prepped):
    """One pallas_call for the whole forward. emb: (B, S, H) summed embeddings
    (pre-LayerNorm); mask_f: (B, S) float attention mask. All weight packing is
    done once in prepare_params(), not per call."""
    args = [emb.reshape(BS, H).astype(jnp.float32), mask_f.astype(jnp.float32),
            prepped['emb_ln_g'], prepped['emb_ln_b'],
            *prepped['layer_args'],
            prepped['cls_w'], prepped['cls_b']]

    out = pl.pallas_call(
        fused_forward_kernel,
        out_shape=jax.ShapeDtypeStruct((BS, NUM_LABELS_PAD), jnp.float32),
        grid=(1,),
        in_specs=[_resident(a.shape) for a in args],
        out_specs=_resident((BS, NUM_LABELS_PAD)),
        compiler_params=pltpu.CompilerParams(dimension_semantics=("arbitrary",)),
    )(*args)
    return out[:, :NUM_LABELS].reshape(B, S, NUM_LABELS)


# ------------------------------ parameters ------------------------------------
def init_params(key):
    def nrm(k, shape):
        return (0.02 * jax.random.normal(k, shape)).astype(jnp.float32)

    keys = jax.random.split(key, 4 + NUM_LAYERS)
    params = {
        'word_emb': nrm(keys[0], (VOCAB, H)),
        'pos_emb':  nrm(keys[1], (S + 2, H)),   # RoBERTa offsets positions by PAD_ID+1
        'type_emb': nrm(keys[2], (1, H)),
        'emb_ln_g': jnp.ones((1, H), jnp.float32),
        'emb_ln_b': jnp.zeros((1, H), jnp.float32),
        'cls_w':    nrm(keys[3], (H, NUM_LABELS)),
        'cls_b':    jnp.zeros((1, NUM_LABELS), jnp.float32),
    }
    layers = []
    for l in range(NUM_LAYERS):
        lk = jax.random.split(keys[4 + l], 8)
        layer = [
            nrm(lk[0], (H, H)),  jnp.zeros((1, H), jnp.float32),        # q
            nrm(lk[1], (H, H)),  jnp.zeros((1, H), jnp.float32),        # k
            nrm(lk[2], (H, H)),  jnp.zeros((1, H), jnp.float32),        # v
            nrm(lk[3], (H, H)),  jnp.zeros((1, H), jnp.float32),        # attn out
            jnp.ones((1, H), jnp.float32), jnp.zeros((1, H), jnp.float32),   # ln1
            nrm(lk[4], (H, FF)), jnp.zeros((1, FF), jnp.float32),       # intermediate
            nrm(lk[5], (FF, H)), jnp.zeros((1, H), jnp.float32),        # ffn out
            nrm(lk[6], (H, ADAPTER)), jnp.zeros((1, ADAPTER), jnp.float32),  # adapter down
            nrm(lk[7], (ADAPTER, H)), jnp.zeros((1, H), jnp.float32),        # adapter up
            jnp.ones((1, H), jnp.float32), jnp.zeros((1, H), jnp.float32),   # ln2
        ]
        layers.append(layer)
    params['layers'] = layers
    return params


def prepare_params(params):
    """One-time packing of the raw parameters into the kernel layout:
    head-split Q/K/V/O weights tiled over z=(head,batch), 1/sqrt(DH) folded into
    the Q weight & bias, classifier padded to 128 lane-dense label columns."""
    scale = 1.0 / math.sqrt(DH)

    def head_split(w, b, sc):
        # w (H, H) -> (ZB, H, DH); b (1, H) -> (ZB, 1, DH); z = h*B + b
        wh = (w * sc).reshape(H, NH, DH).transpose(1, 0, 2)     # (NH, H, DH)
        bh = (b * sc).reshape(NH, 1, DH)                        # (NH, 1, DH)
        return (jnp.repeat(wh, B, axis=0).astype(jnp.float32),
                jnp.repeat(bh, B, axis=0).astype(jnp.float32))

    layer_args = []
    for layer in params['layers']:
        (wq, bq, wk, bk, wv, bv, wo, bo, g1, b1,
         wi, bi, wf, bf, adw, adb, auw, aub, g2, b2) = layer
        wq_z, bq_z = head_split(wq, bq, scale)      # scale folded into Q
        wk_z, bk_z = head_split(wk, bk, 1.0)
        wv_z, bv_z = head_split(wv, bv, 1.0)
        # output projection: per-head row block of Wo, tiled over z = h*B + b
        wo_z = jnp.repeat(wo.reshape(NH, DH, H), B, axis=0).astype(jnp.float32)
        layer_args += [wq_z, bq_z, wk_z, bk_z, wv_z, bv_z, wo_z, bo, g1, b1,
                       wi, bi, wf, bf, adw, adb, auw, aub, g2, b2]

    # pad classifier to 128 label columns -> lane-dense (unmasked) output stores
    cls_w = jnp.zeros((H, NUM_LABELS_PAD), jnp.float32).at[:, :NUM_LABELS].set(
        params['cls_w'])
    cls_b = jnp.zeros((1, NUM_LABELS_PAD), jnp.float32).at[:, :NUM_LABELS].set(
        params['cls_b'])

    return {
        'word_emb': params['word_emb'], 'pos_emb': params['pos_emb'],
        'type_emb': params['type_emb'],
        'emb_ln_g': params['emb_ln_g'], 'emb_ln_b': params['emb_ln_b'],
        'layer_args': layer_args, 'cls_w': cls_w, 'cls_b': cls_b,
    }


# ------------------------------ forward ----------------------------------------
def forward(prepped, input_ids, attention_mask):
    # embedding gathers + RoBERTa position ids stay in plain JAX
    word = prepped['word_emb'][input_ids]                                 # (B,S,H)
    mask_i = attention_mask.astype(jnp.int32)
    pos_ids = jnp.cumsum(mask_i, axis=1) * mask_i + PAD_ID                # RoBERTa
    pos = prepped['pos_emb'][pos_ids]
    typ = prepped['type_emb'][jnp.zeros_like(input_ids)]
    e = (word + pos + typ).astype(jnp.float32)
    logits = fused_forward(e, attention_mask.astype(jnp.float32), prepped)
    return {'logits': logits}


# ------------------------------ main --------------------------------------------
if __name__ == "__main__":
    root = jax.random.PRNGKey(0)
    p_key, id_key = jax.random.split(root)
    params = init_params(p_key)
    prepped = prepare_params(params)          # one-time weight packing (not per call)

    input_ids = jax.random.randint(id_key, (B, S), 2, VOCAB)
    attention_mask = jnp.ones((B, S), dtype=jnp.float32)
    attention_mask = attention_mask.at[:, S - 2:].set(0.0)   # last 2 tokens padded
    input_ids = jnp.where(attention_mask > 0, input_ids, PAD_ID)

    fwd = jax.jit(forward)
    out = fwd(prepped, input_ids, attention_mask)
    logits = jax.block_until_ready(out['logits'])
    assert logits.shape == (B, S, NUM_LABELS)
    assert bool(jnp.all(jnp.isfinite(logits)))
    print("KERNEL_OK")
</pallas_src>

<mosaic_0001>
module attributes {stable_mosaic.version = 11 : i64} {
  func.func @fused_forward_kernel(%arg0: i32, %arg1: memref<16x32xf32, #tpu.memory_space<vmem>>, %arg2: memref<2x8xf32, #tpu.memory_space<vmem>>, %arg3: memref<1x32xf32, #tpu.memory_space<vmem>>, %arg4: memref<1x32xf32, #tpu.memory_space<vmem>>, %arg5: memref<8x32x8xf32, #tpu.memory_space<vmem>>, %arg6: memref<8x1x8xf32, #tpu.memory_space<vmem>>, %arg7: memref<8x32x8xf32, #tpu.memory_space<vmem>>, %arg8: memref<8x1x8xf32, #tpu.memory_space<vmem>>, %arg9: memref<8x32x8xf32, #tpu.memory_space<vmem>>, %arg10: memref<8x1x8xf32, #tpu.memory_space<vmem>>, %arg11: memref<8x8x32xf32, #tpu.memory_space<vmem>>, %arg12: memref<1x32xf32, #tpu.memory_space<vmem>>, %arg13: memref<1x32xf32, #tpu.memory_space<vmem>>, %arg14: memref<1x32xf32, #tpu.memory_space<vmem>>, %arg15: memref<32x64xf32, #tpu.memory_space<vmem>>, %arg16: memref<1x64xf32, #tpu.memory_space<vmem>>, %arg17: memref<64x32xf32, #tpu.memory_space<vmem>>, %arg18: memref<1x32xf32, #tpu.memory_space<vmem>>, %arg19: memref<32x8xf32, #tpu.memory_space<vmem>>, %arg20: memref<1x8xf32, #tpu.memory_space<vmem>>, %arg21: memref<8x32xf32, #tpu.memory_space<vmem>>, %arg22: memref<1x32xf32, #tpu.memory_space<vmem>>, %arg23: memref<1x32xf32, #tpu.memory_space<vmem>>, %arg24: memref<1x32xf32, #tpu.memory_space<vmem>>, %arg25: memref<8x32x8xf32, #tpu.memory_space<vmem>>, %arg26: memref<8x1x8xf32, #tpu.memory_space<vmem>>, %arg27: memref<8x32x8xf32, #tpu.memory_space<vmem>>, %arg28: memref<8x1x8xf32, #tpu.memory_space<vmem>>, %arg29: memref<8x32x8xf32, #tpu.memory_space<vmem>>, %arg30: memref<8x1x8xf32, #tpu.memory_space<vmem>>, %arg31: memref<8x8x32xf32, #tpu.memory_space<vmem>>, %arg32: memref<1x32xf32, #tpu.memory_space<vmem>>, %arg33: memref<1x32xf32, #tpu.memory_space<vmem>>, %arg34: memref<1x32xf32, #tpu.memory_space<vmem>>, %arg35: memref<32x64xf32, #tpu.memory_space<vmem>>, %arg36: memref<1x64xf32, #tpu.memory_space<vmem>>, %arg37: memref<64x32xf32, #tpu.memory_space<vmem>>, %arg38: memref<1x32xf32, #tpu.memory_space<vmem>>, %arg39: memref<32x8xf32, #tpu.memory_space<vmem>>, %arg40: memref<1x8xf32, #tpu.memory_space<vmem>>, %arg41: memref<8x32xf32, #tpu.memory_space<vmem>>, %arg42: memref<1x32xf32, #tpu.memory_space<vmem>>, %arg43: memref<1x32xf32, #tpu.memory_space<vmem>>, %arg44: memref<1x32xf32, #tpu.memory_space<vmem>>, %arg45: memref<32x128xf32, #tpu.memory_space<vmem>>, %arg46: memref<1x128xf32, #tpu.memory_space<vmem>>, %arg47: memref<16x128xf32, #tpu.memory_space<vmem>>) attributes {dimension_semantics = [#tpu.dimension_semantics<arbitrary>], iteration_bounds = array<i64: 1>, scalar_prefetch = 0 : i64, scratch_operands = 0 : i64, tpu.core_type = #tpu.core_type<tc>, window_params = [{pipeline_mode = #tpu.pipeline_mode<synchronous>, transform_indices = @transform_0, window_bounds = array<i64: 16, 32>}, {pipeline_mode = #tpu.pipeline_mode<synchronous>, transform_indices = @transform_1, window_bounds = array<i64: 2, 8>}, {pipeline_mode = #tpu.pipeline_mode<synchronous>, transform_indices = @transform_2, window_bounds = array<i64: 1, 32>}, {pipeline_mode = #tpu.pipeline_mode<synchronous>, transform_indices = @transform_3, window_bounds = array<i64: 1, 32>}, {pipeline_mode = #tpu.pipeline_mode<synchronous>, transform_indices = @transform_4, window_bounds = array<i64: 8, 32, 8>}, {pipeline_mode = #tpu.pipeline_mode<synchronous>, transform_indices = @transform_5, window_bounds = array<i64: 8, 1, 8>}, {pipeline_mode = #tpu.pipeline_mode<synchronous>, transform_indices = @transform_6, window_bounds = array<i64: 8, 32, 8>}, {pipeline_mode = #tpu.pipeline_mode<synchronous>, transform_indices = @transform_7, window_bounds = array<i64: 8, 1, 8>}, {pipeline_mode = #tpu.pipeline_mode<synchronous>, transform_indices = @transform_8, window_bounds = array<i64: 8, 32, 8>}, {pipeline_mode = #tpu.pipeline_mode<synchronous>, transform_indices = @transform_9, window_bounds = array<i64: 8, 1, 8>}, {pipeline_mode = #tpu.pipeline_mode<synchronous>, transform_indices = @transform_10, window_bounds = array<i64: 8, 8, 32>}, {pipeline_mode = #tpu.pipeline_mode<synchronous>, transform_indices = @transform_11, window_bounds = array<i64: 1, 32>}, {pipeline_mode = #tpu.pipeline_mode<synchronous>, transform_indices = @transform_12, window_bounds = array<i64: 1, 32>}, {pipeline_mode = #tpu.pipeline_mode<synchronous>, transform_indices = @transform_13, window_bounds = array<i64: 1, 32>}, {pipeline_mode = #tpu.pipeline_mode<synchronous>, transform_indices = @transform_14, window_bounds = array<i64: 32, 64>}, {pipeline_mode = #tpu.pipeline_mode<synchronous>, transform_indices = @transform_15, window_bounds = array<i64: 1, 64>}, {pipeline_mode = #tpu.pipeline_mode<synchronous>, transform_indices = @transform_16, window_bounds = array<i64: 64, 32>}, {pipeline_mode = #tpu.pipeline_mode<synchronous>, transform_indices = @transform_17, window_bounds = array<i64: 1, 32>}, {pipeline_mode = #tpu.pipeline_mode<synchronous>, transform_indices = @transform_18, window_bounds = array<i64: 32, 8>}, {pipeline_mode = #tpu.pipeline_mode<synchronous>, transform_indices = @transform_19, window_bounds = array<i64: 1, 8>}, {pipeline_mode = #tpu.pipeline_mode<synchronous>, transform_indices = @transform_20, window_bounds = array<i64: 8, 32>}, {pipeline_mode = #tpu.pipeline_mode<synchronous>, transform_indices = @transform_21, window_bounds = array<i64: 1, 32>}, {pipeline_mode = #tpu.pipeline_mode<synchronous>, transform_indices = @transform_22, window_bounds = array<i64: 1, 32>}, {pipeline_mode = #tpu.pipeline_mode<synchronous>, transform_indices = @transform_23, window_bounds = array<i64: 1, 32>}, {pipeline_mode = #tpu.pipeline_mode<synchronous>, transform_indices = @transform_24, window_bounds = array<i64: 8, 32, 8>}, {pipeline_mode = #tpu.pipeline_mode<synchronous>, transform_indices = @transform_25, window_bounds = array<i64: 8, 1, 8>}, {pipeline_mode = #tpu.pipeline_mode<synchronous>, transform_indices = @transform_26, window_bounds = array<i64: 8, 32, 8>}, {pipeline_mode = #tpu.pipeline_mode<synchronous>, transform_indices = @transform_27, window_bounds = array<i64: 8, 1, 8>}, {pipeline_mode = #tpu.pipeline_mode<synchronous>, transform_indices = @transform_28, window_bounds = array<i64: 8, 32, 8>}, {pipeline_mode = #tpu.pipeline_mode<synchronous>, transform_indices = @transform_29, window_bounds = array<i64: 8, 1, 8>}, {pipeline_mode = #tpu.pipeline_mode<synchronous>, transform_indices = @transform_30, window_bounds = array<i64: 8, 8, 32>}, {pipeline_mode = #tpu.pipeline_mode<synchronous>, transform_indices = @transform_31, window_bounds = array<i64: 1, 32>}, {pipeline_mode = #tpu.pipeline_mode<synchronous>, transform_indices = @transform_32, window_bounds = array<i64: 1, 32>}, {pipeline_mode = #tpu.pipeline_mode<synchronous>, transform_indices = @transform_33, window_bounds = array<i64: 1, 32>}, {pipeline_mode = #tpu.pipeline_mode<synchronous>, transform_indices = @transform_34, window_bounds = array<i64: 32, 64>}, {pipeline_mode = #tpu.pipeline_mode<synchronous>, transform_indices = @transform_35, window_bounds = array<i64: 1, 64>}, {pipeline_mode = #tpu.pipeline_mode<synchronous>, transform_indices = @transform_36, window_bounds = array<i64: 64, 32>}, {pipeline_mode = #tpu.pipeline_mode<synchronous>, transform_indices = @transform_37, window_bounds = array<i64: 1, 32>}, {pipeline_mode = #tpu.pipeline_mode<synchronous>, transform_indices = @transform_38, window_bounds = array<i64: 32, 8>}, {pipeline_mode = #tpu.pipeline_mode<synchronous>, transform_indices = @transform_39, window_bounds = array<i64: 1, 8>}, {pipeline_mode = #tpu.pipeline_mode<synchronous>, transform_indices = @transform_40, window_bounds = array<i64: 8, 32>}, {pipeline_mode = #tpu.pipeline_mode<synchronous>, transform_indices = @transform_41, window_bounds = array<i64: 1, 32>}, {pipeline_mode = #tpu.pipeline_mode<synchronous>, transform_indices = @transform_42, window_bounds = array<i64: 1, 32>}, {pipeline_mode = #tpu.pipeline_mode<synchronous>, transform_indices = @transform_43, window_bounds = array<i64: 1, 32>}, {pipeline_mode = #tpu.pipeline_mode<synchronous>, transform_indices = @transform_44, window_bounds = array<i64: 32, 128>}, {pipeline_mode = #tpu.pipeline_mode<synchronous>, transform_indices = @transform_45, window_bounds = array<i64: 1, 128>}, {pipeline_mode = #tpu.pipeline_mode<synchronous>, transform_indices = @transform_46, window_bounds = array<i64: 16, 128>}]} {
    %c0 = arith.constant 0 : index
    %c0_0 = arith.constant 0 : index
    %0 = vector.load %arg1[%c0, %c0_0] : memref<16x32xf32, #tpu.memory_space<vmem>>, vector<16x32xf32>
    %c0_1 = arith.constant 0 : index
    %c0_2 = arith.constant 0 : index
    %1 = vector.load %arg2[%c0_1, %c0_2] : memref<2x8xf32, #tpu.memory_space<vmem>>, vector<2x8xf32>
    %cst = arith.constant 1.000000e+00 : f32
    %2 = vector.broadcast %cst : f32 to vector<2x8xf32>
    %3 = arith.subf %2, %1 : vector<2x8xf32>
    %cst_3 = arith.constant -1.000000e+09 : f32
    %4 = vector.broadcast %cst_3 : f32 to vector<2x8xf32>
    %5 = arith.mulf %3, %4 : vector<2x8xf32>
    %6 = vector.shape_cast %5 : vector<2x8xf32> to vector<2x1x8xf32>
    %7 = tpu.concatenate %6, %6, %6, %6 in 0 : vector<2x1x8xf32>, vector<2x1x8xf32>, vector<2x1x8xf32>, vector<2x1x8xf32> -> vector<8x1x8xf32>
    %c0_4 = arith.constant 0 : index
    %c0_5 = arith.constant 0 : index
    %8 = vector.load %arg3[%c0_4, %c0_5] : memref<1x32xf32, #tpu.memory_space<vmem>>, vector<1x32xf32>
    %c0_6 = arith.constant 0 : index
    %c0_7 = arith.constant 0 : index
    %9 = vector.load %arg4[%c0_6, %c0_7] : memref<1x32xf32, #tpu.memory_space<vmem>>, vector<1x32xf32>
    %cst_8 = arith.constant dense<0.000000e+00> : vector<16xf32>
    %10 = vector.multi_reduction <add>, %0, %cst_8 [1] : vector<16x32xf32> to vector<16xf32>
    %11 = vector.shape_cast %10 : vector<16xf32> to vector<16x1xf32>
    %cst_9 = arith.constant 3.200000e+01 : f32
    %12 = vector.broadcast %cst_9 : f32 to vector<16x1xf32>
    %13 = arith.divf %11, %12 : vector<16x1xf32>
    %14 = vector.broadcast %13 : vector<16x1xf32> to vector<16x32xf32>
    %15 = arith.subf %0, %14 : vector<16x32xf32>
    %16 = arith.mulf %15, %15 : vector<16x32xf32>
    %cst_10 = arith.constant dense<0.000000e+00> : vector<16xf32>
    %17 = vector.multi_reduction <add>, %16, %cst_10 [1] : vector<16x32xf32> to vector<16xf32>
    %18 = vector.shape_cast %17 : vector<16xf32> to vector<16x1xf32>
    %cst_11 = arith.constant 3.200000e+01 : f32
    %19 = vector.broadcast %cst_11 : f32 to vector<16x1xf32>
    %20 = arith.divf %18, %19 : vector<16x1xf32>
    %cst_12 = arith.constant 9.99999974E-6 : f32
    %21 = vector.broadcast %cst_12 : f32 to vector<16x1xf32>
    %22 = arith.addf %20, %21 : vector<16x1xf32>
    %23 = math.rsqrt %22 : vector<16x1xf32>
    %24 = vector.broadcast %23 : vector<16x1xf32> to vector<16x32xf32>
    %25 = arith.mulf %15, %24 : vector<16x32xf32>
    %26 = vector.broadcast %8 : vector<1x32xf32> to vector<16x32xf32>
    %27 = arith.mulf %25, %26 : vector<16x32xf32>
    %28 = vector.broadcast %9 : vector<1x32xf32> to vector<16x32xf32>
    %29 = arith.addf %27, %28 : vector<16x32xf32>
    %c0_13 = arith.constant 0 : index
    %c0_14 = arith.constant 0 : index
    %c0_15 = arith.constant 0 : index
    %30 = vector.load %arg5[%c0_13, %c0_14, %c0_15] : memref<8x32x8xf32, #tpu.memory_space<vmem>>, vector<8x32x8xf32>
    %c0_16 = arith.constant 0 : index
    %c0_17 = arith.constant 0 : index
    %c0_18 = arith.constant 0 : index
    %31 = vector.load %arg6[%c0_16, %c0_17, %c0_18] : memref<8x1x8xf32, #tpu.memory_space<vmem>>, vector<8x1x8xf32>
    %c0_19 = arith.constant 0 : index
    %c0_20 = arith.constant 0 : index
    %c0_21 = arith.constant 0 : index
    %32 = vector.load %arg7[%c0_19, %c0_20, %c0_21] : memref<8x32x8xf32, #tpu.memory_space<vmem>>, vector<8x32x8xf32>
    %c0_22 = arith.constant 0 : index
    %c0_23 = arith.constant 0 : index
    %c0_24 = arith.constant 0 : index
    %33 = vector.load %arg8[%c0_22, %c0_23, %c0_24] : memref<8x1x8xf32, #tpu.memory_space<vmem>>, vector<8x1x8xf32>
    %c0_25 = arith.constant 0 : index
    %c0_26 = arith.constant 0 : index
    %c0_27 = arith.constant 0 : index
    %34 = vector.load %arg9[%c0_25, %c0_26, %c0_27] : memref<8x32x8xf32, #tpu.memory_space<vmem>>, vector<8x32x8xf32>
    %c0_28 = arith.constant 0 : index
    %c0_29 = arith.constant 0 : index
    %c0_30 = arith.constant 0 : index
    %35 = vector.load %arg10[%c0_28, %c0_29, %c0_30] : memref<8x1x8xf32, #tpu.memory_space<vmem>>, vector<8x1x8xf32>
    %c0_31 = arith.constant 0 : index
    %c0_32 = arith.constant 0 : index
    %c0_33 = arith.constant 0 : index
    %36 = vector.load %arg11[%c0_31, %c0_32, %c0_33] : memref<8x8x32xf32, #tpu.memory_space<vmem>>, vector<8x8x32xf32>
    %c0_34 = arith.constant 0 : index
    %c0_35 = arith.constant 0 : index
    %37 = vector.load %arg12[%c0_34, %c0_35] : memref<1x32xf32, #tpu.memory_space<vmem>>, vector<1x32xf32>
    %c0_36 = arith.constant 0 : index
    %c0_37 = arith.constant 0 : index
    %38 = vector.load %arg13[%c0_36, %c0_37] : memref<1x32xf32, #tpu.memory_space<vmem>>, vector<1x32xf32>
    %c0_38 = arith.constant 0 : index
    %c0_39 = arith.constant 0 : index
    %39 = vector.load %arg14[%c0_38, %c0_39] : memref<1x32xf32, #tpu.memory_space<vmem>>, vector<1x32xf32>
    %c0_40 = arith.constant 0 : index
    %c0_41 = arith.constant 0 : index
    %40 = vector.load %arg15[%c0_40, %c0_41] : memref<32x64xf32, #tpu.memory_space<vmem>>, vector<32x64xf32>
    %c0_42 = arith.constant 0 : index
    %c0_43 = arith.constant 0 : index
    %41 = vector.load %arg16[%c0_42, %c0_43] : memref<1x64xf32, #tpu.memory_space<vmem>>, vector<1x64xf32>
    %c0_44 = arith.constant 0 : index
    %c0_45 = arith.constant 0 : index
    %42 = vector.load %arg17[%c0_44, %c0_45] : memref<64x32xf32, #tpu.memory_space<vmem>>, vector<64x32xf32>
    %c0_46 = arith.constant 0 : index
    %c0_47 = arith.constant 0 : index
    %43 = vector.load %arg18[%c0_46, %c0_47] : memref<1x32xf32, #tpu.memory_space<vmem>>, vector<1x32xf32>
    %c0_48 = arith.constant 0 : index
    %c0_49 = arith.constant 0 : index
    %44 = vector.load %arg19[%c0_48, %c0_49] : memref<32x8xf32, #tpu.memory_space<vmem>>, vector<32x8xf32>
    %c0_50 = arith.constant 0 : index
    %c0_51 = arith.constant 0 : index
    %45 = vector.load %arg20[%c0_50, %c0_51] : memref<1x8xf32, #tpu.memory_space<vmem>>, vector<1x8xf32>
    %c0_52 = arith.constant 0 : index
    %c0_53 = arith.constant 0 : index
    %46 = vector.load %arg21[%c0_52, %c0_53] : memref<8x32xf32, #tpu.memory_space<vmem>>, vector<8x32xf32>
    %c0_54 = arith.constant 0 : index
    %c0_55 = arith.constant 0 : index
    %47 = vector.load %arg22[%c0_54, %c0_55] : memref<1x32xf32, #tpu.memory_space<vmem>>, vector<1x32xf32>
    %c0_56 = arith.constant 0 : index
    %c0_57 = arith.constant 0 : index
    %48 = vector.load %arg23[%c0_56, %c0_57] : memref<1x32xf32, #tpu.memory_space<vmem>>, vector<1x32xf32>
    %c0_58 = arith.constant 0 : index
    %c0_59 = arith.constant 0 : index
    %49 = vector.load %arg24[%c0_58, %c0_59] : memref<1x32xf32, #tpu.memory_space<vmem>>, vector<1x32xf32>
    %50 = vector.shape_cast %29 : vector<16x32xf32> to vector<2x8x32xf32>
    %51 = tpu.concatenate %50, %50, %50, %50 in 0 : vector<2x8x32xf32>, vector<2x8x32xf32>, vector<2x8x32xf32>, vector<2x8x32xf32> -> vector<8x8x32xf32>
    "tpu.trace_start"() <{level = 10 : i32, message = "zsk,zkd->zsd"}> : () -> ()
    %cst_60 = arith.constant dense<0.000000e+00> : vector<8x8x8xf32>
    %52 = tpu.matmul %51, %30, %cst_60 {dimension_numbers = #tpu.dot_dimension_numbers<[2], [1], [1], [2], [0, 0, 0, 1, 1, 2], [0], [0]>} : vector<8x8x32xf32>, vector<8x32x8xf32>, vector<8x8x8xf32> -> vector<8x8x8xf32>
    "tpu.trace_stop"() : () -> ()
    %53 = vector.broadcast %31 : vector<8x1x8xf32> to vector<8x8x8xf32>
    %54 = arith.addf %52, %53 : vector<8x8x8xf32>
    "tpu.trace_start"() <{level = 10 : i32, message = "zsk,zkd->zsd"}> : () -> ()
    %cst_61 = arith.constant dense<0.000000e+00> : vector<8x8x8xf32>
    %55 = tpu.matmul %51, %32, %cst_61 {dimension_numbers = #tpu.dot_dimension_numbers<[2], [1], [1], [2], [0, 0, 0, 1, 1, 2], [0], [0]>} : vector<8x8x32xf32>, vector<8x32x8xf32>, vector<8x8x8xf32> -> vector<8x8x8xf32>
    "tpu.trace_stop"() : () -> ()
    %56 = vector.broadcast %33 : vector<8x1x8xf32> to vector<8x8x8xf32>
    %57 = arith.addf %55, %56 : vector<8x8x8xf32>
    "tpu.trace_start"() <{level = 10 : i32, message = "zsk,zkd->zsd"}> : () -> ()
    %cst_62 = arith.constant dense<0.000000e+00> : vector<8x8x8xf32>
    %58 = tpu.matmul %51, %34, %cst_62 {dimension_numbers = #tpu.dot_dimension_numbers<[2], [1], [1], [2], [0, 0, 0, 1, 1, 2], [0], [0]>} : vector<8x8x32xf32>, vector<8x32x8xf32>, vector<8x8x8xf32> -> vector<8x8x8xf32>
    "tpu.trace_stop"() : () -> ()
    %59 = vector.broadcast %35 : vector<8x1x8xf32> to vector<8x8x8xf32>
    %60 = arith.addf %58, %59 : vector<8x8x8xf32>
    "tpu.trace_start"() <{level = 10 : i32, message = "zqd,zkd->zqk"}> : () -> ()
    %cst_63 = arith.constant dense<0.000000e+00> : vector<8x8x8xf32>
    %61 = tpu.matmul %54, %57, %cst_63 {dimension_numbers = #tpu.dot_dimension_numbers<[2], [2], [1], [1], [0, 0, 0, 1, 1, 1], [0], [0]>} : vector<8x8x8xf32>, vector<8x8x8xf32>, vector<8x8x8xf32> -> vector<8x8x8xf32>
    "tpu.trace_stop"() : () -> ()
    %62 = vector.broadcast %7 : vector<8x1x8xf32> to vector<8x8x8xf32>
    %63 = arith.addf %61, %62 : vector<8x8x8xf32>
    %cst_64 = arith.constant dense<0xFF800000> : vector<8x8xf32>
    %64 = vector.multi_reduction <maximumf>, %63, %cst_64 [2] : vector<8x8x8xf32> to vector<8x8xf32>
    %65 = vector.shape_cast %64 : vector<8x8xf32> to vector<8x8x1xf32>
    %66 = vector.broadcast %65 : vector<8x8x1xf32> to vector<8x8x8xf32>
    %67 = arith.subf %63, %66 : vector<8x8x8xf32>
    %68 = math.exp %67 : vector<8x8x8xf32>
    %cst_65 = arith.constant dense<0.000000e+00> : vector<8x8xf32>
    %69 = vector.multi_reduction <add>, %68, %cst_65 [2] : vector<8x8x8xf32> to vector<8x8xf32>
    %70 = vector.shape_cast %69 : vector<8x8xf32> to vector<8x8x1xf32>
    %71 = tpu.reciprocal %70 {approx = true} : vector<8x8x1xf32> -> vector<8x8x1xf32>
    %72 = vector.broadcast %71 : vector<8x8x1xf32> to vector<8x8x8xf32>
    %73 = arith.mulf %68, %72 : vector<8x8x8xf32>
    "tpu.trace_start"() <{level = 10 : i32, message = "zqk,zkd->zqd"}> : () -> ()
    %cst_66 = arith.constant dense<0.000000e+00> : vector<8x8x8xf32>
    %74 = tpu.matmul %73, %60, %cst_66 {dimension_numbers = #tpu.dot_dimension_numbers<[2], [1], [1], [2], [0, 0, 0, 1, 1, 2], [0], [0]>} : vector<8x8x8xf32>, vector<8x8x8xf32>, vector<8x8x8xf32> -> vector<8x8x8xf32>
    "tpu.trace_stop"() : () -> ()
    "tpu.trace_start"() <{level = 10 : i32, message = "zqd,zdj->zqj"}> : () -> ()
    %cst_67 = arith.constant dense<0.000000e+00> : vector<8x8x32xf32>
    %75 = tpu.matmul %74, %36, %cst_67 {dimension_numbers = #tpu.dot_dimension_numbers<[2], [1], [1], [2], [0, 0, 0, 1, 1, 2], [0], [0]>} : vector<8x8x8xf32>, vector<8x8x32xf32>, vector<8x8x32xf32> -> vector<8x8x32xf32>
    "tpu.trace_stop"() : () -> ()
    %76 = vector.extract_strided_slice %75 {offsets = [0, 0, 0], sizes = [2, 8, 32], strides = [1, 1, 1]} : vector<8x8x32xf32> to vector<2x8x32xf32>
    %77 = vector.extract_strided_slice %75 {offsets = [2, 0, 0], sizes = [2, 8, 32], strides = [1, 1, 1]} : vector<8x8x32xf32> to vector<2x8x32xf32>
    %78 = arith.addf %76, %77 : vector<2x8x32xf32>
    %79 = vector.extract_strided_slice %75 {offsets = [4, 0, 0], sizes = [2, 8, 32], strides = [1, 1, 1]} : vector<8x8x32xf32> to vector<2x8x32xf32>
    %80 = arith.addf %78, %79 : vector<2x8x32xf32>
    %81 = vector.extract_strided_slice %75 {offsets = [6, 0, 0], sizes = [2, 8, 32], strides = [1, 1, 1]} : vector<8x8x32xf32> to vector<2x8x32xf32>
    %82 = arith.addf %80, %81 : vector<2x8x32xf32>
    %83 = vector.shape_cast %82 : vector<2x8x32xf32> to vector<16x32xf32>
    %84 = vector.broadcast %37 : vector<1x32xf32> to vector<16x32xf32>
    %85 = arith.addf %83, %84 : vector<16x32xf32>
    %86 = arith.addf %85, %29 : vector<16x32xf32>
    %cst_68 = arith.constant dense<0.000000e+00> : vector<16xf32>
    %87 = vector.multi_reduction <add>, %86, %cst_68 [1] : vector<16x32xf32> to vector<16xf32>
    %88 = vector.shape_cast %87 : vector<16xf32> to vector<16x1xf32>
    %cst_69 = arith.constant 3.200000e+01 : f32
    %89 = vector.broadcast %cst_69 : f32 to vector<16x1xf32>
    %90 = arith.divf %88, %89 : vector<16x1xf32>
    %91 = vector.broadcast %90 : vector<16x1xf32> to vector<16x32xf32>
    %92 = arith.subf %86, %91 : vector<16x32xf32>
    %93 = arith.mulf %92, %92 : vector<16x32xf32>
    %cst_70 = arith.constant dense<0.000000e+00> : vector<16xf32>
    %94 = vector.multi_reduction <add>, %93, %cst_70 [1] : vector<16x32xf32> to vector<16xf32>
    %95 = vector.shape_cast %94 : vector<16xf32> to vector<16x1xf32>
    %cst_71 = arith.constant 3.200000e+01 : f32
    %96 = vector.broadcast %cst_71 : f32 to vector<16x1xf32>
    %97 = arith.divf %95, %96 : vector<16x1xf32>
    %cst_72 = arith.constant 9.99999974E-6 : f32
    %98 = vector.broadcast %cst_72 : f32 to vector<16x1xf32>
    %99 = arith.addf %97, %98 : vector<16x1xf32>
    %100 = math.rsqrt %99 : vector<16x1xf32>
    %101 = vector.broadcast %100 : vector<16x1xf32> to vector<16x32xf32>
    %102 = arith.mulf %92, %101 : vector<16x32xf32>
    %103 = vector.broadcast %38 : vector<1x32xf32> to vector<16x32xf32>
    %104 = arith.mulf %102, %103 : vector<16x32xf32>
    %105 = vector.broadcast %39 : vector<1x32xf32> to vector<16x32xf32>
    %106 = arith.addf %104, %105 : vector<16x32xf32>
    %cst_73 = arith.constant dense<0.000000e+00> : vector<16x64xf32>
    %107 = tpu.matmul %106, %40, %cst_73 {dimension_numbers = #tpu.dot_dimension_numbers<[1], [0], [0], [1], [0, 0, 1, 1], [], []>} : vector<16x32xf32>, vector<32x64xf32>, vector<16x64xf32> -> vector<16x64xf32>
    %108 = vector.broadcast %41 : vector<1x64xf32> to vector<16x64xf32>
    %109 = arith.addf %107, %108 : vector<16x64xf32>
    %110 = arith.mulf %109, %109 : vector<16x64xf32>
    %111 = arith.mulf %109, %110 : vector<16x64xf32>
    %cst_74 = arith.constant 4.471500e-02 : f32
    %112 = vector.broadcast %cst_74 : f32 to vector<16x64xf32>
    %113 = arith.mulf %112, %111 : vector<16x64xf32>
    %114 = arith.addf %109, %113 : vector<16x64xf32>
    %cst_75 = arith.constant 0.797884583 : f32
    %115 = vector.broadcast %cst_75 : f32 to vector<16x64xf32>
    %116 = arith.mulf %115, %114 : vector<16x64xf32>
    %117 = math.tanh %116 : vector<16x64xf32>
    %cst_76 = arith.constant 1.000000e+00 : f32
    %118 = vector.broadcast %cst_76 : f32 to vector<16x64xf32>
    %119 = arith.addf %118, %117 : vector<16x64xf32>
    %cst_77 = arith.constant 5.000000e-01 : f32
    %120 = vector.broadcast %cst_77 : f32 to vector<16x64xf32>
    %121 = arith.mulf %120, %119 : vector<16x64xf32>
    %122 = arith.mulf %109, %121 : vector<16x64xf32>
    %cst_78 = arith.constant dense<0.000000e+00> : vector<16x32xf32>
    %123 = tpu.matmul %122, %42, %cst_78 {dimension_numbers = #tpu.dot_dimension_numbers<[1], [0], [0], [1], [0, 0, 1, 1], [], []>} : vector<16x64xf32>, vector<64x32xf32>, vector<16x32xf32> -> vector<16x32xf32>
    %124 = vector.broadcast %43 : vector<1x32xf32> to vector<16x32xf32>
    %125 = arith.addf %123, %124 : vector<16x32xf32>
    %cst_79 = arith.constant dense<0.000000e+00> : vector<16x8xf32>
    %126 = tpu.matmul %125, %44, %cst_79 {dimension_numbers = #tpu.dot_dimension_numbers<[1], [0], [0], [1], [0, 0, 1, 1], [], []>} : vector<16x32xf32>, vector<32x8xf32>, vector<16x8xf32> -> vector<16x8xf32>
    %127 = vector.broadcast %45 : vector<1x8xf32> to vector<16x8xf32>
    %128 = arith.addf %126, %127 : vector<16x8xf32>
    %cst_80 = arith.constant 0.000000e+00 : f32
    %129 = vector.broadcast %cst_80 : f32 to vector<16x8xf32>
    %130 = arith.maximumf %128, %129 : vector<16x8xf32>
    %cst_81 = arith.constant dense<0.000000e+00> : vector<16x32xf32>
    %131 = tpu.matmul %130, %46, %cst_81 {dimension_numbers = #tpu.dot_dimension_numbers<[1], [0], [0], [1], [0, 0, 1, 1], [], []>} : vector<16x8xf32>, vector<8x32xf32>, vector<16x32xf32> -> vector<16x32xf32>
    %132 = vector.broadcast %47 : vector<1x32xf32> to vector<16x32xf32>
    %133 = arith.addf %131, %132 : vector<16x32xf32>
    %134 = arith.addf %125, %133 : vector<16x32xf32>
    %135 = arith.addf %134, %106 : vector<16x32xf32>
    %cst_82 = arith.constant dense<0.000000e+00> : vector<16xf32>
    %136 = vector.multi_reduction <add>, %135, %cst_82 [1] : vector<16x32xf32> to vector<16xf32>
    %137 = vector.shape_cast %136 : vector<16xf32> to vector<16x1xf32>
    %cst_83 = arith.constant 3.200000e+01 : f32
    %138 = vector.broadcast %cst_83 : f32 to vector<16x1xf32>
    %139 = arith.divf %137, %138 : vector<16x1xf32>
    %140 = vector.broadcast %139 : vector<16x1xf32> to vector<16x32xf32>
    %141 = arith.subf %135, %140 : vector<16x32xf32>
    %142 = arith.mulf %141, %141 : vector<16x32xf32>
    %cst_84 = arith.constant dense<0.000000e+00> : vector<16xf32>
    %143 = vector.multi_reduction <add>, %142, %cst_84 [1] : vector<16x32xf32> to vector<16xf32>
    %144 = vector.shape_cast %143 : vector<16xf32> to vector<16x1xf32>
    %cst_85 = arith.constant 3.200000e+01 : f32
    %145 = vector.broadcast %cst_85 : f32 to vector<16x1xf32>
    %146 = arith.divf %144, %145 : vector<16x1xf32>
    %cst_86 = arith.constant 9.99999974E-6 : f32
    %147 = vector.broadcast %cst_86 : f32 to vector<16x1xf32>
    %148 = arith.addf %146, %147 : vector<16x1xf32>
    %149 = math.rsqrt %148 : vector<16x1xf32>
    %150 = vector.broadcast %149 : vector<16x1xf32> to vector<16x32xf32>
    %151 = arith.mulf %141, %150 : vector<16x32xf32>
    %152 = vector.broadcast %48 : vector<1x32xf32> to vector<16x32xf32>
    %153 = arith.mulf %151, %152 : vector<16x32xf32>
    %154 = vector.broadcast %49 : vector<1x32xf32> to vector<16x32xf32>
    %155 = arith.addf %153, %154 : vector<16x32xf32>
    %c0_87 = arith.constant 0 : index
    %c0_88 = arith.constant 0 : index
    %c0_89 = arith.constant 0 : index
    %156 = vector.load %arg25[%c0_87, %c0_88, %c0_89] : memref<8x32x8xf32, #tpu.memory_space<vmem>>, vector<8x32x8xf32>
    %c0_90 = arith.constant 0 : index
    %c0_91 = arith.constant 0 : index
    %c0_92 = arith.constant 0 : index
    %157 = vector.load %arg26[%c0_90, %c0_91, %c0_92] : memref<8x1x8xf32, #tpu.memory_space<vmem>>, vector<8x1x8xf32>
    %c0_93 = arith.constant 0 : index
    %c0_94 = arith.constant 0 : index
    %c0_95 = arith.constant 0 : index
    %158 = vector.load %arg27[%c0_93, %c0_94, %c0_95] : memref<8x32x8xf32, #tpu.memory_space<vmem>>, vector<8x32x8xf32>
    %c0_96 = arith.constant 0 : index
    %c0_97 = arith.constant 0 : index
    %c0_98 = arith.constant 0 : index
    %159 = vector.load %arg28[%c0_96, %c0_97, %c0_98] : memref<8x1x8xf32, #tpu.memory_space<vmem>>, vector<8x1x8xf32>
    %c0_99 = arith.constant 0 : index
    %c0_100 = arith.constant 0 : index
    %c0_101 = arith.constant 0 : index
    %160 = vector.load %arg29[%c0_99, %c0_100, %c0_101] : memref<8x32x8xf32, #tpu.memory_space<vmem>>, vector<8x32x8xf32>
    %c0_102 = arith.constant 0 : index
    %c0_103 = arith.constant 0 : index
    %c0_104 = arith.constant 0 : index
    %161 = vector.load %arg30[%c0_102, %c0_103, %c0_104] : memref<8x1x8xf32, #tpu.memory_space<vmem>>, vector<8x1x8xf32>
    %c0_105 = arith.constant 0 : index
    %c0_106 = arith.constant 0 : index
    %c0_107 = arith.constant 0 : index
    %162 = vector.load %arg31[%c0_105, %c0_106, %c0_107] : memref<8x8x32xf32, #tpu.memory_space<vmem>>, vector<8x8x32xf32>
    %c0_108 = arith.constant 0 : index
    %c0_109 = arith.constant 0 : index
    %163 = vector.load %arg32[%c0_108, %c0_109] : memref<1x32xf32, #tpu.memory_space<vmem>>, vector<1x32xf32>
    %c0_110 = arith.constant 0 : index
    %c0_111 = arith.constant 0 : index
    %164 = vector.load %arg33[%c0_110, %c0_111] : memref<1x32xf32, #tpu.memory_space<vmem>>, vector<1x32xf32>
    %c0_112 = arith.constant 0 : index
    %c0_113 = arith.constant 0 : index
    %165 = vector.load %arg34[%c0_112, %c0_113] : memref<1x32xf32, #tpu.memory_space<vmem>>, vector<1x32xf32>
    %c0_114 = arith.constant 0 : index
    %c0_115 = arith.constant 0 : index
    %166 = vector.load %arg35[%c0_114, %c0_115] : memref<32x64xf32, #tpu.memory_space<vmem>>, vector<32x64xf32>
    %c0_116 = arith.constant 0 : index
    %c0_117 = arith.constant 0 : index
    %167 = vector.load %arg36[%c0_116, %c0_117] : memref<1x64xf32, #tpu.memory_space<vmem>>, vector<1x64xf32>
    %c0_118 = arith.constant 0 : index
    %c0_119 = arith.constant 0 : index
    %168 = vector.load %arg37[%c0_118, %c0_119] : memref<64x32xf32, #tpu.memory_space<vmem>>, vector<64x32xf32>
    %c0_120 = arith.constant 0 : index
    %c0_121 = arith.constant 0 : index
    %169 = vector.load %arg38[%c0_120, %c0_121] : memref<1x32xf32, #tpu.memory_space<vmem>>, vector<1x32xf32>
    %c0_122 = arith.constant 0 : index
    %c0_123 = arith.constant 0 : index
    %170 = vector.load %arg39[%c0_122, %c0_123] : memref<32x8xf32, #tpu.memory_space<vmem>>, vector<32x8xf32>
    %c0_124 = arith.constant 0 : index
    %c0_125 = arith.constant 0 : index
    %171 = vector.load %arg40[%c0_124, %c0_125] : memref<1x8xf32, #tpu.memory_space<vmem>>, vector<1x8xf32>
    %c0_126 = arith.constant 0 : index
    %c0_127 = arith.constant 0 : index
    %172 = vector.load %arg41[%c0_126, %c0_127] : memref<8x32xf32, #tpu.memory_space<vmem>>, vector<8x32xf32>
    %c0_128 = arith.constant 0 : index
    %c0_129 = arith.constant 0 : index
    %173 = vector.load %arg42[%c0_128, %c0_129] : memref<1x32xf32, #tpu.memory_space<vmem>>, vector<1x32xf32>
    %c0_130 = arith.constant 0 : index
    %c0_131 = arith.constant 0 : index
    %174 = vector.load %arg43[%c0_130, %c0_131] : memref<1x32xf32, #tpu.memory_space<vmem>>, vector<1x32xf32>
    %c0_132 = arith.constant 0 : index
    %c0_133 = arith.constant 0 : index
    %175 = vector.load %arg44[%c0_132, %c0_133] : memref<1x32xf32, #tpu.memory_space<vmem>>, vector<1x32xf32>
    %176 = vector.shape_cast %155 : vector<16x32xf32> to vector<2x8x32xf32>
    %177 = tpu.concatenate %176, %176, %176, %176 in 0 : vector<2x8x32xf32>, vector<2x8x32xf32>, vector<2x8x32xf32>, vector<2x8x32xf32> -> vector<8x8x32xf32>
    "tpu.trace_start"() <{level = 10 : i32, message = "zsk,zkd->zsd"}> : () -> ()
    %cst_134 = arith.constant dense<0.000000e+00> : vector<8x8x8xf32>
    %178 = tpu.matmul %177, %156, %cst_134 {dimension_numbers = #tpu.dot_dimension_numbers<[2], [1], [1], [2], [0, 0, 0, 1, 1, 2], [0], [0]>} : vector<8x8x32xf32>, vector<8x32x8xf32>, vector<8x8x8xf32> -> vector<8x8x8xf32>
    "tpu.trace_stop"() : () -> ()
    %179 = vector.broadcast %157 : vector<8x1x8xf32> to vector<8x8x8xf32>
    %180 = arith.addf %178, %179 : vector<8x8x8xf32>
    "tpu.trace_start"() <{level = 10 : i32, message = "zsk,zkd->zsd"}> : () -> ()
    %cst_135 = arith.constant dense<0.000000e+00> : vector<8x8x8xf32>
    %181 = tpu.matmul %177, %158, %cst_135 {dimension_numbers = #tpu.dot_dimension_numbers<[2], [1], [1], [2], [0, 0, 0, 1, 1, 2], [0], [0]>} : vector<8x8x32xf32>, vector<8x32x8xf32>, vector<8x8x8xf32> -> vector<8x8x8xf32>
    "tpu.trace_stop"() : () -> ()
    %182 = vector.broadcast %159 : vector<8x1x8xf32> to vector<8x8x8xf32>
    %183 = arith.addf %181, %182 : vector<8x8x8xf32>
    "tpu.trace_start"() <{level = 10 : i32, message = "zsk,zkd->zsd"}> : () -> ()
    %cst_136 = arith.constant dense<0.000000e+00> : vector<8x8x8xf32>
    %184 = tpu.matmul %177, %160, %cst_136 {dimension_numbers = #tpu.dot_dimension_numbers<[2], [1], [1], [2], [0, 0, 0, 1, 1, 2], [0], [0]>} : vector<8x8x32xf32>, vector<8x32x8xf32>, vector<8x8x8xf32> -> vector<8x8x8xf32>
    "tpu.trace_stop"() : () -> ()
    %185 = vector.broadcast %161 : vector<8x1x8xf32> to vector<8x8x8xf32>
    %186 = arith.addf %184, %185 : vector<8x8x8xf32>
    "tpu.trace_start"() <{level = 10 : i32, message = "zqd,zkd->zqk"}> : () -> ()
    %cst_137 = arith.constant dense<0.000000e+00> : vector<8x8x8xf32>
    %187 = tpu.matmul %180, %183, %cst_137 {dimension_numbers = #tpu.dot_dimension_numbers<[2], [2], [1], [1], [0, 0, 0, 1, 1, 1], [0], [0]>} : vector<8x8x8xf32>, vector<8x8x8xf32>, vector<8x8x8xf32> -> vector<8x8x8xf32>
    "tpu.trace_stop"() : () -> ()
    %188 = vector.broadcast %7 : vector<8x1x8xf32> to vector<8x8x8xf32>
    %189 = arith.addf %187, %188 : vector<8x8x8xf32>
    %cst_138 = arith.constant dense<0xFF800000> : vector<8x8xf32>
    %190 = vector.multi_reduction <maximumf>, %189, %cst_138 [2] : vector<8x8x8xf32> to vector<8x8xf32>
    %191 = vector.shape_cast %190 : vector<8x8xf32> to vector<8x8x1xf32>
    %192 = vector.broadcast %191 : vector<8x8x1xf32> to vector<8x8x8xf32>
    %193 = arith.subf %189, %192 : vector<8x8x8xf32>
    %194 = math.exp %193 : vector<8x8x8xf32>
    %cst_139 = arith.constant dense<0.000000e+00> : vector<8x8xf32>
    %195 = vector.multi_reduction <add>, %194, %cst_139 [2] : vector<8x8x8xf32> to vector<8x8xf32>
    %196 = vector.shape_cast %195 : vector<8x8xf32> to vector<8x8x1xf32>
    %197 = tpu.reciprocal %196 {approx = true} : vector<8x8x1xf32> -> vector<8x8x1xf32>
    %198 = vector.broadcast %197 : vector<8x8x1xf32> to vector<8x8x8xf32>
    %199 = arith.mulf %194, %198 : vector<8x8x8xf32>
    "tpu.trace_start"() <{level = 10 : i32, message = "zqk,zkd->zqd"}> : () -> ()
    %cst_140 = arith.constant dense<0.000000e+00> : vector<8x8x8xf32>
    %200 = tpu.matmul %199, %186, %cst_140 {dimension_numbers = #tpu.dot_dimension_numbers<[2], [1], [1], [2], [0, 0, 0, 1, 1, 2], [0], [0]>} : vector<8x8x8xf32>, vector<8x8x8xf32>, vector<8x8x8xf32> -> vector<8x8x8xf32>
    "tpu.trace_stop"() : () -> ()
    "tpu.trace_start"() <{level = 10 : i32, message = "zqd,zdj->zqj"}> : () -> ()
    %cst_141 = arith.constant dense<0.000000e+00> : vector<8x8x32xf32>
    %201 = tpu.matmul %200, %162, %cst_141 {dimension_numbers = #tpu.dot_dimension_numbers<[2], [1], [1], [2], [0, 0, 0, 1, 1, 2], [0], [0]>} : vector<8x8x8xf32>, vector<8x8x32xf32>, vector<8x8x32xf32> -> vector<8x8x32xf32>
    "tpu.trace_stop"() : () -> ()
    %202 = vector.extract_strided_slice %201 {offsets = [0, 0, 0], sizes = [2, 8, 32], strides = [1, 1, 1]} : vector<8x8x32xf32> to vector<2x8x32xf32>
    %203 = vector.extract_strided_slice %201 {offsets = [2, 0, 0], sizes = [2, 8, 32], strides = [1, 1, 1]} : vector<8x8x32xf32> to vector<2x8x32xf32>
    %204 = arith.addf %202, %203 : vector<2x8x32xf32>
    %205 = vector.extract_strided_slice %201 {offsets = [4, 0, 0], sizes = [2, 8, 32], strides = [1, 1, 1]} : vector<8x8x32xf32> to vector<2x8x32xf32>
    %206 = arith.addf %204, %205 : vector<2x8x32xf32>
    %207 = vector.extract_strided_slice %201 {offsets = [6, 0, 0], sizes = [2, 8, 32], strides = [1, 1, 1]} : vector<8x8x32xf32> to vector<2x8x32xf32>
    %208 = arith.addf %206, %207 : vector<2x8x32xf32>
    %209 = vector.shape_cast %208 : vector<2x8x32xf32> to vector<16x32xf32>
    %210 = vector.broadcast %163 : vector<1x32xf32> to vector<16x32xf32>
    %211 = arith.addf %209, %210 : vector<16x32xf32>
    %212 = arith.addf %211, %155 : vector<16x32xf32>
    %cst_142 = arith.constant dense<0.000000e+00> : vector<16xf32>
    %213 = vector.multi_reduction <add>, %212, %cst_142 [1] : vector<16x32xf32> to vector<16xf32>
    %214 = vector.shape_cast %213 : vector<16xf32> to vector<16x1xf32>
    %cst_143 = arith.constant 3.200000e+01 : f32
    %215 = vector.broadcast %cst_143 : f32 to vector<16x1xf32>
    %216 = arith.divf %214, %215 : vector<16x1xf32>
    %217 = vector.broadcast %216 : vector<16x1xf32> to vector<16x32xf32>
    %218 = arith.subf %212, %217 : vector<16x32xf32>
    %219 = arith.mulf %218, %218 : vector<16x32xf32>
    %cst_144 = arith.constant dense<0.000000e+00> : vector<16xf32>
    %220 = vector.multi_reduction <add>, %219, %cst_144 [1] : vector<16x32xf32> to vector<16xf32>
    %221 = vector.shape_cast %220 : vector<16xf32> to vector<16x1xf32>
    %cst_145 = arith.constant 3.200000e+01 : f32
    %222 = vector.broadcast %cst_145 : f32 to vector<16x1xf32>
    %223 = arith.divf %221, %222 : vector<16x1xf32>
    %cst_146 = arith.constant 9.99999974E-6 : f32
    %224 = vector.broadcast %cst_146 : f32 to vector<16x1xf32>
    %225 = arith.addf %223, %224 : vector<16x1xf32>
    %226 = math.rsqrt %225 : vector<16x1xf32>
    %227 = vector.broadcast %226 : vector<16x1xf32> to vector<16x32xf32>
    %228 = arith.mulf %218, %227 : vector<16x32xf32>
    %229 = vector.broadcast %164 : vector<1x32xf32> to vector<16x32xf32>
    %230 = arith.mulf %228, %229 : vector<16x32xf32>
    %231 = vector.broadcast %165 : vector<1x32xf32> to vector<16x32xf32>
    %232 = arith.addf %230, %231 : vector<16x32xf32>
    %cst_147 = arith.constant dense<0.000000e+00> : vector<16x64xf32>
    %233 = tpu.matmul %232, %166, %cst_147 {dimension_numbers = #tpu.dot_dimension_numbers<[1], [0], [0], [1], [0, 0, 1, 1], [], []>} : vector<16x32xf32>, vector<32x64xf32>, vector<16x64xf32> -> vector<16x64xf32>
    %234 = vector.broadcast %167 : vector<1x64xf32> to vector<16x64xf32>
    %235 = arith.addf %233, %234 : vector<16x64xf32>
    %236 = arith.mulf %235, %235 : vector<16x64xf32>
    %237 = arith.mulf %235, %236 : vector<16x64xf32>
    %cst_148 = arith.constant 4.471500e-02 : f32
    %238 = vector.broadcast %cst_148 : f32 to vector<16x64xf32>
    %239 = arith.mulf %238, %237 : vector<16x64xf32>
    %240 = arith.addf %235, %239 : vector<16x64xf32>
    %cst_149 = arith.constant 0.797884583 : f32
    %241 = vector.broadcast %cst_149 : f32 to vector<16x64xf32>
    %242 = arith.mulf %241, %240 : vector<16x64xf32>
    %243 = math.tanh %242 : vector<16x64xf32>
    %cst_150 = arith.constant 1.000000e+00 : f32
    %244 = vector.broadcast %cst_150 : f32 to vector<16x64xf32>
    %245 = arith.addf %244, %243 : vector<16x64xf32>
    %cst_151 = arith.constant 5.000000e-01 : f32
    %246 = vector.broadcast %cst_151 : f32 to vector<16x64xf32>
    %247 = arith.mulf %246, %245 : vector<16x64xf32>
    %248 = arith.mulf %235, %247 : vector<16x64xf32>
    %cst_152 = arith.constant dense<0.000000e+00> : vector<16x32xf32>
    %249 = tpu.matmul %248, %168, %cst_152 {dimension_numbers = #tpu.dot_dimension_numbers<[1], [0], [0], [1], [0, 0, 1, 1], [], []>} : vector<16x64xf32>, vector<64x32xf32>, vector<16x32xf32> -> vector<16x32xf32>
    %250 = vector.broadcast %169 : vector<1x32xf32> to vector<16x32xf32>
    %251 = arith.addf %249, %250 : vector<16x32xf32>
    %cst_153 = arith.constant dense<0.000000e+00> : vector<16x8xf32>
    %252 = tpu.matmul %251, %170, %cst_153 {dimension_numbers = #tpu.dot_dimension_numbers<[1], [0], [0], [1], [0, 0, 1, 1], [], []>} : vector<16x32xf32>, vector<32x8xf32>, vector<16x8xf32> -> vector<16x8xf32>
    %253 = vector.broadcast %171 : vector<1x8xf32> to vector<16x8xf32>
    %254 = arith.addf %252, %253 : vector<16x8xf32>
    %cst_154 = arith.constant 0.000000e+00 : f32
    %255 = vector.broadcast %cst_154 : f32 to vector<16x8xf32>
    %256 = arith.maximumf %254, %255 : vector<16x8xf32>
    %cst_155 = arith.constant dense<0.000000e+00> : vector<16x32xf32>
    %257 = tpu.matmul %256, %172, %cst_155 {dimension_numbers = #tpu.dot_dimension_numbers<[1], [0], [0], [1], [0, 0, 1, 1], [], []>} : vector<16x8xf32>, vector<8x32xf32>, vector<16x32xf32> -> vector<16x32xf32>
    %258 = vector.broadcast %173 : vector<1x32xf32> to vector<16x32xf32>
    %259 = arith.addf %257, %258 : vector<16x32xf32>
    %260 = arith.addf %251, %259 : vector<16x32xf32>
    %261 = arith.addf %260, %232 : vector<16x32xf32>
    %cst_156 = arith.constant dense<0.000000e+00> : vector<16xf32>
    %262 = vector.multi_reduction <add>, %261, %cst_156 [1] : vector<16x32xf32> to vector<16xf32>
    %263 = vector.shape_cast %262 : vector<16xf32> to vector<16x1xf32>
    %cst_157 = arith.constant 3.200000e+01 : f32
    %264 = vector.broadcast %cst_157 : f32 to vector<16x1xf32>
    %265 = arith.divf %263, %264 : vector<16x1xf32>
    %266 = vector.broadcast %265 : vector<16x1xf32> to vector<16x32xf32>
    %267 = arith.subf %261, %266 : vector<16x32xf32>
    %268 = arith.mulf %267, %267 : vector<16x32xf32>
    %cst_158 = arith.constant dense<0.000000e+00> : vector<16xf32>
    %269 = vector.multi_reduction <add>, %268, %cst_158 [1] : vector<16x32xf32> to vector<16xf32>
    %270 = vector.shape_cast %269 : vector<16xf32> to vector<16x1xf32>
    %cst_159 = arith.constant 3.200000e+01 : f32
    %271 = vector.broadcast %cst_159 : f32 to vector<16x1xf32>
    %272 = arith.divf %270, %271 : vector<16x1xf32>
    %cst_160 = arith.constant 9.99999974E-6 : f32
    %273 = vector.broadcast %cst_160 : f32 to vector<16x1xf32>
    %274 = arith.addf %272, %273 : vector<16x1xf32>
    %275 = math.rsqrt %274 : vector<16x1xf32>
    %276 = vector.broadcast %275 : vector<16x1xf32> to vector<16x32xf32>
    %277 = arith.mulf %267, %276 : vector<16x32xf32>
    %278 = vector.broadcast %174 : vector<1x32xf32> to vector<16x32xf32>
    %279 = arith.mulf %277, %278 : vector<16x32xf32>
    %280 = vector.broadcast %175 : vector<1x32xf32> to vector<16x32xf32>
    %281 = arith.addf %279, %280 : vector<16x32xf32>
    %c0_161 = arith.constant 0 : index
    %c0_162 = arith.constant 0 : index
    %282 = vector.load %arg45[%c0_161, %c0_162] : memref<32x128xf32, #tpu.memory_space<vmem>>, vector<32x128xf32>
    %cst_163 = arith.constant dense<0.000000e+00> : vector<16x128xf32>
    %283 = tpu.matmul %281, %282, %cst_163 {dimension_numbers = #tpu.dot_dimension_numbers<[1], [0], [0], [1], [0, 0, 1, 1], [], []>} : vector<16x32xf32>, vector<32x128xf32>, vector<16x128xf32> -> vector<16x128xf32>
    %c0_164 = arith.constant 0 : index
    %c0_165 = arith.constant 0 : index
    %284 = vector.load %arg46[%c0_164, %c0_165] : memref<1x128xf32, #tpu.memory_space<vmem>>, vector<1x128xf32>
    %285 = vector.broadcast %284 : vector<1x128xf32> to vector<16x128xf32>
    %286 = arith.addf %283, %285 : vector<16x128xf32>
    %c0_166 = arith.constant 0 : index
    %c0_167 = arith.constant 0 : index
    %287 = vector.load %arg47[%c0_166, %c0_167] : memref<16x128xf32, #tpu.memory_space<vmem>>, vector<16x128xf32>
    tpu.vector_store %arg47[%c0_166, %c0_167], %286 {strides = array<i32>} : memref<16x128xf32, #tpu.memory_space<vmem>>, vector<16x128xf32>,
    return
  }
  func.func @transform_0(%arg0: i32) -> (i32, i32) {
    %c0_i32 = arith.constant 0 : i32
    %c0_i32_0 = arith.constant 0 : i32
    %c0_i32_1 = arith.constant 0 : i32
    return %c0_i32, %c0_i32_0 : i32, i32
  }
  func.func @transform_1(%arg0: i32) -> (i32, i32) {
    %c0_i32 = arith.constant 0 : i32
    %c0_i32_0 = arith.constant 0 : i32
    %c0_i32_1 = arith.constant 0 : i32
    return %c0_i32, %c0_i32_0 : i32, i32
  }
  func.func @transform_2(%arg0: i32) -> (i32, i32) {
    %c0_i32 = arith.constant 0 : i32
    %c0_i32_0 = arith.constant 0 : i32
    %c0_i32_1 = arith.constant 0 : i32
    return %c0_i32, %c0_i32_0 : i32, i32
  }
  func.func @transform_3(%arg0: i32) -> (i32, i32) {
    %c0_i32 = arith.constant 0 : i32
    %c0_i32_0 = arith.constant 0 : i32
    %c0_i32_1 = arith.constant 0 : i32
    return %c0_i32, %c0_i32_0 : i32, i32
  }
  func.func @transform_4(%arg0: i32) -> (i32, i32, i32) {
    %c0_i32 = arith.constant 0 : i32
    %c0_i32_0 = arith.constant 0 : i32
    %c0_i32_1 = arith.constant 0 : i32
    %c0_i32_2 = arith.constant 0 : i32
    return %c0_i32, %c0_i32_0, %c0_i32_1 : i32, i32, i32
  }
  func.func @transform_5(%arg0: i32) -> (i32, i32, i32) {
    %c0_i32 = arith.constant 0 : i32
    %c0_i32_0 = arith.constant 0 : i32
    %c0_i32_1 = arith.constant 0 : i32
    %c0_i32_2 = arith.constant 0 : i32
    return %c0_i32, %c0_i32_0, %c0_i32_1 : i32, i32, i32
  }
  func.func @transform_6(%arg0: i32) -> (i32, i32, i32) {
    %c0_i32 = arith.constant 0 : i32
    %c0_i32_0 = arith.constant 0 : i32
    %c0_i32_1 = arith.constant 0 : i32
    %c0_i32_2 = arith.constant 0 : i32
    return %c0_i32, %c0_i32_0, %c0_i32_1 : i32, i32, i32
  }
  func.func @transform_7(%arg0: i32) -> (i32, i32, i32) {
    %c0_i32 = arith.constant 0 : i32
    %c0_i32_0 = arith.constant 0 : i32
    %c0_i32_1 = arith.constant 0 : i32
    %c0_i32_2 = arith.constant 0 : i32
    return %c0_i32, %c0_i32_0, %c0_i32_1 : i32, i32, i32
  }
  func.func @transform_8(%arg0: i32) -> (i32, i32, i32) {
    %c0_i32 = arith.constant 0 : i32
    %c0_i32_0 = arith.constant 0 : i32
    %c0_i32_1 = arith.constant 0 : i32
    %c0_i32_2 = arith.constant 0 : i32
    return %c0_i32, %c0_i32_0, %c0_i32_1 : i32, i32, i32
  }
  func.func @transform_9(%arg0: i32) -> (i32, i32, i32) {
    %c0_i32 = arith.constant 0 : i32
    %c0_i32_0 = arith.constant 0 : i32
    %c0_i32_1 = arith.constant 0 : i32
    %c0_i32_2 = arith.constant 0 : i32
    return %c0_i32, %c0_i32_0, %c0_i32_1 : i32, i32, i32
  }
  func.func @transform_10(%arg0: i32) -> (i32, i32, i32) {
    %c0_i32 = arith.constant 0 : i32
    %c0_i32_0 = arith.constant 0 : i32
    %c0_i32_1 = arith.constant 0 : i32
    %c0_i32_2 = arith.constant 0 : i32
    return %c0_i32, %c0_i32_0, %c0_i32_1 : i32, i32, i32
  }
  func.func @transform_11(%arg0: i32) -> (i32, i32) {
    %c0_i32 = arith.constant 0 : i32
    %c0_i32_0 = arith.constant 0 : i32
    %c0_i32_1 = arith.constant 0 : i32
    return %c0_i32, %c0_i32_0 : i32, i32
  }
  func.func @transform_12(%arg0: i32) -> (i32, i32) {
    %c0_i32 = arith.constant 0 : i32
    %c0_i32_0 = arith.constant 0 : i32
    %c0_i32_1 = arith.constant 0 : i32
    return %c0_i32, %c0_i32_0 : i32, i32
  }
  func.func @transform_13(%arg0: i32) -> (i32, i32) {
    %c0_i32 = arith.constant 0 : i32
    %c0_i32_0 = arith.constant 0 : i32
    %c0_i32_1 = arith.constant 0 : i32
    return %c0_i32, %c0_i32_0 : i32, i32
  }
  func.func @transform_14(%arg0: i32) -> (i32, i32) {
    %c0_i32 = arith.constant 0 : i32
    %c0_i32_0 = arith.constant 0 : i32
    %c0_i32_1 = arith.constant 0 : i32
    return %c0_i32, %c0_i32_0 : i32, i32
  }
  func.func @transform_15(%arg0: i32) -> (i32, i32) {
    %c0_i32 = arith.constant 0 : i32
    %c0_i32_0 = arith.constant 0 : i32
    %c0_i32_1 = arith.constant 0 : i32
    return %c0_i32, %c0_i32_0 : i32, i32
  }
  func.func @transform_16(%arg0: i32) -> (i32, i32) {
    %c0_i32 = arith.constant 0 : i32
    %c0_i32_0 = arith.constant 0 : i32
    %c0_i32_1 = arith.constant 0 : i32
    return %c0_i32, %c0_i32_0 : i32, i32
  }
  func.func @transform_17(%arg0: i32) -> (i32, i32) {
    %c0_i32 = arith.constant 0 : i32
    %c0_i32_0 = arith.constant 0 : i32
    %c0_i32_1 = arith.constant 0 : i32
    return %c0_i32, %c0_i32_0 : i32, i32
  }
  func.func @transform_18(%arg0: i32) -> (i32, i32) {
    %c0_i32 = arith.constant 0 : i32
    %c0_i32_0 = arith.constant 0 : i32
    %c0_i32_1 = arith.constant 0 : i32
    return %c0_i32, %c0_i32_0 : i32, i32
  }
  func.func @transform_19(%arg0: i32) -> (i32, i32) {
    %c0_i32 = arith.constant 0 : i32
    %c0_i32_0 = arith.constant 0 : i32
    %c0_i32_1 = arith.constant 0 : i32
    return %c0_i32, %c0_i32_0 : i32, i32
  }
  func.func @transform_20(%arg0: i32) -> (i32, i32) {
    %c0_i32 = arith.constant 0 : i32
    %c0_i32_0 = arith.constant 0 : i32
    %c0_i32_1 = arith.constant 0 : i32
    return %c0_i32, %c0_i32_0 : i32, i32
  }
  func.func @transform_21(%arg0: i32) -> (i32, i32) {
    %c0_i32 = arith.constant 0 : i32
    %c0_i32_0 = arith.constant 0 : i32
    %c0_i32_1 = arith.constant 0 : i32
    return %c0_i32, %c0_i32_0 : i32, i32
  }
  func.func @transform_22(%arg0: i32) -> (i32, i32) {
    %c0_i32 = arith.constant 0 : i32
    %c0_i32_0 = arith.constant 0 : i32
    %c0_i32_1 = arith.constant 0 : i32
    return %c0_i32, %c0_i32_0 : i32, i32
  }
  func.func @transform_23(%arg0: i32) -> (i32, i32) {
    %c0_i32 = arith.constant 0 : i32
    %c0_i32_0 = arith.constant 0 : i32
    %c0_i32_1 = arith.constant 0 : i32
    return %c0_i32, %c0_i32_0 : i32, i32
  }
  func.func @transform_24(%arg0: i32) -> (i32, i32, i32) {
    %c0_i32 = arith.constant 0 : i32
    %c0_i32_0 = arith.constant 0 : i32
    %c0_i32_1 = arith.constant 0 : i32
    %c0_i32_2 = arith.constant 0 : i32
    return %c0_i32, %c0_i32_0, %c0_i32_1 : i32, i32, i32
  }
  func.func @transform_25(%arg0: i32) -> (i32, i32, i32) {
    %c0_i32 = arith.constant 0 : i32
    %c0_i32_0 = arith.constant 0 : i32
    %c0_i32_1 = arith.constant 0 : i32
    %c0_i32_2 = arith.constant 0 : i32
    return %c0_i32, %c0_i32_0, %c0_i32_1 : i32, i32, i32
  }
  func.func @transform_26(%arg0: i32) -> (i32, i32, i32) {
    %c0_i32 = arith.constant 0 : i32
    %c0_i32_0 = arith.constant 0 : i32
    %c0_i32_1 = arith.constant 0 : i32
    %c0_i32_2 = arith.constant 0 : i32
    return %c0_i32, %c0_i32_0, %c0_i32_1 : i32, i32, i32
  }
  func.func @transform_27(%arg0: i32) -> (i32, i32, i32) {
    %c0_i32 = arith.constant 0 : i32
    %c0_i32_0 = arith.constant 0 : i32
    %c0_i32_1 = arith.constant 0 : i32
    %c0_i32_2 = arith.constant 0 : i32
    return %c0_i32, %c0_i32_0, %c0_i32_1 : i32, i32, i32
  }
  func.func @transform_28(%arg0: i32) -> (i32, i32, i32) {
    %c0_i32 = arith.constant 0 : i32
    %c0_i32_0 = arith.constant 0 : i32
    %c0_i32_1 = arith.constant 0 : i32
    %c0_i32_2 = arith.constant 0 : i32
    return %c0_i32, %c0_i32_0, %c0_i32_1 : i32, i32, i32
  }
  func.func @transform_29(%arg0: i32) -> (i32, i32, i32) {
    %c0_i32 = arith.constant 0 : i32
    %c0_i32_0 = arith.constant 0 : i32
    %c0_i32_1 = arith.constant 0 : i32
    %c0_i32_2 = arith.constant 0 : i32
    return %c0_i32, %c0_i32_0, %c0_i32_1 : i32, i32, i32
  }
  func.func @transform_30(%arg0: i32) -> (i32, i32, i32) {
    %c0_i32 = arith.constant 0 : i32
    %c0_i32_0 = arith.constant 0 : i32
    %c0_i32_1 = arith.constant 0 : i32
    %c0_i32_2 = arith.constant 0 : i32
    return %c0_i32, %c0_i32_0, %c0_i32_1 : i32, i32, i32
  }
  func.func @transform_31(%arg0: i32) -> (i32, i32) {
    %c0_i32 = arith.constant 0 : i32
    %c0_i32_0 = arith.constant 0 : i32
    %c0_i32_1 = arith.constant 0 : i32
    return %c0_i32, %c0_i32_0 : i32, i32
  }
  func.func @transform_32(%arg0: i32) -> (i32, i32) {
    %c0_i32 = arith.constant 0 : i32
    %c0_i32_0 = arith.constant 0 : i32
    %c0_i32_1 = arith.constant 0 : i32
    return %c0_i32, %c0_i32_0 : i32, i32
  }
  func.func @transform_33(%arg0: i32) -> (i32, i32) {
    %c0_i32 = arith.constant 0 : i32
    %c0_i32_0 = arith.constant 0 : i32
    %c0_i32_1 = arith.constant 0 : i32
    return %c0_i32, %c0_i32_0 : i32, i32
  }
  func.func @transform_34(%arg0: i32) -> (i32, i32) {
    %c0_i32 = arith.constant 0 : i32
    %c0_i32_0 = arith.constant 0 : i32
    %c0_i32_1 = arith.constant 0 : i32
    return %c0_i32, %c0_i32_0 : i32, i32
  }
  func.func @transform_35(%arg0: i32) -> (i32, i32) {
    %c0_i32 = arith.constant 0 : i32
    %c0_i32_0 = arith.constant 0 : i32
    %c0_i32_1 = arith.constant 0 : i32
    return %c0_i32, %c0_i32_0 : i32, i32
  }
  func.func @transform_36(%arg0: i32) -> (i32, i32) {
    %c0_i32 = arith.constant 0 : i32
    %c0_i32_0 = arith.constant 0 : i32
    %c0_i32_1 = arith.constant 0 : i32
    return %c0_i32, %c0_i32_0 : i32, i32
  }
  func.func @transform_37(%arg0: i32) -> (i32, i32) {
    %c0_i32 = arith.constant 0 : i32
    %c0_i32_0 = arith.constant 0 : i32
    %c0_i32_1 = arith.constant 0 : i32
    return %c0_i32, %c0_i32_0 : i32, i32
  }
  func.func @transform_38(%arg0: i32) -> (i32, i32) {
    %c0_i32 = arith.constant 0 : i32
    %c0_i32_0 = arith.constant 0 : i32
    %c0_i32_1 = arith.constant 0 : i32
    return %c0_i32, %c0_i32_0 : i32, i32
  }
  func.func @transform_39(%arg0: i32) -> (i32, i32) {
    %c0_i32 = arith.constant 0 : i32
    %c0_i32_0 = arith.constant 0 : i32
    %c0_i32_1 = arith.constant 0 : i32
    return %c0_i32, %c0_i32_0 : i32, i32
  }
  func.func @transform_40(%arg0: i32) -> (i32, i32) {
    %c0_i32 = arith.constant 0 : i32
    %c0_i32_0 = arith.constant 0 : i32
    %c0_i32_1 = arith.constant 0 : i32
    return %c0_i32, %c0_i32_0 : i32, i32
  }
  func.func @transform_41(%arg0: i32) -> (i32, i32) {
    %c0_i32 = arith.constant 0 : i32
    %c0_i32_0 = arith.constant 0 : i32
    %c0_i32_1 = arith.constant 0 : i32
    return %c0_i32, %c0_i32_0 : i32, i32
  }
  func.func @transform_42(%arg0: i32) -> (i32, i32) {
    %c0_i32 = arith.constant 0 : i32
    %c0_i32_0 = arith.constant 0 : i32
    %c0_i32_1 = arith.constant 0 : i32
    return %c0_i32, %c0_i32_0 : i32, i32
  }
  func.func @transform_43(%arg0: i32) -> (i32, i32) {
    %c0_i32 = arith.constant 0 : i32
    %c0_i32_0 = arith.constant 0 : i32
    %c0_i32_1 = arith.constant 0 : i32
    return %c0_i32, %c0_i32_0 : i32, i32
  }
  func.func @transform_44(%arg0: i32) -> (i32, i32) {
    %c0_i32 = arith.constant 0 : i32
    %c0_i32_0 = arith.constant 0 : i32
    %c0_i32_1 = arith.constant 0 : i32
    return %c0_i32, %c0_i32_0 : i32, i32
  }
  func.func @transform_45(%arg0: i32) -> (i32, i32) {
    %c0_i32 = arith.constant 0 : i32
    %c0_i32_0 = arith.constant 0 : i32
    %c0_i32_1 = arith.constant 0 : i32
    return %c0_i32, %c0_i32_0 : i32, i32
  }
  func.func @transform_46(%arg0: i32) -> (i32, i32) {
    %c0_i32 = arith.constant 0 : i32
    %c0_i32_0 = arith.constant 0 : i32
    %c0_i32_1 = arith.constant 0 : i32
    return %c0_i32, %c0_i32_0 : i32, i32
  }
}

</mosaic_0001>

<bundles_post_ra>
// kernel: forward.1
= control target key start
LH: loop header
LB: loop body
LE: loop exit
PB: predicated region body
PF: predicated region fallthrough
CT: control target
= control target key end

     0   :  { %vm220_vm0 = vcmask 261120   ;;  %s11024_s6 = smov 4   ;;  %v11025_v17 = vmov 0.0|0.0   ;;  %vm11026_vm1 = vmmov 0   ;;  %v11027_v27 = vmov 0.0   ;;  %s11028_s10 = smov 2   ;;  %s12187_s0 = inlined_call_operand.smem [shape: u32[47], index: -1, kind: input, shape index: {}] }
   0x1   :  { %s1_s5 = sld [smem:[%s12187_s0]]   ;;  %10522 = vmatprep.subr.bf16.mxu0 %v11025_v17  ;;  %10528 = vmatprep.subr.bf16.mxu1 %v11025_v17  ;;  %s11029_s14 = smov 3   ;;  %vm2258_vm2 = vcmask 64512   ;;  %vm4292_vm3 = vcmask 523264  }
   0x2   :  { %s11089_s9 = sld [smem:[%s12187_s0 + %s11024_s6]]   ;;  %9659 = vmatprep.mubr.msk.f32.mxu0 %vm11026_vm1, %v11027_v27  ;;  %9670 = vmatprep.mubr.msk.f32.mxu1 %vm11026_vm1, %v11027_v27  ;;  %s11030_s18 = smov 6  }
   0x3   :  { %s9015_s13 = sld [smem:[%s12187_s0 + %s11028_s10]]   ;;  %s11031_s22 = smov 8  }
   0x4   :  { %s9016_s17 = sld [smem:[%s12187_s0 + %s11029_s14]]   ;;  %s11032_s26 = smov 7  }
   0x5   :  { %s11155_s21 = sld [smem:[%s12187_s0 + %s11030_s18]]   ;;  %s11033_s30 = smov 5  }
   0x6   :  { %s11240_s25 = sld [smem:[%s12187_s0 + %s11031_s22]]   ;;  %s11034_s4 = smov 9  }
   0x7   :  { %v190_v0 = vld [vmem:[%s1_s5] sm:$0xff]  ;;  %v191_v1 = vld [vmem:[%s1_s5 + $0x8] sm:$0xff]  ;;  %s11362_s29 = sld [smem:[%s12187_s0 + %s11032_s26]]   ;;  %s11035_s8 = smov 1  }
   0x8   :  { %v221_v2 = vsel %vm220_vm0, %v190_v0, 0.0  ;;  %v224_v3 = vsel %vm220_vm0, %v191_v1, 0.0  ;;  %v264_v14 = vld [vmem:[%s11089_s9] sm:$0xff]  ;;  %v265_v15 = vld [vmem:[%s11089_s9 + $0x8] sm:$0xff]  ;;  %v266_v18 = vld [vmem:[%s11089_s9 + $0x10] sm:$0xff]  ;;  %s11369_s3 = sld [smem:[%s12187_s0 + %s11033_s30]]   ;;  %s11037_s12 = smov 10  }
   0x9   :  { %222 = vadd.xlane.f32.xlu0 %v221_v2  ;;  %v10523_v16 = vpack.c.bf16 %v265_v15, %v264_v14  ;;  %v267_v19 = vld [vmem:[%s11089_s9 + $0x18] sm:$0xff]  ;;  %v268_v20 = vld [vmem:[%s11089_s9 + $0x20] sm:$0xff]  ;;  %v269_v22 = vld [vmem:[%s11089_s9 + $0x28] sm:$0xff]  ;;  %s11412_s7 = sld [smem:[%s12187_s0 + %s11034_s4]]   ;;  %s11038_s16 = smov 11  }
   0xa   :  { %v10526_v21 = vpack.c.bf16 %v267_v19, %v266_v18  ;;  %v10529_v23 = vpack.c.bf16 %v269_v22, %v268_v20  ;;  %v270_v24 = vld [vmem:[%s11089_s9 + $0x30] sm:$0xff]  ;;  %v271_v25 = vld [vmem:[%s11089_s9 + $0x38] sm:$0xff]  ;;  %v9060_v35 = vld [vmem:[%s9015_s13] ss:$0 sm:$0xff]  ;;  %s9014_s11 = sld [smem:[%s12187_s0 + %s11035_s8]]   ;;  %s11039_s20 = smov 14  }
   0xb   :  { %10524 = vmatpush3.bf16.msra.mxu0 %v10523_v16  ;;  %v10532_v26 = vpack.c.bf16 %v271_v25, %v270_v24  ;;  %v272_v37 = vld [vmem:[%s11089_s9 + $0x40] sm:$0xff]  ;;  %v273_v38 = vld [vmem:[%s11089_s9 + $0x48] sm:$0xff]  ;;  %v274_v43 = vld [vmem:[%s11089_s9 + $0x50] sm:$0xff]  ;;  %s11529_s15 = sld [smem:[%s12187_s0 + %s11037_s12]]   ;;  %s11040_s24 = smov 12  }
   0xc   :  { %10525 = vmatprep.subr.bf16.mxu0 %v11025_v17  ;;  %10530 = vmatpush3.bf16.msra.mxu1 %v10529_v23  ;;  %v9061_v39 = vld [vmem:[%s9016_s17] ss:$0 sm:$0xff]  ;;  %v10535_v42 = vpack.c.bf16 %v273_v38, %v272_v37  ;;  %v275_v46 = vld [vmem:[%s11089_s9 + $0x58] sm:$0xff]  ;;  %v277_v48 = vld [vmem:[%s11089_s9 + $0x68] sm:$0xff]  ;;  %s9024_s19 = sld [smem:[%s12187_s0 + %s11038_s16]]   ;;  %s11041_s28 = smov 13  }
   0xd   :  { %225 = vadd.xlane.f32.xlu0 %v224_v3  ;;  %10531 = vmatprep.subr.bf16.mxu1 %v11025_v17  ;;  %v276_v47 = vld [vmem:[%s11089_s9 + $0x60] sm:$0xff]  ;;  %v10538_v50 = vpack.c.bf16 %v275_v46, %v274_v43  ;;  %v278_v52 = vld [vmem:[%s11089_s9 + $0x70] sm:$0xff]  ;;  %v279_v54 = vld [vmem:[%s11089_s9 + $0x78] sm:$0xff]  ;;  %s9027_s23 = sld [smem:[%s12187_s0 + %s11039_s20]]   ;;  %s11042_s2 = smov 16  }
   0xe   :  { %v10541_v51 = vpack.c.bf16 %v277_v48, %v276_v47  ;;  %v280_v55 = vld [vmem:[%s11089_s9 + $0x80] sm:$0xff]  ;;  %v281_v56 = vld [vmem:[%s11089_s9 + $0x88] sm:$0xff]  ;;  %v10544_v57 = vpack.c.bf16 %v279_v54, %v278_v52  ;;  %v282_v59 = vld [vmem:[%s11089_s9 + $0x90] sm:$0xff]  ;;  %s9025_s27 = sld [smem:[%s12187_s0 + %s11040_s24]]   ;;  %s11043_s6 = smov 18  }
   0xf   :  { %10527 = vmatpush3.bf16.msra.mxu0 %v10526_v21  ;;  %v10547_v58 = vpack.c.bf16 %v281_v56, %v280_v55  ;;  %v283_v60 = vld [vmem:[%s11089_s9 + $0x98] sm:$0xff]  ;;  %v284_v61 = vld [vmem:[%s11089_s9 + $0xa0] sm:$0xff]  ;;  %v285_v62 = vld [vmem:[%s11089_s9 + $0xa8] sm:$0xff]  ;;  %s9026_s1 = sld [smem:[%s12187_s0 + %s11041_s28]]   ;;  %s11044_s10 = smov 15  }
  0x10   :  { %10534 = vmatprep.subr.bf16.mxu0 %v11025_v17  ;;  %10533 = vmatpush3.bf16.msra.mxu1 %v10532_v26  ;;  %v10550_v63 = vpack.c.bf16 %v283_v60, %v282_v59  ;;  %v287_v2 = vld [vmem:[%s11089_s9 + $0xb8] sm:$0xff]  ;;  %v288_v3 = vld [vmem:[%s11089_s9 + $0xc0] sm:$0xff]  ;;  %v305_v16 = vld [vmem:[%s11155_s21 + $0x8] sm:$0xff]  ;;  %s9029_s5 = sld [smem:[%s12187_s0 + %s11042_s2]]   ;;  %s11045_s14 = smov 17  }
  0x11   :  { %10540 = vmatprep.subr.bf16.mxu1 %v11025_v17  ;;  %v295_v14 = vld [vmem:[%s11089_s9 + $0xf8] sm:$0xff]  ;;  %v304_v15 = vld [vmem:[%s11155_s21] sm:$0xff]  ;;  %v306_v20 = vld [vmem:[%s11155_s21 + $0x10] sm:$0xff]  ;;  %s9028_s13 = sld [smem:[%s12187_s0 + %s11044_s10]]   ;;  %s11046_s18 = smov 20  }
  0x12   :  { %v10571_v19 = vpack.c.bf16 %v305_v16, %v304_v15  ;;  %v307_v21 = vld [vmem:[%s11155_s21 + $0x18] sm:$0xff]  ;;  %v308_v22 = vld [vmem:[%s11155_s21 + $0x20] sm:$0xff]  ;;  %v309_v23 = vld [vmem:[%s11155_s21 + $0x28] sm:$0xff]  ;;  %s9030_s17 = sld [smem:[%s12187_s0 + %s11045_s14]]   ;;  %s11047_s22 = smov 19  }
  0x13   :  { %v10574_v24 = vpack.c.bf16 %v307_v21, %v306_v20  ;;  %v10577_v25 = vpack.c.bf16 %v309_v23, %v308_v22  ;;  %v310_v26 = vld [vmem:[%s11155_s21 + $0x30] sm:$0xff]  ;;  %v323_v47 = vld [vmem:[%s11155_s21 + $0x98] sm:$0xff]  ;;  %v324_v48 = vld [vmem:[%s11155_s21 + $0xa0] sm:$0xff]  ;;  %s11048_s26 = smov 21   ;;  %s11049_s30 = smov 24  }
  0x14   :  { %v322_v46 = vld [vmem:[%s11155_s21 + $0x90] sm:$0xff]  ;;  %v327_v54 = vld [vmem:[%s11155_s21 + $0xb8] sm:$0xff]  ;;  %v328_v55 = vld [vmem:[%s11155_s21 + $0xc0] sm:$0xff]  ;;  %s11050_s4 = smov 22   ;;  %s11051_s8 = smov 23  }
  0x15   :  { %v326_v52 = vld [vmem:[%s11155_s21 + $0xb0] sm:$0xff]  ;;  %v329_v56 = vld [vmem:[%s11155_s21 + $0xc8] sm:$0xff]  ;;  %v331_v60 = vld [vmem:[%s11155_s21 + $0xd8] sm:$0xff]  ;;  %s11052_s12 = smov 26   ;;  %s11053_s16 = smov 28  }
  0x16   :  { %v330_v59 = vld [vmem:[%s11155_s21 + $0xd0] sm:$0xff]  ;;  %v352_v15 = vld [vmem:[%s11240_s25 + $0x40] sm:$0xff]  ;;  %v353_v16 = vld [vmem:[%s11240_s25 + $0x48] sm:$0xff]  ;;  %s11054_s20 = smov 27   ;;  %s11055_s24 = smov 25  }
  0x17   :  { %v354_v20 = vld [vmem:[%s11240_s25 + $0x50] sm:$0xff]  ;;  %v355_v21 = vld [vmem:[%s11240_s25 + $0x58] sm:$0xff]  ;;  %v356_v22 = vld [vmem:[%s11240_s25 + $0x60] sm:$0xff]  ;;  %s11056_s28 = smov 29   ;;  %s11057_s2 = smov 30  }
  0x18   :  { %v357_v23 = vld [vmem:[%s11240_s25 + $0x68] sm:$0xff]  ;;  %s11059_s10 = smov 34   ;;  %s11060_s14 = smov 32  }
  0x96   :  { %v223_v4 = vpop.xlane.xlu0 %222 }
  0x97   :  { %v228_v5 = vmul.f32 0.03125, %v223_v4  ;;  %v289_v4 = vld [vmem:[%s11089_s9 + $0xc8] sm:$0xff] }
  0x99   :  { %v230_v6 = vsub.f32 %v190_v0, %v228_v5  ;;  %v10553_v0 = vpack.c.bf16 %v285_v62, %v284_v61  ;;  %v332_v61 = vld [vmem:[%s11155_s21 + $0xe0] sm:$0xff]  ;;  %v333_v62 = vld [vmem:[%s11155_s21 + $0xe8] sm:$0xff] }
  0x9a   :  { %v226_v7 = vpop.xlane.xlu0 %225 }
  0x9b   :  { %v229_v8 = vmul.f32 0.03125, %v226_v7  ;;  %v232_v9 = vmul.f32 %v230_v6, %v230_v6  ;;  %v290_v7 = vld [vmem:[%s11089_s9 + $0xd0] sm:$0xff] }
  0x9d   :  { %v231_v10 = vsub.f32 %v191_v1, %v229_v8  ;;  %v234_v11 = vsel %vm220_vm0, %v232_v9, 0.0  ;;  %v286_v1 = vld [vmem:[%s11089_s9 + $0xb0] sm:$0xff]  ;;  %v291_v8 = vld [vmem:[%s11089_s9 + $0xd8] sm:$0xff]  ;;  %v292_v9 = vld [vmem:[%s11089_s9 + $0xe0] sm:$0xff] }
  0x9e   :  { %235 = vadd.xlane.f32.xlu1 %v234_v11  ;;  %v10556_v5 = vpack.c.bf16 %v287_v2, %v286_v1  ;;  %v10562_v11 = vpack.c.bf16 %v291_v8, %v290_v7  ;;  %v334_v1 = vld [vmem:[%s11155_s21 + $0xf0] sm:$0xff]  ;;  %v335_v2 = vld [vmem:[%s11155_s21 + $0xf8] sm:$0xff] }
  0x9f   :  { %v233_v12 = vmul.f32 %v231_v10, %v231_v10  ;;  %v346_v7 = vld [vmem:[%s11240_s25 + $0x10] sm:$0xff]  ;;  %v347_v8 = vld [vmem:[%s11240_s25 + $0x18] sm:$0xff] }
  0xa1   :  { %v237_v13 = vsel %vm220_vm0, %v233_v12, 0.0 }
  0xa2   :  { %238 = vadd.xlane.f32.xlu1 %v237_v13  ;;  %v294_v13 = vld [vmem:[%s11089_s9 + $0xf0] sm:$0xff] }
  0xa3   :  { %v10568_v18 = vpack.c.bf16 %v295_v14, %v294_v13  ;;  %v350_v13 = vld [vmem:[%s11240_s25 + $0x30] sm:$0xff]  ;;  %v351_v14 = vld [vmem:[%s11240_s25 + $0x38] sm:$0xff] }
 0x12b   :  { %v236_v28 = vpop.xlane.xlu1 %235 }
 0x12c   :  { %v240_v29 = vmul.f32 0.03125, %v236_v28  ;;  %v311_v28 = vld [vmem:[%s11155_s21 + $0x38] sm:$0xff] }
 0x12e   :  { %v242_v30 = vadd.f32 1e-05, %v240_v29  ;;  %v312_v29 = vld [vmem:[%s11155_s21 + $0x40] sm:$0xff] }
 0x12f   :  { %v239_v31 = vpop.xlane.xlu1 %238 }
 0x130   :  { %10932 = vrsqrt.f32 %v242_v30  ;;  %v241_v32 = vmul.f32 0.03125, %v239_v31  ;;  %v313_v30 = vld [vmem:[%s11155_s21 + $0x48] sm:$0xff]  ;;  %v10580_v31 = vpack.c.bf16 %v311_v28, %v310_v26  ;;  %v358_v26 = vld [vmem:[%s11240_s25 + $0x70] sm:$0xff]  ;;  %v359_v28 = vld [vmem:[%s11240_s25 + $0x78] sm:$0xff] }
 0x132   :  { %v243_v33 = vadd.f32 1e-05, %v241_v32  ;;  %v10583_v32 = vpack.c.bf16 %v313_v30, %v312_v29  ;;  %v360_v29 = vld [vmem:[%s11240_s25 + $0x80] sm:$0xff]  ;;  %v361_v30 = vld [vmem:[%s11240_s25 + $0x88] sm:$0xff] }
 0x134   :  { %10934 = vrsqrt.f32 %v243_v33  ;;  %v314_v33 = vld [vmem:[%s11155_s21 + $0x50] sm:$0xff] }
 0x13a   :  { %v10933_v34 = vpop.eup %10932 }
 0x13b   :  { %v246_v36 = vmul.f32 %v10933_v34, %v230_v6  ;;  %v10559_v6 = vpack.c.bf16 %v289_v4, %v288_v3  ;;  %v315_v34 = vld [vmem:[%s11155_s21 + $0x58] sm:$0xff]  ;;  %v344_v3 = vld [vmem:[%s11240_s25] sm:$0xff]  ;;  %v345_v4 = vld [vmem:[%s11240_s25 + $0x8] sm:$0xff] }
 0x13c   :  { %v10586_v37 = vpack.c.bf16 %v315_v34, %v314_v33  ;;  %v362_v33 = vld [vmem:[%s11240_s25 + $0x90] sm:$0xff]  ;;  %v363_v34 = vld [vmem:[%s11240_s25 + $0x98] sm:$0xff] }
 0x13d   :  { %v254_v40 = vmul.f32 %v9060_v35, %v246_v36  ;;  %v317_v36 = vld [vmem:[%s11155_s21 + $0x68] sm:$0xff] }
 0x13e   :  { %v10935_v41 = vpop.eup %10934 }
 0x13f   :  { %v11118_v44 = vadd.f32 %v9061_v39, %v254_v40  ;;  %v247_v45 = vmul.f32 %v10935_v41, %v231_v10  ;;  %v293_v10 = vld [vmem:[%s11089_s9 + $0xe8] sm:$0xff]  ;;  %v319_v40 = vld [vmem:[%s11155_s21 + $0x78] sm:$0xff]  ;;  %v320_v41 = vld [vmem:[%s11155_s21 + $0x80] sm:$0xff]  ;;  %s11598_s9 = sld [smem:[%s12187_s0 + %s11043_s6]]   ;;  %s11058_s6 = smov 31  }
 0x140   :  { %v10565_v12 = vpack.c.bf16 %v293_v10, %v292_v9  ;;  %v348_v9 = vld [vmem:[%s11240_s25 + $0x20] sm:$0xff]  ;;  %v349_v10 = vld [vmem:[%s11240_s25 + $0x28] sm:$0xff] }
 0x141   :  { %v255_v49 = vmul.f32 %v9060_v35, %v247_v45  ;;  %9660 = vmatmul.mubr.msk.f32.vlgmr.msra.gmra.mrb[0].mxu0 %vm220_vm0, %v11118_v44  ;;  %v316_v35 = vld [vmem:[%s11155_s21 + $0x60] sm:$0xff] }
 0x142   :  { %10536 = vmatpush3.bf16.msra.mxu0 %v10535_v42  ;;  %9681 = vmatprep.mubr.msk.f32.mxu0 %vm11026_vm1, %v11027_v27  ;;  %v10589_v38 = vpack.c.bf16 %v317_v36, %v316_v35  ;;  %v321_v42 = vld [vmem:[%s11155_s21 + $0x88] sm:$0xff]  ;;  %v364_v35 = vld [vmem:[%s11240_s25 + $0xa0] sm:$0xff] }
 0x143   :  { %v11128_v53 = vadd.f32 %v9061_v39, %v255_v49  ;;  %10537 = vmatprep.subr.bf16.mxu0 %v11025_v17  ;;  %v318_v39 = vld [vmem:[%s11155_s21 + $0x70] sm:$0xff]  ;;  %v10595_v45 = vpack.c.bf16 %v321_v42, %v320_v41  ;;  %v325_v49 = vld [vmem:[%s11155_s21 + $0xa8] sm:$0xff]  ;;  %v368_v41 = vld [vmem:[%s11240_s25 + $0xc0] sm:$0xff]  ;;  %s9033_s21 = sld [smem:[%s12187_s0 + %s11046_s18]]   ;;  %s11061_s18 = smov 33  }
 0x144   :  { %v10592_v43 = vpack.c.bf16 %v319_v40, %v318_v39  ;;  %v365_v36 = vld [vmem:[%s11240_s25 + $0xa8] sm:$0xff]  ;;  %v366_v39 = vld [vmem:[%s11240_s25 + $0xb0] sm:$0xff]  ;;  %v367_v40 = vld [vmem:[%s11240_s25 + $0xb8] sm:$0xff] }
 0x145   :  { %9671 = vmatmul.mubr.msk.f32.vlgmr.msra.gmra.mrb[0].mxu1 %vm220_vm0, %v11128_v53  ;;  %v369_v42 = vld [vmem:[%s11240_s25 + $0xc8] sm:$0xff] }
 0x146   :  { %10539 = vmatpush3.bf16.msra.mxu0 %v10538_v50  ;;  %10542 = vmatpush3.bf16.msra.mxu1 %v10541_v51  ;;  %v10598_v50 = vpack.c.bf16 %v323_v47, %v322_v46  ;;  %v10601_v51 = vpack.c.bf16 %v325_v49, %v324_v48  ;;  %v370_v46 = vld [vmem:[%s11240_s25 + $0xd0] sm:$0xff]  ;;  %v371_v47 = vld [vmem:[%s11240_s25 + $0xd8] sm:$0xff]  ;;  %v372_v48 = vld [vmem:[%s11240_s25 + $0xe0] sm:$0xff] }
 0x147   :  { %10543 = vmatprep.subr.bf16.mxu1 %v11025_v17  ;;  %10546 = vmatprep.subr.bf16.mxu0 %v11025_v17  ;;  %v373_v49 = vld [vmem:[%s11240_s25 + $0xe8] sm:$0xff] }
 0x148   :  { %9692 = vmatprep.mubr.msk.f32.mxu1 %vm11026_vm1, %v11027_v27 }
 0x149   :  { %9682 = vmatmul.mubr.msk.f32.vlgmr.msra.gmra.mrb[2].mxu0 %vm220_vm0, %v11118_v44 }
 0x14a   :  { %10545 = vmatpush3.bf16.msra.mxu1 %v10544_v57  ;;  %10548 = vmatpush3.bf16.msra.mxu0 %v10547_v58  ;;  %v10604_v57 = vpack.c.bf16 %v327_v54, %v326_v52  ;;  %v10607_v58 = vpack.c.bf16 %v329_v56, %v328_v55  ;;  %v374_v52 = vld [vmem:[%s11240_s25 + $0xf0] sm:$0xff]  ;;  %v375_v54 = vld [vmem:[%s11240_s25 + $0xf8] sm:$0xff]  ;;  %s9032_s25 = sld [smem:[%s12187_s0 + %s11047_s22]]   ;;  %s11062_s22 = smov 36  }
 0x14b   :  { %10549 = vmatprep.subr.bf16.mxu0 %v11025_v17  ;;  %10552 = vmatprep.subr.bf16.mxu1 %v11025_v17  ;;  %v10664_v55 = vpack.c.bf16 %v375_v54, %v374_v52  ;;  %v9085_v52 = vld [vmem:[%s11362_s29 + $0x7] ss:$0 sm:$0xff] }
 0x14c   :  { %9703 = vmatprep.mubr.msk.f32.mxu0 %vm11026_vm1, %v11027_v27 }
 0x14d   :  { %9693 = vmatmul.mubr.msk.f32.vlgmr.msra.gmra.mrb[2].mxu1 %vm220_vm0, %v11128_v53 }
 0x14e   :  { %10551 = vmatpush3.bf16.msra.mxu0 %v10550_v63  ;;  %10554 = vmatpush3.bf16.msra.mxu1 %v10553_v0  ;;  %v10610_v63 = vpack.c.bf16 %v331_v60, %v330_v59  ;;  %v10613_v0 = vpack.c.bf16 %v333_v62, %v332_v61 }
 0x14f   :  { %10555 = vmatprep.subr.bf16.mxu1 %v11025_v17  ;;  %10558 = vmatprep.subr.bf16.mxu0 %v11025_v17 }
 0x150   :  { %9714 = vmatprep.mubr.msk.f32.mxu1 %vm11026_vm1, %v11027_v27 }
 0x151   :  { %9704 = vmatmul.mubr.msk.f32.vlgmr.msra.gmra.mrb[4].mxu0 %vm220_vm0, %v11118_v44 }
 0x152   :  { %10557 = vmatpush3.bf16.msra.mxu1 %v10556_v5  ;;  %10560 = vmatpush3.bf16.msra.mxu0 %v10559_v6  ;;  %v10616_v5 = vpack.c.bf16 %v335_v2, %v334_v1  ;;  %v10619_v6 = vpack.c.bf16 %v345_v4, %v344_v3 }
 0x153   :  { %10561 = vmatprep.subr.bf16.mxu0 %v11025_v17  ;;  %10564 = vmatprep.subr.bf16.mxu1 %v11025_v17 }
 0x154   :  { %9725 = vmatprep.mubr.msk.f32.mxu0 %vm11026_vm1, %v11027_v27 }
 0x155   :  { %9715 = vmatmul.mubr.msk.f32.vlgmr.msra.gmra.mrb[4].mxu1 %vm220_vm0, %v11128_v53 }
 0x156   :  { %10563 = vmatpush3.bf16.msra.mxu0 %v10562_v11  ;;  %10566 = vmatpush3.bf16.msra.mxu1 %v10565_v12  ;;  %v10622_v11 = vpack.c.bf16 %v347_v8, %v346_v7  ;;  %v10625_v12 = vpack.c.bf16 %v349_v10, %v348_v9  ;;  %v9078_v8 = vld [vmem:[%s11362_s29] ss:$0 sm:$0xff] }
 0x157   :  { %10567 = vmatprep.subr.bf16.mxu1 %v11025_v17  ;;  %10570 = vmatprep.subr.bf16.mxu0 %v11025_v17  ;;  %v9062_v10 = vld [vmem:[%s11369_s3] ss:$0 sm:$0xff] }
 0x158   :  { %9736 = vmatprep.mubr.msk.f32.mxu1 %vm11026_vm1, %v11027_v27 }
 0x159   :  { %9726 = vmatmul.mubr.msk.f32.vlgmr.msra.gmra.mrb[6].mxu0 %vm220_vm0, %v11118_v44 }
 0x15a   :  { %10569 = vmatpush3.bf16.msra.mxu1 %v10568_v18  ;;  %10572 = vmatpush3.bf16.msra.mxu0 %v10571_v19  ;;  %v10628_v18 = vpack.c.bf16 %v351_v14, %v350_v13  ;;  %v10631_v19 = vpack.c.bf16 %v353_v16, %v352_v15  ;;  %v9079_v13 = vld [vmem:[%s11362_s29 + $0x1] ss:$0 sm:$0xff] }
 0x15b   :  { %10573 = vmatprep.subr.bf16.mxu0 %v11025_v17  ;;  %10576 = vmatprep.subr.bf16.mxu1 %v11025_v17  ;;  %v9063_v16 = vld [vmem:[%s11369_s3 + $0x1] ss:$0 sm:$0xff] }
 0x15c   :  { %9747 = vmatprep.mubr.msk.f32.mxu0 %vm11026_vm1, %v11027_v27 }
 0x15d   :  { %9737 = vmatmul.mubr.msk.f32.vlgmr.msra.gmra.mrb[6].mxu1 %vm220_vm0, %v11128_v53 }
 0x15e   :  { %10575 = vmatpush3.bf16.msra.mxu0 %v10574_v24  ;;  %10578 = vmatpush3.bf16.msra.mxu1 %v10577_v25  ;;  %v10634_v24 = vpack.c.bf16 %v355_v21, %v354_v20  ;;  %v10637_v25 = vpack.c.bf16 %v357_v23, %v356_v22  ;;  %v9080_v20 = vld [vmem:[%s11362_s29 + $0x2] ss:$0 sm:$0xff] }
 0x15f   :  { %10579 = vmatprep.subr.bf16.mxu1 %v11025_v17  ;;  %10582 = vmatprep.subr.bf16.mxu0 %v11025_v17  ;;  %v9064_v23 = vld [vmem:[%s11369_s3 + $0x2] ss:$0 sm:$0xff] }
 0x160   :  { %9758 = vmatprep.mubr.msk.f32.mxu1 %vm11026_vm1, %v11027_v27 }
 0x161   :  { %9748 = vmatmul.mubr.msk.f32.vlgmr.msra.gmra.mrb[8].mxu0 %vm220_vm0, %v11118_v44 }
 0x162   :  { %10581 = vmatpush3.bf16.msra.mxu1 %v10580_v31  ;;  %10584 = vmatpush3.bf16.msra.mxu0 %v10583_v32  ;;  %v10640_v31 = vpack.c.bf16 %v359_v28, %v358_v26  ;;  %v10643_v32 = vpack.c.bf16 %v361_v30, %v360_v29  ;;  %v9081_v26 = vld [vmem:[%s11362_s29 + $0x3] ss:$0 sm:$0xff] }
 0x163   :  { %10585 = vmatprep.subr.bf16.mxu0 %v11025_v17  ;;  %10588 = vmatprep.subr.bf16.mxu1 %v11025_v17  ;;  %v9065_v30 = vld [vmem:[%s11369_s3 + $0x3] ss:$0 sm:$0xff] }
 0x164   :  { %9769 = vmatprep.mubr.msk.f32.mxu0 %vm11026_vm1, %v11027_v27 }
 0x165   :  { %9759 = vmatmul.mubr.msk.f32.vlgmr.msra.gmra.mrb[8].mxu1 %vm220_vm0, %v11128_v53 }
 0x166   :  { %10587 = vmatpush3.bf16.msra.mxu0 %v10586_v37  ;;  %10590 = vmatpush3.bf16.msra.mxu1 %v10589_v38  ;;  %v10646_v37 = vpack.c.bf16 %v363_v34, %v362_v33  ;;  %v10649_v38 = vpack.c.bf16 %v365_v36, %v364_v35  ;;  %v9082_v33 = vld [vmem:[%s11362_s29 + $0x4] ss:$0 sm:$0xff] }
 0x167   :  { %10591 = vmatprep.subr.bf16.mxu1 %v11025_v17  ;;  %10594 = vmatprep.subr.bf16.mxu0 %v11025_v17  ;;  %v9066_v36 = vld [vmem:[%s11369_s3 + $0x4] ss:$0 sm:$0xff] }
 0x168   :  { %9780 = vmatprep.mubr.msk.f32.mxu1 %vm11026_vm1, %v11027_v27 }
 0x169   :  { %9770 = vmatmul.mubr.msk.f32.vlgmr.msra.gmra.mrb[10].mxu0 %vm220_vm0, %v11118_v44 }
 0x16a   :  { %10593 = vmatpush3.bf16.msra.mxu1 %v10592_v43  ;;  %10596 = vmatpush3.bf16.msra.mxu0 %v10595_v45  ;;  %v10652_v43 = vpack.c.bf16 %v367_v40, %v366_v39  ;;  %v10655_v45 = vpack.c.bf16 %v369_v42, %v368_v41  ;;  %v9083_v39 = vld [vmem:[%s11362_s29 + $0x5] ss:$0 sm:$0xff] }
 0x16b   :  { %10597 = vmatprep.subr.bf16.mxu0 %v11025_v17  ;;  %10600 = vmatprep.subr.bf16.mxu1 %v11025_v17  ;;  %v9067_v42 = vld [vmem:[%s11369_s3 + $0x5] ss:$0 sm:$0xff] }
 0x16c   :  { %9791 = vmatprep.mubr.msk.f32.mxu0 %vm11026_vm1, %v11027_v27 }
 0x16d   :  { %9781 = vmatmul.mubr.msk.f32.vlgmr.msra.gmra.mrb[10].mxu1 %vm220_vm0, %v11128_v53 }
 0x16e   :  { %10599 = vmatpush3.bf16.msra.mxu0 %v10598_v50  ;;  %10602 = vmatpush3.bf16.msra.mxu1 %v10601_v51  ;;  %v10658_v50 = vpack.c.bf16 %v371_v47, %v370_v46  ;;  %v10661_v51 = vpack.c.bf16 %v373_v49, %v372_v48  ;;  %v9084_v46 = vld [vmem:[%s11362_s29 + $0x6] ss:$0 sm:$0xff]  ;;  %s9034_s29 = sld [smem:[%s12187_s0 + %s11048_s26]]   ;;  %s11063_s26 = smov 38  }
 0x16f   :  { %10603 = vmatprep.subr.bf16.mxu1 %v11025_v17  ;;  %10606 = vmatprep.subr.bf16.mxu0 %v11025_v17  ;;  %v9068_v49 = vld [vmem:[%s11369_s3 + $0x6] ss:$0 sm:$0xff] }
 0x170   :  { %9802 = vmatprep.mubr.msk.f32.mxu1 %vm11026_vm1, %v11027_v27 }
 0x171   :  { %9792 = vmatmul.mubr.msk.f32.vlgmr.msra.gmra.mrb[12].mxu0 %vm220_vm0, %v11118_v44 }
 0x172   :  { %10605 = vmatpush3.bf16.msra.mxu1 %v10604_v57  ;;  %10608 = vmatpush3.bf16.msra.mxu0 %v10607_v58 }
 0x173   :  { %10609 = vmatprep.subr.bf16.mxu0 %v11025_v17  ;;  %10612 = vmatprep.subr.bf16.mxu1 %v11025_v17 }
 0x174   :  { %9813 = vmatprep.mubr.msk.f32.mxu0 %vm11026_vm1, %v11027_v27 }
 0x175   :  { %9803 = vmatmul.mubr.msk.f32.vlgmr.msra.gmra.mrb[12].mxu1 %vm220_vm0, %v11128_v53 }
 0x176   :  { %10611 = vmatpush3.bf16.msra.mxu0 %v10610_v63  ;;  %10614 = vmatpush3.bf16.msra.mxu1 %v10613_v0 }
 0x177   :  { %10615 = vmatprep.subr.bf16.mxu1 %v11025_v17  ;;  %10618 = vmatprep.subr.bf16.mxu0 %v11025_v17 }
 0x178   :  { %9824 = vmatprep.mubr.msk.f32.mxu1 %vm11026_vm1, %v11027_v27 }
 0x179   :  { %9814 = vmatmul.mubr.msk.f32.vlgmr.msra.gmra.mrb[14].mxu0 %vm220_vm0, %v11118_v44 }
 0x17a   :  { %10617 = vmatpush3.bf16.msra.mxu1 %v10616_v5  ;;  %10620 = vmatpush3.bf16.msra.mxu0 %v10619_v6 }
 0x17b   :  { %10621 = vmatprep.subr.bf16.mxu0 %v11025_v17  ;;  %10624 = vmatprep.subr.bf16.mxu1 %v11025_v17 }
 0x17c   :  { %9835 = vmatprep.mubr.msk.f32.mxu0 %vm11026_vm1, %v11027_v27 }
 0x17d   :  { %9825 = vmatmul.mubr.msk.f32.vlgmr.msra.gmra.mrb[14].mxu1 %vm220_vm0, %v11128_v53 }
 0x17e   :  { %10623 = vmatpush3.bf16.msra.mxu0 %v10622_v11  ;;  %10626 = vmatpush3.bf16.msra.mxu1 %v10625_v12 }
 0x17f   :  { %10627 = vmatprep.subr.bf16.mxu1 %v11025_v17  ;;  %10630 = vmatprep.subr.bf16.mxu0 %v11025_v17 }
 0x180   :  { %9846 = vmatprep.mubr.msk.f32.mxu1 %vm11026_vm1, %v11027_v27 }
 0x181   :  { %9836 = vmatmul.mubr.msk.f32.vlgmr.msra.gmra.mrb[16].mxu0 %vm220_vm0, %v11118_v44 }
 0x182   :  { %10629 = vmatpush3.bf16.msra.mxu1 %v10628_v18  ;;  %10632 = vmatpush3.bf16.msra.mxu0 %v10631_v19 }
 0x183   :  { %10633 = vmatprep.subr.bf16.mxu0 %v11025_v17  ;;  %10636 = vmatprep.subr.bf16.mxu1 %v11025_v17 }
 0x184   :  { %9857 = vmatprep.mubr.msk.f32.mxu0 %vm11026_vm1, %v11027_v27 }
 0x185   :  { %9847 = vmatmul.mubr.msk.f32.vlgmr.msra.gmra.mrb[16].mxu1 %vm220_vm0, %v11128_v53 }
 0x186   :  { %10635 = vmatpush3.bf16.msra.mxu0 %v10634_v24  ;;  %10638 = vmatpush3.bf16.msra.mxu1 %v10637_v25 }
 0x187   :  { %10639 = vmatprep.subr.bf16.mxu1 %v11025_v17  ;;  %10642 = vmatprep.subr.bf16.mxu0 %v11025_v17 }
 0x188   :  { %9868 = vmatprep.mubr.msk.f32.mxu1 %vm11026_vm1, %v11027_v27 }
 0x189   :  { %9858 = vmatmul.mubr.msk.f32.vlgmr.msra.gmra.mrb[18].mxu0 %vm220_vm0, %v11118_v44 }
 0x18a   :  { %10641 = vmatpush3.bf16.msra.mxu1 %v10640_v31  ;;  %10644 = vmatpush3.bf16.msra.mxu0 %v10643_v32 }
 0x18b   :  { %10645 = vmatprep.subr.bf16.mxu0 %v11025_v17  ;;  %10648 = vmatprep.subr.bf16.mxu1 %v11025_v17 }
 0x18c   :  { %9879 = vmatprep.mubr.msk.f32.mxu0 %vm11026_vm1, %v11027_v27 }
 0x18d   :  { %9869 = vmatmul.mubr.msk.f32.vlgmr.msra.gmra.mrb[18].mxu1 %vm220_vm0, %v11128_v53 }
 0x18e   :  { %10647 = vmatpush3.bf16.msra.mxu0 %v10646_v37  ;;  %10650 = vmatpush3.bf16.msra.mxu1 %v10649_v38 }
 0x18f   :  { %10651 = vmatprep.subr.bf16.mxu1 %v11025_v17  ;;  %10654 = vmatprep.subr.bf16.mxu0 %v11025_v17 }
 0x190   :  { %9890 = vmatprep.mubr.msk.f32.mxu1 %vm11026_vm1, %v11027_v27 }
 0x191   :  { %9880 = vmatmul.mubr.msk.f32.vlgmr.msra.gmra.mrb[20].mxu0 %vm220_vm0, %v11118_v44 }
 0x192   :  { %10653 = vmatpush3.bf16.msra.mxu1 %v10652_v43  ;;  %10656 = vmatpush3.bf16.msra.mxu0 %v10655_v45 }
 0x193   :  { %10657 = vmatprep.subr.bf16.mxu0 %v11025_v17  ;;  %10660 = vmatprep.subr.bf16.mxu1 %v11025_v17 }
 0x194   :  { %9901 = vmatprep.mubr.msk.f32.mxu0 %vm11026_vm1, %v11027_v27 }
 0x195   :  { %9891 = vmatmul.mubr.msk.f32.vlgmr.msra.gmra.mrb[20].mxu1 %vm220_vm0, %v11128_v53 }
 0x196   :  { %10659 = vmatpush3.bf16.msra.mxu0 %v10658_v50  ;;  %10662 = vmatpush3.bf16.msra.mxu1 %v10661_v51 }
 0x197   :  { %10663 = vmatprep.subr.bf16.mxu1 %v11025_v17  ;;  %9912 = vmatprep.mubr.msk.f32.mxu1 %vm11026_vm1, %v11027_v27 }
 0x198   :  { %9925 = vmatprep.subr.mxu0 %v11027_v27 }
 0x199   :  { %9902 = vmatmul.mubr.msk.f32.vlgmr.msra.gmra.mrb[22].mxu0 %vm220_vm0, %v11118_v44 }
 0x19a   :  { %10665 = vmatpush3.bf16.msra.mxu1 %v10664_v55  ;;  %9927 = vmatprep.mubr.msk.f32.mxu0 %vm11026_vm1, %v11027_v27 }
 0x19b   :  { %9915 = vmatprep.subr.mxu1 %v11027_v27 }
 0x19d   :  { %9913 = vmatmul.mubr.msk.f32.vlgmr.msra.gmra.mrb[22].mxu1 %vm220_vm0, %v11128_v53 }
 0x19e   :  { %9917 = vmatprep.mubr.msk.f32.mxu1 %vm11026_vm1, %v11027_v27 }
 0x214   :  { %v535_v56 = vpop.f32.mrb[0].mxu0 }
 0x215   :  { %v9661_v57 = vpop.f32.mrb[1].mxu0  ;;  %v536_v14 = vadd.f32 %v9062_v10, %v535_v56  ;;  %v9069_v56 = vld [vmem:[%s11369_s3 + $0x7] ss:$0 sm:$0xff]  ;;  %s11639_s3 = sld [smem:[%s12187_s0 + %s11049_s30]]   ;;  %s11064_s30 = smov 35  }
 0x218   :  { %v608_v58 = vpop.f32.mrb[0].mxu1 }
 0x219   :  { %v9672_v59 = vpop.f32.mrb[1].mxu1  ;;  %v609_v21 = vadd.f32 %v9063_v16, %v608_v58  ;;  %v9099_v16 = vld [vmem:[%s11412_s7 + $0x5] ss:$0 sm:$0xff] }
 0x21a   :  { %v9094_v59 = vld [vmem:[%s11412_s7] ss:$0 sm:$0xff] }
 0x21c   :  { %v678_v60 = vpop.f32.mrb[2].mxu0 }
 0x21d   :  { %v9683_v61 = vpop.f32.mrb[3].mxu0  ;;  %v679_v28 = vadd.f32 %v9064_v23, %v678_v60 }
 0x220   :  { %v748_v62 = vpop.f32.mrb[2].mxu1 }
 0x221   :  { %v9694_v63 = vpop.f32.mrb[3].mxu1  ;;  %v749_v34 = vadd.f32 %v9065_v30, %v748_v62  ;;  %v11036_v30 = vmov 1966171168  }
 0x224   :  { %v818_v0 = vpop.f32.mrb[4].mxu0 }
 0x225   :  { %v9705_v1 = vpop.f32.mrb[5].mxu0  ;;  %v819_v40 = vadd.f32 %v9066_v36, %v818_v0  ;;  %v9095_v0 = vld [vmem:[%s11412_s7 + $0x1] ss:$0 sm:$0xff] }
 0x228   :  { %v11357_v2 = vpop.f32.mrb[4].mxu1 }
 0x229   :  { %v9716_v3 = vpop.f32.mrb[5].mxu1  ;;  %v889_v47 = vadd.f32 %v9067_v42, %v11357_v2 }
 0x22c   :  { %v11364_v4 = vpop.f32.mrb[6].mxu0 }
 0x22d   :  { %v9727_v5 = vpop.f32.mrb[7].mxu0  ;;  %v959_v54 = vadd.f32 %v9068_v49, %v11364_v4  ;;  %v9096_v4 = vld [vmem:[%s11412_s7 + $0x2] ss:$0 sm:$0xff] }
 0x230   :  { %v11371_v6 = vpop.f32.mrb[6].mxu1 }
 0x231   :  { %v9738_v7 = vpop.f32.mrb[7].mxu1  ;;  %v1029_v60 = vadd.f32 %v9069_v56, %v11371_v6 }
 0x234   :  { %v1146_v9 = vpop.f32.mrb[8].mxu0 }
 0x235   :  { %v1147_v11 = vadd.f32 %v9078_v8, %v1146_v9  ;;  %v9749_v12 = vpop.f32.mrb[9].mxu0  ;;  %v9097_v8 = vld [vmem:[%s11412_s7 + $0x3] ss:$0 sm:$0xff] }
 0x236   :  { %v9098_v12 = vld [vmem:[%s11412_s7 + $0x4] ss:$0 sm:$0xff] }
 0x237   :  { %9916 = vmatpush3.xpose.msk.msra.mxu1 %vm2258_vm2, %v1147_v11 }
 0x238   :  { %v1216_v15 = vpop.f32.mrb[8].mxu1  ;;  %9920 = vmatprep.subr.mxu1 %v11027_v27 }
 0x239   :  { %v1217_v18 = vadd.f32 %v9079_v13, %v1216_v15  ;;  %v9760_v19 = vpop.f32.mrb[9].mxu1 }
 0x23a   :  { %9918 = vmatmul.mubr.msk.f32.vlgmr.msra.gmra.mrb[24].mxu1 %vm2258_vm2, %v536_v14 }
 0x23b   :  { %9921 = vmatpush3.xpose.msk.msra.mxu1 %vm2258_vm2, %v1217_v18  ;;  %9922 = vmatprep.mubr.msk.f32.mxu1 %vm11026_vm1, %v11027_v27 }
 0x23c   :  { %v1286_v22 = vpop.f32.mrb[10].mxu0  ;;  %9930 = vmatprep.subr.mxu1 %v11027_v27 }
 0x23d   :  { %v1287_v24 = vadd.f32 %v9080_v20, %v1286_v22  ;;  %v9771_v25 = vpop.f32.mrb[11].mxu0 }
 0x23e   :  { %9923 = vmatmul.mubr.msk.f32.vlgmr.msra.gmra.mrb[26].mxu1 %vm2258_vm2, %v609_v21  ;;  %v9100_v21 = vld [vmem:[%s11412_s7 + $0x6] ss:$0 sm:$0xff]  ;;  %v9101_v25 = vld [vmem:[%s11412_s7 + $0x7] ss:$0 sm:$0xff]  ;;  %s9035_s7 = sld [smem:[%s12187_s0 + %s11050_s4]]   ;;  %s11065_s4 = smov 37  }
 0x23f   :  { %9926 = vmatpush3.xpose.msk.msra.mxu0 %vm2258_vm2, %v1287_v24  ;;  %9932 = vmatprep.mubr.msk.f32.mxu1 %vm11026_vm1, %v11027_v27 }
 0x240   :  { %v1356_v29 = vpop.f32.mrb[10].mxu1  ;;  %9935 = vmatprep.subr.mxu0 %v11027_v27 }
 0x241   :  { %v1357_v31 = vadd.f32 %v9081_v26, %v1356_v29  ;;  %v9782_v32 = vpop.f32.mrb[11].mxu1 }
 0x242   :  { %9928 = vmatmul.mubr.msk.f32.vlgmr.msra.gmra.mrb[24].mxu0 %vm2258_vm2, %v679_v28  ;;  %v199_v32 = vlaneseq }
 0x243   :  { %9931 = vmatpush3.xpose.msk.msra.mxu1 %vm2258_vm2, %v1357_v31  ;;  %9937 = vmatprep.mubr.msk.f32.mxu0 %vm11026_vm1, %v11027_v27  ;;  %v197_v31 = vunpack.c.l.s4 %v11036_v30 }
 0x244   :  { %v1426_v35 = vpop.f32.mrb[12].mxu0  ;;  %9940 = vmatprep.subr.mxu1 %v11027_v27  ;;  %v200_v36 = vshrl.u32 %v199_v32, 7 }
 0x245   :  { %v1427_v37 = vadd.f32 %v9082_v33, %v1426_v35  ;;  %v9793_v38 = vpop.f32.mrb[13].mxu0  ;;  %v192_v33 = vld [vmem:[%s9014_s11] sm:$0x3]  ;;  %v198_v35 = vunpack.c.0.s8 %v197_v31  ;;  %s9036_s11 = sld [smem:[%s12187_s0 + %s11051_s8]]   ;;  %s11066_s8 = smov 40  }
 0x246   :  { %9933 = vmatmul.mubr.msk.f32.vlgmr.msra.gmra.mrb[28].mxu1 %vm2258_vm2, %v749_v34  ;;  %v193_v34 = vsub.f32 1.0, %v192_v33 }
 0x247   :  { %9936 = vmatpush3.xpose.msk.msra.mxu0 %vm2258_vm2, %v1427_v37  ;;  %9942 = vmatprep.mubr.msk.f32.mxu1 %vm11026_vm1, %v11027_v27  ;;  %v201_v38 = vsub.s32 %v198_v35, %v200_v36 }
 0x248   :  { %v1496_v41 = vpop.f32.mrb[12].mxu1  ;;  %9945 = vmatprep.subr.mxu0 %v11027_v27  ;;  %v194_v37 = vmul.f32 -1e+09, %v193_v34 }
 0x249   :  { %v1497_v43 = vadd.f32 %v9083_v39, %v1496_v41  ;;  %v9804_v45 = vpop.f32.mrb[13].mxu1  ;;  %v2250_v41 = vsub.s32 0, %v200_v36 }
 0x24a   :  { %9938 = vmatmul.mubr.msk.f32.vlgmr.msra.gmra.mrb[26].mxu0 %vm2258_vm2, %v819_v40  ;;  %v202_v39 = vrot.slane %v194_v37, %v201_v38 }
 0x24b   :  { %9941 = vmatpush3.xpose.msk.msra.mxu1 %vm2258_vm2, %v1497_v43  ;;  %9947 = vmatprep.mubr.msk.f32.mxu0 %vm11026_vm1, %v11027_v27 }
 0x24c   :  { %v1566_v48 = vpop.f32.mrb[14].mxu0  ;;  %9950 = vmatprep.subr.mxu1 %v11027_v27  ;;  %v210_v40 = vrot.slane %v202_v39, %v201_v38  ;;  %v203_v42 = vcombine.high %v202_v39, %v202_v39 }
 0x24d   :  { %v1567_v50 = vadd.f32 %v9084_v46, %v1566_v48  ;;  %v9815_v51 = vpop.f32.mrb[15].mxu0 }
 0x24e   :  { %9943 = vmatmul.mubr.msk.f32.vlgmr.msra.gmra.mrb[30].mxu1 %vm2258_vm2, %v889_v47  ;;  %v11462_v43 = vrot.slane %v210_v40, %v2250_v41  ;;  %v217_v45 = vrot.slane %v203_v42, %v201_v38 }
 0x24f   :  { %9946 = vmatpush3.xpose.msk.msra.mxu0 %vm2258_vm2, %v1567_v50  ;;  %9952 = vmatprep.mubr.msk.f32.mxu1 %vm11026_vm1, %v11027_v27 }
 0x250   :  { %v1636_v55 = vpop.f32.mrb[14].mxu1  ;;  %9955 = vmatprep.subr.mxu0 %v11027_v27  ;;  %v11465_v49 = vrot.slane %v217_v45, %v2250_v41 }
 0x251   :  { %v1637_v57 = vadd.f32 %v9085_v52, %v1636_v55  ;;  %v9826_v58 = vpop.f32.mrb[15].mxu1 }
 0x252   :  { %9948 = vmatmul.mubr.msk.f32.vlgmr.msra.gmra.mrb[28].mxu0 %vm2258_vm2, %v959_v54 }
 0x253   :  { %9951 = vmatpush3.xpose.msk.msra.mxu1 %vm2258_vm2, %v1637_v57  ;;  %9957 = vmatprep.mubr.msk.f32.mxu0 %vm11026_vm1, %v11027_v27 }
 0x254   :  { %v1754_v61 = vpop.f32.mrb[16].mxu0  ;;  %9960 = vmatprep.subr.mxu1 %v11027_v27 }
 0x255   :  { %v1755_v62 = vadd.f32 %v9094_v59, %v1754_v61  ;;  %v9837_v63 = vpop.f32.mrb[17].mxu0 }
 0x256   :  { %9953 = vmatmul.mubr.msk.f32.vlgmr.msra.gmra.mrb[32].mxu1 %vm2258_vm2, %v1029_v60 }
 0x257   :  { %9956 = vmatpush3.msra.mxu0 %v1755_v62  ;;  %9962 = vmatprep.mubr.msk.f32.mxu1 %vm11026_vm1, %v11027_v27 }
 0x258   :  { %v1824_v1 = vpop.f32.mrb[16].mxu1  ;;  %9965 = vmatprep.subr.mxu0 %v11027_v27 }
 0x259   :  { %v1825_v2 = vadd.f32 %v9095_v0, %v1824_v1  ;;  %v9848_v3 = vpop.f32.mrb[17].mxu1 }
 0x25b   :  { %9961 = vmatpush3.msra.mxu1 %v1825_v2 }
 0x25c   :  { %v1894_v5 = vpop.f32.mrb[18].mxu0  ;;  %9970 = vmatprep.subr.mxu1 %v11027_v27 }
 0x25d   :  { %v11442_v6 = vadd.f32 %v9096_v4, %v1894_v5  ;;  %v9859_v7 = vpop.f32.mrb[19].mxu0 }
 0x260   :  { %v1964_v9 = vpop.f32.mrb[18].mxu1 }
 0x261   :  { %v11445_v10 = vadd.f32 %v9097_v8, %v1964_v9  ;;  %v9870_v11 = vpop.f32.mrb[19].mxu1 }
 0x264   :  { %v2034_v13 = vpop.f32.mrb[20].mxu0 }
 0x265   :  { %v11448_v14 = vadd.f32 %v9098_v12, %v2034_v13  ;;  %v9881_v15 = vpop.f32.mrb[21].mxu0 }
 0x268   :  { %v2104_v18 = vpop.f32.mrb[20].mxu1 }
 0x269   :  { %v11451_v19 = vadd.f32 %v9099_v16, %v2104_v18  ;;  %v9892_v20 = vpop.f32.mrb[21].mxu1 }
 0x26c   :  { %v2174_v22 = vpop.f32.mrb[22].mxu0 }
 0x26d   :  { %v11454_v23 = vadd.f32 %v9100_v21, %v2174_v22  ;;  %v9903_v24 = vpop.f32.mrb[23].mxu0 }
 0x270   :  { %v2244_v26 = vpop.f32.mrb[22].mxu1 }
 0x271   :  { %v11457_v28 = vadd.f32 %v9101_v25, %v2244_v26  ;;  %v9914_v29 = vpop.f32.mrb[23].mxu1 }
 0x30d   :  { %v2331_v46 = vpop.f32.mrb[24].mxu1 }
 0x30e   :  { %v2332_v47 = vadd.f32 %v2331_v46, %v11462_v43  ;;  %v9919_v48 = vpop.f32.mrb[25].mxu1 }
 0x310   :  { %v2867_v50 = vsel %vm2258_vm2, %v2332_v47, -inf }
 0x311   :  { %2868 = vmax.xlane.f32.xlu0 %v2867_v50  ;;  %v2407_v51 = vpop.f32.mrb[26].mxu1 }
 0x312   :  { %v2408_v52 = vadd.f32 %v2407_v51, %v11465_v49  ;;  %v9924_v54 = vpop.f32.mrb[27].mxu1 }
 0x314   :  { %v2870_v55 = vsel %vm2258_vm2, %v2408_v52, -inf }
 0x315   :  { %v2483_v56 = vpop.f32.mrb[24].mxu0  ;;  %2871 = vmax.xlane.f32.xlu1 %v2870_v55 }
 0x316   :  { %v2484_v57 = vadd.f32 %v2483_v56, %v11462_v43  ;;  %v9929_v58 = vpop.f32.mrb[25].mxu0 }
 0x318   :  { %v2873_v59 = vsel %vm2258_vm2, %v2484_v57, -inf }
 0x319   :  { %2874 = vmax.xlane.f32.xlu0 %v2873_v59  ;;  %v2559_v60 = vpop.f32.mrb[28].mxu1 }
 0x31a   :  { %v2560_v61 = vadd.f32 %v2559_v60, %v11465_v49  ;;  %v9934_v62 = vpop.f32.mrb[29].mxu1 }
 0x31c   :  { %v2876_v63 = vsel %vm2258_vm2, %v2560_v61, -inf }
 0x31d   :  { %v2635_v0 = vpop.f32.mrb[26].mxu0  ;;  %2877 = vmax.xlane.f32.xlu1 %v2876_v63 }
 0x31e   :  { %v2636_v1 = vadd.f32 %v2635_v0, %v11462_v43  ;;  %v9939_v2 = vpop.f32.mrb[27].mxu0 }
 0x320   :  { %v2879_v3 = vsel %vm2258_vm2, %v2636_v1, -inf }
 0x321   :  { %2880 = vmax.xlane.f32.xlu0 %v2879_v3  ;;  %v2711_v4 = vpop.f32.mrb[30].mxu1 }
 0x322   :  { %v2712_v5 = vadd.f32 %v2711_v4, %v11465_v49  ;;  %v9944_v7 = vpop.f32.mrb[31].mxu1 }
 0x324   :  { %v2882_v8 = vsel %vm2258_vm2, %v2712_v5, -inf }
 0x325   :  { %v2787_v9 = vpop.f32.mrb[28].mxu0  ;;  %2883 = vmax.xlane.f32.xlu1 %v2882_v8 }
 0x326   :  { %v2788_v11 = vadd.f32 %v2787_v9, %v11462_v43  ;;  %v9949_v12 = vpop.f32.mrb[29].mxu0 }
 0x328   :  { %v2885_v13 = vsel %vm2258_vm2, %v2788_v11, -inf }
 0x329   :  { %2886 = vmax.xlane.f32.xlu0 %v2885_v13  ;;  %v2863_v15 = vpop.f32.mrb[32].mxu1 }
 0x32a   :  { %v2864_v16 = vadd.f32 %v2863_v15, %v11465_v49  ;;  %v9954_v18 = vpop.f32.mrb[33].mxu1 }
 0x32c   :  { %v2888_v20 = vsel %vm2258_vm2, %v2864_v16, -inf }
 0x32d   :  { %2889 = vmax.xlane.f32.xlu1 %v2888_v20 }
 0x39e   :  { %v2869_v21 = vpop.xlane.xlu0 %2868 }
 0x39f   :  { %v2891_v22 = vsub.f32 %v2332_v47, %v2869_v21 }
 0x3a1   :  { %v2899_v24 = vmul.f32 1.442695, %v2891_v22 }
 0x3a2   :  { %v2872_v25 = vpop.xlane.xlu1 %2871 }
 0x3a3   :  { %10936 = vpow2.f32 %v2899_v24  ;;  %v2892_v26 = vsub.f32 %v2408_v52, %v2872_v25 }
 0x3a5   :  { %v2901_v29 = vmul.f32 1.442695, %v2892_v26 }
 0x3a6   :  { %v2875_v30 = vpop.xlane.xlu0 %2874 }
 0x3a7   :  { %10938 = vpow2.f32 %v2901_v29  ;;  %v2893_v31 = vsub.f32 %v2484_v57, %v2875_v30 }
 0x3a9   :  { %v2903_v32 = vmul.f32 1.442695, %v2893_v31  ;;  %v385_v31 = vld [vmem:[%s11529_s15 + $0x8] sm:$0xff] }
 0x3aa   :  { %v2878_v33 = vpop.xlane.xlu1 %2877 }
 0x3ab   :  { %10940 = vpow2.f32 %v2903_v32  ;;  %v2894_v34 = vsub.f32 %v2560_v61, %v2878_v33  ;;  %v386_v32 = vld [vmem:[%s11529_s15 + $0x10] sm:$0xff] }
 0x3ad   :  { %v10937_v35 = vpop.eup %10936  ;;  %v2905_v36 = vmul.f32 1.442695, %v2894_v34 }
 0x3ae   :  { %v2881_v37 = vpop.xlane.xlu0 %2880  ;;  %v2915_v38 = vsel %vm2258_vm2, %v10937_v35, 0.0 }
 0x3af   :  { %10942 = vpow2.f32 %v2905_v36  ;;  %v2895_v39 = vsub.f32 %v2636_v1, %v2881_v37  ;;  %2916 = vadd.xlane.f32.xlu0 %v2915_v38  ;;  %v388_v38 = vld [vmem:[%s11529_s15 + $0x20] sm:$0xff] }
 0x3b1   :  { %v10939_v40 = vpop.eup %10938  ;;  %v2907_v41 = vmul.f32 1.442695, %v2895_v39 }
 0x3b2   :  { %v2884_v42 = vpop.xlane.xlu1 %2883  ;;  %v2918_v45 = vsel %vm2258_vm2, %v10939_v40, 0.0 }
 0x3b3   :  { %10944 = vpow2.f32 %v2907_v41  ;;  %v2896_v46 = vsub.f32 %v2712_v5, %v2884_v42  ;;  %2919 = vadd.xlane.f32.xlu1 %v2918_v45  ;;  %v389_v41 = vld [vmem:[%s11529_s15 + $0x28] sm:$0xff] }
 0x3b5   :  { %v10941_v47 = vpop.eup %10940  ;;  %v2909_v48 = vmul.f32 1.442695, %v2896_v46  ;;  %v390_v46 = vld [vmem:[%s11529_s15 + $0x30] sm:$0xff] }
 0x3b6   :  { %v2887_v50 = vpop.xlane.xlu0 %2886  ;;  %v2921_v51 = vsel %vm2258_vm2, %v10941_v47, 0.0 }
 0x3b7   :  { %10946 = vpow2.f32 %v2909_v48  ;;  %v2897_v52 = vsub.f32 %v2788_v11, %v2887_v50  ;;  %2922 = vadd.xlane.f32.xlu0 %v2921_v51  ;;  %v391_v50 = vld [vmem:[%s11529_s15 + $0x38] sm:$0xff] }
 0x3b9   :  { %v10943_v54 = vpop.eup %10942  ;;  %v2911_v55 = vmul.f32 1.442695, %v2897_v52 }
 0x3ba   :  { %v2890_v56 = vpop.xlane.xlu1 %2889  ;;  %v2924_v57 = vsel %vm2258_vm2, %v10943_v54, 0.0 }
 0x3bb   :  { %10948 = vpow2.f32 %v2911_v55  ;;  %v2898_v58 = vsub.f32 %v2864_v16, %v2890_v56  ;;  %2925 = vadd.xlane.f32.xlu1 %v2924_v57 }
 0x3bd   :  { %v10945_v59 = vpop.eup %10944  ;;  %v2913_v60 = vmul.f32 1.442695, %v2898_v58 }
 0x3be   :  { %v2927_v61 = vsel %vm2258_vm2, %v10945_v59, 0.0 }
 0x3bf   :  { %10950 = vpow2.f32 %v2913_v60  ;;  %2928 = vadd.xlane.f32.xlu0 %v2927_v61 }
 0x3c1   :  { %v10947_v62 = vpop.eup %10946 }
 0x3c2   :  { %v2930_v63 = vsel %vm2258_vm2, %v10947_v62, 0.0 }
 0x3c3   :  { %2931 = vadd.xlane.f32.xlu1 %v2930_v63 }
 0x3c5   :  { %v10949_v0 = vpop.eup %10948 }
 0x3c6   :  { %v2933_v1 = vsel %vm2258_vm2, %v10949_v0, 0.0 }
 0x3c7   :  { %2934 = vadd.xlane.f32.xlu0 %v2933_v1 }
 0x3c9   :  { %v10951_v2 = vpop.eup %10950 }
 0x3ca   :  { %v2936_v3 = vsel %vm2258_vm2, %v10951_v2, 0.0 }
 0x3cb   :  { %2937 = vadd.xlane.f32.xlu1 %v2936_v3 }
 0x43c   :  { %v2917_v4 = vpop.xlane.xlu0 %2916 }
 0x43d   :  { %10952 = vrcp.f32 %v2917_v4 }
 0x440   :  { %v2920_v5 = vpop.xlane.xlu1 %2919 }
 0x441   :  { %10954 = vrcp.f32 %v2920_v5 }
 0x444   :  { %v2923_v7 = vpop.xlane.xlu0 %2922 }
 0x445   :  { %10956 = vrcp.f32 %v2923_v7 }
 0x447   :  { %v10953_v8 = vpop.eup %10952 }
 0x448   :  { %v2947_v9 = vmul.f32 %v10953_v8, %v10937_v35  ;;  %v2926_v11 = vpop.xlane.xlu1 %2925  ;;  %v387_v35 = vld [vmem:[%s11529_s15 + $0x18] sm:$0xff] }
 0x449   :  { %10958 = vrcp.f32 %v2926_v11 }
 0x44a   :  { %9958 = vmatmul.mubr.msk.f32.vlgmr.msra.gmra.mrb[30].mxu0 %vm2258_vm2, %v2947_v9 }
 0x44b   :  { %v10955_v12 = vpop.eup %10954  ;;  %9966 = vmatpush3.msra.mxu0 %v11442_v6  ;;  %9967 = vmatprep.mubr.msk.f32.mxu0 %vm11026_vm1, %v11027_v27 }
 0x44c   :  { %v2948_v13 = vmul.f32 %v10955_v12, %v10939_v40  ;;  %v2929_v15 = vpop.xlane.xlu0 %2928  ;;  %9975 = vmatprep.subr.mxu0 %v11027_v27  ;;  %v9142_v12 = vld [vmem:[%s9024_s19] ss:$0 sm:$0xff]  ;;  %s11786_s19 = sld [smem:[%s12187_s0 + %s11053_s16]]   ;;  %s11068_s16 = smov 41  }
 0x44d   :  { %10960 = vrcp.f32 %v2929_v15 }
 0x44e   :  { %9963 = vmatmul.mubr.msk.f32.vlgmr.msra.gmra.mrb[34].mxu1 %vm2258_vm2, %v2948_v13 }
 0x44f   :  { %v10957_v16 = vpop.eup %10956  ;;  %9971 = vmatpush3.msra.mxu1 %v11445_v10  ;;  %9972 = vmatprep.mubr.msk.f32.mxu1 %vm11026_vm1, %v11027_v27 }
 0x450   :  { %v2949_v18 = vmul.f32 %v10957_v16, %v10941_v47  ;;  %v2932_v20 = vpop.xlane.xlu1 %2931  ;;  %9980 = vmatprep.subr.mxu1 %v11027_v27 }
 0x451   :  { %10962 = vrcp.f32 %v2932_v20 }
 0x452   :  { %9968 = vmatmul.mubr.msk.f32.vlgmr.msra.gmra.mrb[32].mxu0 %vm2258_vm2, %v2949_v18 }
 0x453   :  { %v10959_v6 = vpop.eup %10958  ;;  %9976 = vmatpush3.msra.mxu0 %v11448_v14  ;;  %9977 = vmatprep.mubr.msk.f32.mxu0 %vm11026_vm1, %v11027_v27 }
 0x454   :  { %v2950_v21 = vmul.f32 %v10959_v6, %v10943_v54  ;;  %v2935_v22 = vpop.xlane.xlu0 %2934  ;;  %9985 = vmatprep.subr.mxu0 %v11027_v27 }
 0x455   :  { %10964 = vrcp.f32 %v2935_v22 }
 0x456   :  { %9973 = vmatmul.mubr.msk.f32.vlgmr.msra.gmra.mrb[36].mxu1 %vm2258_vm2, %v2950_v21 }
 0x457   :  { %v10961_v10 = vpop.eup %10960  ;;  %9981 = vmatpush3.msra.mxu1 %v11451_v19  ;;  %9982 = vmatprep.mubr.msk.f32.mxu1 %vm11026_vm1, %v11027_v27 }
 0x458   :  { %v2951_v24 = vmul.f32 %v10961_v10, %v10945_v59  ;;  %v2938_v25 = vpop.xlane.xlu1 %2937  ;;  %9990 = vmatprep.subr.mxu1 %v11027_v27 }
 0x459   :  { %10966 = vrcp.f32 %v2938_v25 }
 0x45a   :  { %9978 = vmatmul.mubr.msk.f32.vlgmr.msra.gmra.mrb[34].mxu0 %vm2258_vm2, %v2951_v24 }
 0x45b   :  { %v10963_v14 = vpop.eup %10962  ;;  %9986 = vmatpush3.msra.mxu0 %v11454_v23  ;;  %9987 = vmatprep.mubr.msk.f32.mxu0 %vm11026_vm1, %v11027_v27 }
 0x45c   :  { %v2952_v26 = vmul.f32 %v10963_v14, %v10947_v62  ;;  %9995 = vmatprep.subr.mxu0 %v11027_v27 }
 0x45e   :  { %9983 = vmatmul.mubr.msk.f32.vlgmr.msra.gmra.mrb[38].mxu1 %vm2258_vm2, %v2952_v26 }
 0x45f   :  { %v10965_v19 = vpop.eup %10964  ;;  %9991 = vmatpush3.msra.mxu1 %v11457_v28  ;;  %9992 = vmatprep.mubr.msk.f32.mxu1 %vm11026_vm1, %v11027_v27  ;;  %v384_v28 = vld [vmem:[%s11529_s15] sm:$0xff]  ;;  %s11701_s15 = sld [smem:[%s12187_s0 + %s11052_s12]]   ;;  %s11067_s12 = smov 39  }
 0x460   :  { %v2953_v29 = vmul.f32 %v10965_v19, %v10949_v0  ;;  %10000 = vmatprep.subr.mxu1 %v11027_v27 }
 0x462   :  { %9988 = vmatmul.mubr.msk.f32.vlgmr.msra.gmra.mrb[36].mxu0 %vm2258_vm2, %v2953_v29 }
 0x463   :  { %v10967_v23 = vpop.eup %10966  ;;  %9997 = vmatprep.mubr.msk.f32.mxu0 %vm11026_vm1, %v11027_v27  ;;  %9996 = vmatpush3.msra.mxu0 %v384_v28 }
 0x464   :  { %v2954_v30 = vmul.f32 %v10967_v23, %v10951_v2  ;;  %10005 = vmatprep.subr.mxu0 %v11027_v27 }
 0x466   :  { %9993 = vmatmul.mubr.msk.f32.vlgmr.msra.gmra.mrb[40].mxu1 %vm2258_vm2, %v2954_v30 }
 0x467   :  { %10002 = vmatprep.mubr.msk.f32.mxu1 %vm11026_vm1, %v11027_v27  ;;  %10001 = vmatpush3.msra.mxu1 %v385_v31 }
 0x468   :  { %10010 = vmatprep.subr.mxu1 %v11027_v27 }
 0x51d   :  { %v3024_v33 = vpop.f32.mrb[30].mxu0 }
 0x51e   :  { %v9959_v34 = vpop.f32.mrb[31].mxu0  ;;  %9998 = vmatmul.mubr.msk.f32.vlgmr.msra.gmra.mrb[38].mxu0 %vm2258_vm2, %v3024_v33 }
 0x51f   :  { %10006 = vmatpush3.msra.mxu0 %v386_v32  ;;  %10007 = vmatprep.mubr.msk.f32.mxu0 %vm11026_vm1, %v11027_v27  ;;  %v396_v34 = vld [vmem:[%s9027_s23 + $0x8] sm:$0xff] }
 0x520   :  { %10015 = vmatprep.subr.mxu0 %v11027_v27 }
 0x521   :  { %v3097_v36 = vpop.f32.mrb[34].mxu1 }
 0x522   :  { %v9964_v37 = vpop.f32.mrb[35].mxu1  ;;  %10003 = vmatmul.mubr.msk.f32.vlgmr.msra.gmra.mrb[42].mxu1 %vm2258_vm2, %v3097_v36  ;;  %v397_v36 = vld [vmem:[%s9027_s23 + $0x10] sm:$0xff] }
 0x523   :  { %10011 = vmatpush3.msra.mxu1 %v387_v35  ;;  %10012 = vmatprep.mubr.msk.f32.mxu1 %vm11026_vm1, %v11027_v27  ;;  %v398_v37 = vld [vmem:[%s9027_s23 + $0x18] sm:$0xff] }
 0x524   :  { %10020 = vmatprep.subr.mxu1 %v11027_v27 }
 0x525   :  { %v3170_v39 = vpop.f32.mrb[32].mxu0 }
 0x526   :  { %v9969_v40 = vpop.f32.mrb[33].mxu0  ;;  %10008 = vmatmul.mubr.msk.f32.vlgmr.msra.gmra.mrb[40].mxu0 %vm2258_vm2, %v3170_v39 }
 0x527   :  { %10016 = vmatpush3.msra.mxu0 %v388_v38  ;;  %10017 = vmatprep.mubr.msk.f32.mxu0 %vm11026_vm1, %v11027_v27  ;;  %v10670_v38 = vpack.c.bf16 %v398_v37, %v397_v36  ;;  %v9148_v36 = vld [vmem:[%s9030_s17] ss:$0 sm:$0xff]  ;;  %s9045_s17 = sld [smem:[%s12187_s0 + %s11060_s14]]  }
 0x528   :  { %10025 = vmatprep.subr.mxu0 %v11027_v27 }
 0x529   :  { %v3243_v42 = vpop.f32.mrb[36].mxu1 }
 0x52a   :  { %v9974_v45 = vpop.f32.mrb[37].mxu1  ;;  %10013 = vmatmul.mubr.msk.f32.vlgmr.msra.gmra.mrb[44].mxu1 %vm2258_vm2, %v3243_v42 }
 0x52b   :  { %10021 = vmatpush3.msra.mxu1 %v389_v41  ;;  %10022 = vmatprep.mubr.msk.f32.mxu1 %vm11026_vm1, %v11027_v27 }
 0x52c   :  { %10030 = vmatprep.subr.mxu1 %v11027_v27 }
 0x52d   :  { %v3316_v47 = vpop.f32.mrb[34].mxu0 }
 0x52e   :  { %v9979_v48 = vpop.f32.mrb[35].mxu0  ;;  %10018 = vmatmul.mubr.msk.f32.vlgmr.msra.gmra.mrb[42].mxu0 %vm2258_vm2, %v3316_v47 }
 0x52f   :  { %10026 = vmatpush3.msra.mxu0 %v390_v46  ;;  %10027 = vmatprep.mubr.msk.f32.mxu0 %vm11026_vm1, %v11027_v27  ;;  %v9143_v48 = vld [vmem:[%s9025_s27] ss:$0 sm:$0xff]  ;;  %s11915_s27 = sld [smem:[%s12187_s0 + %s11055_s24]]   ;;  %s11070_s24 = smov 42  }
 0x531   :  { %v3389_v51 = vpop.f32.mrb[38].mxu1 }
 0x532   :  { %v9984_v52 = vpop.f32.mrb[39].mxu1  ;;  %10023 = vmatmul.mubr.msk.f32.vlgmr.msra.gmra.mrb[46].mxu1 %vm2258_vm2, %v3389_v51  ;;  %v9144_v51 = vld [vmem:[%s9026_s1] ss:$0 sm:$0xff]  ;;  %s11962_s1 = sld [smem:[%s12187_s0 + %s11056_s28]]   ;;  %s11071_s28 = smov 43  }
 0x533   :  { %10031 = vmatpush3.msra.mxu1 %v391_v50  ;;  %10032 = vmatprep.mubr.msk.f32.mxu1 %vm11026_vm1, %v11027_v27 }
 0x535   :  { %v3462_v54 = vpop.f32.mrb[36].mxu0 }
 0x536   :  { %v9989_v55 = vpop.f32.mrb[37].mxu0  ;;  %10028 = vmatmul.mubr.msk.f32.vlgmr.msra.gmra.mrb[44].mxu0 %vm2258_vm2, %v3462_v54 }
 0x539   :  { %v3535_v56 = vpop.f32.mrb[40].mxu1 }
 0x53a   :  { %v9994_v57 = vpop.f32.mrb[41].mxu1  ;;  %10033 = vmatmul.mubr.msk.f32.vlgmr.msra.gmra.mrb[48].mxu1 %vm2258_vm2, %v3535_v56 }
 0x5f1   :  { %v3608_v58 = vpop.f32.mrb[38].mxu0 }
 0x5f2   :  { %v9999_v59 = vpop.f32.mrb[39].mxu0 }
 0x5f3   :  { %v400_v59 = vld [vmem:[%s9029_s5] sm:$0xff] }
 0x5f5   :  { %v3681_v60 = vpop.f32.mrb[42].mxu1 }
 0x5f6   :  { %v10004_v61 = vpop.f32.mrb[43].mxu1 }
 0x5f9   :  { %v3754_v62 = vpop.f32.mrb[40].mxu0 }
 0x5fa   :  { %v4123_v63 = vadd.f32 %v3754_v62, %v3608_v58  ;;  %v10009_v0 = vpop.f32.mrb[41].mxu0  ;;  %v402_v62 = vld [vmem:[%s9029_s5 + $0x10] sm:$0xff] }
 0x5fd   :  { %v3827_v1 = vpop.f32.mrb[44].mxu1 }
 0x5fe   :  { %v4124_v2 = vadd.f32 %v3827_v1, %v3681_v60  ;;  %v10014_v3 = vpop.f32.mrb[45].mxu1  ;;  %v401_v60 = vld [vmem:[%s9029_s5 + $0x8] sm:$0xff]  ;;  %v404_v1 = vld [vmem:[%s9029_s5 + $0x20] sm:$0xff] }
 0x5ff   :  { %v10674_v61 = vpack.c.bf16 %v401_v60, %v400_v59 }
 0x601   :  { %v3900_v4 = vpop.f32.mrb[42].mxu0  ;;  %10675 = vmatprep.subr.bf16.mxu1 %v10674_v61 }
 0x602   :  { %v4125_v5 = vadd.f32 %v4123_v63, %v3900_v4  ;;  %v10019_v7 = vpop.f32.mrb[43].mxu0  ;;  %10677 = vmatpush3.bf16.msra.mxu1 %v10674_v61  ;;  %v403_v63 = vld [vmem:[%s9029_s5 + $0x18] sm:$0xff]  ;;  %v406_v4 = vld [vmem:[%s9029_s5 + $0x30] sm:$0xff] }
 0x603   :  { %v10678_v0 = vpack.c.bf16 %v403_v63, %v402_v62 }
 0x605   :  { %v3973_v8 = vpop.f32.mrb[46].mxu1  ;;  %10679 = vmatprep.subr.bf16.mxu1 %v10678_v0 }
 0x606   :  { %v4126_v9 = vadd.f32 %v4124_v2, %v3973_v8  ;;  %v10024_v11 = vpop.f32.mrb[47].mxu1  ;;  %10681 = vmatpush3.bf16.msra.mxu1 %v10678_v0  ;;  %v405_v2 = vld [vmem:[%s9029_s5 + $0x28] sm:$0xff]  ;;  %v409_v8 = vld [vmem:[%s11598_s9] sm:$0xff] }
 0x607   :  { %v10682_v3 = vpack.c.bf16 %v405_v2, %v404_v1 }
 0x609   :  { %v4046_v13 = vpop.f32.mrb[44].mxu0  ;;  %10683 = vmatprep.subr.bf16.mxu1 %v10682_v3 }
 0x60a   :  { %v4127_v15 = vadd.f32 %v4125_v5, %v4046_v13  ;;  %v10029_v16 = vpop.f32.mrb[45].mxu0  ;;  %10685 = vmatpush3.bf16.msra.mxu1 %v10682_v3  ;;  %v407_v5 = vld [vmem:[%s9029_s5 + $0x38] sm:$0xff]  ;;  %s12069_s5 = sld [smem:[%s12187_s0 + %s11057_s2]]   ;;  %s11072_s2 = smov 45  }
 0x60b   :  { %v10686_v7 = vpack.c.bf16 %v407_v5, %v406_v4 }
 0x60c   :  { %v4135_v18 = vadd.f32 %v9142_v12, %v4127_v15 }
 0x60d   :  { %v4119_v20 = vpop.f32.mrb[48].mxu1  ;;  %10687 = vmatprep.subr.bf16.mxu1 %v10686_v7 }
 0x60e   :  { %v4128_v6 = vadd.f32 %v4126_v9, %v4119_v20  ;;  %v10034_v21 = vpop.f32.mrb[49].mxu1  ;;  %v4137_v22 = vadd.f32 %v4135_v18, %v11118_v44  ;;  %10689 = vmatpush3.bf16.msra.mxu1 %v10686_v7  ;;  %v410_v9 = vld [vmem:[%s11598_s9 + $0x8] sm:$0xff] }
 0x60f   :  { %10698 = vmatprep.subr.bf16.mxu1 %v11025_v17  ;;  %v10690_v11 = vpack.c.bf16 %v410_v9, %v409_v8 }
 0x610   :  { %v4136_v10 = vadd.f32 %v9142_v12, %v4128_v6  ;;  %v4139_v24 = vsel %vm220_vm0, %v4137_v22, 0.0  ;;  %v9145_v12 = vld [vmem:[%s9028_s13] ss:$0 sm:$0xff]  ;;  %s9047_s13 = sld [smem:[%s12187_s0 + %s11059_s10]]  }
 0x611   :  { %4140 = vadd.xlane.f32.xlu0 %v4139_v24 }
 0x612   :  { %v4138_v25 = vadd.f32 %v4136_v10, %v11128_v53  ;;  %v395_v53 = vld [vmem:[%s9027_s23] sm:$0xff]  ;;  %s11908_s23 = sld [smem:[%s12187_s0 + %s11054_s20]]   ;;  %s11069_s20 = smov 44  }
 0x613   :  { %v10666_v35 = vpack.c.bf16 %v396_v34, %v395_v53  ;;  %v411_v53 = vld [vmem:[%s11598_s9 + $0x10] sm:$0xff]  ;;  %v412_v34 = vld [vmem:[%s11598_s9 + $0x18] sm:$0xff]  ;;  %s9044_s9 = sld [smem:[%s12187_s0 + %s11058_s6]]   ;;  %s11073_s6 = smov 46  }
 0x614   :  { %v4142_v14 = vsel %vm220_vm0, %v4138_v25, 0.0 }
 0x615   :  { %4143 = vadd.xlane.f32.xlu1 %v4142_v14  ;;  %10667 = vmatprep.subr.bf16.mxu0 %v10666_v35 }
 0x616   :  { %10669 = vmatpush3.bf16.msra.mxu0 %v10666_v35  ;;  %v10694_v35 = vpack.c.bf16 %v412_v34, %v411_v53  ;;  %v4609_v53 = vld [vmem:[%s11639_s3 + $0x68] sm:$0xff]  ;;  %v9158_v34 = vld [vmem:[%s9036_s11] ss:$0 sm:$0xff]  ;;  %s9053_s11 = sld [smem:[%s12187_s0 + %s11066_s8]]  }
 0x617   :  { %10671 = vmatprep.subr.bf16.mxu0 %v10670_v38 }
 0x61a   :  { %10673 = vmatpush3.bf16.msra.mxu0 %v10670_v38 }
 0x61b   :  { %10691 = vmatprep.subr.bf16.mxu0 %v10690_v11 }
 0x69e   :  { %v4141_v26 = vpop.xlane.xlu0 %4140 }
 0x69f   :  { %v4145_v19 = vmul.f32 0.03125, %v4141_v26 }
 0x6a1   :  { %v4147_v29 = vsub.f32 %v4137_v22, %v4145_v19 }
 0x6a2   :  { %v4144_v23 = vpop.xlane.xlu1 %4143 }
 0x6a3   :  { %v4146_v30 = vmul.f32 0.03125, %v4144_v23  ;;  %v4149_v28 = vmul.f32 %v4147_v29, %v4147_v29 }
 0x6a5   :  { %v4148_v31 = vsub.f32 %v4138_v25, %v4146_v30  ;;  %v4151_v32 = vsel %vm220_vm0, %v4149_v28, 0.0 }
 0x6a6   :  { %4152 = vadd.xlane.f32.xlu0 %v4151_v32 }
 0x6a7   :  { %v4150_v44 = vmul.f32 %v4148_v31, %v4148_v31 }
 0x6a9   :  { %v4154_v33 = vsel %vm220_vm0, %v4150_v44, 0.0 }
 0x6aa   :  { %4155 = vadd.xlane.f32.xlu1 %v4154_v33 }
 0x733   :  { %v4153_v39 = vpop.xlane.xlu0 %4152 }
 0x734   :  { %v4157_v40 = vmul.f32 0.03125, %v4153_v39 }
 0x736   :  { %v4159_v41 = vadd.f32 1e-05, %v4157_v40 }
 0x737   :  { %v4156_v42 = vpop.xlane.xlu1 %4155 }
 0x738   :  { %10968 = vrsqrt.f32 %v4159_v41  ;;  %v4158_v45 = vmul.f32 0.03125, %v4156_v42  ;;  %v414_v41 = vld [vmem:[%s9033_s21] sm:$0xff]  ;;  %s9046_s21 = sld [smem:[%s12187_s0 + %s11061_s18]]  }
 0x739   :  { %v9151_v42 = vld [vmem:[%s9032_s25] ss:$0 sm:$0xff]  ;;  %s9049_s25 = sld [smem:[%s12187_s0 + %s11062_s22]]  }
 0x73a   :  { %v4160_v46 = vadd.f32 1e-05, %v4158_v45 }
 0x73c   :  { %10970 = vrsqrt.f32 %v4160_v46 }
 0x742   :  { %v10969_v47 = vpop.eup %10968 }
 0x743   :  { %v4163_v50 = vmul.f32 %v10969_v47, %v4147_v29 }
 0x745   :  { %v4171_v52 = vmul.f32 %v9143_v48, %v4163_v50 }
 0x746   :  { %v10971_v54 = vpop.eup %10970 }
 0x747   :  { %v4164_v55 = vmul.f32 %v10971_v54, %v4148_v31  ;;  %v11583_v56 = vadd.f32 %v9144_v51, %v4171_v52  ;;  %v9154_v52 = vld [vmem:[%s9034_s29] ss:$0 sm:$0xff]  ;;  %s12137_s29 = sld [smem:[%s12187_s0 + %s11063_s26]]  }
 0x749   :  { %v4172_v57 = vmul.f32 %v9143_v48, %v4164_v55  ;;  %10043 = vmatprep.mubr.msk.f32.mxu0 %vm220_vm0, %v11583_v56 }
 0x74b   :  { %v11587_v58 = vadd.f32 %v9144_v51, %v4172_v57 }
 0x74d   :  { %10044 = vmatmul.mubr.msk.f32.vlgmr.msra.gmra.mrb[46].mxu0 %vm220_vm0, %v11587_v58 }
 0x74e   :  { %10693 = vmatpush3.bf16.msra.mxu0 %v10690_v11 }
 0x74f   :  { %10695 = vmatprep.subr.bf16.mxu0 %v10694_v35 }
 0x752   :  { %10697 = vmatpush3.bf16.msra.mxu0 %v10694_v35 }
 0x753   :  { %10076 = vmatprep.subr.mxu0 %v414_v41 }
 0x820   :  { %v10045_v13 = vpop.f32.mrb[46].mxu0 }
 0x821   :  { %v4265_v15 = vadd.f32 %v10045_v13, %v9145_v12  ;;  %v4259_v16 = vpop.f32.mrb[47].mxu0  ;;  %v4601_v13 = vld [vmem:[%s11639_s3 + $0x28] sm:$0xff] }
 0x822   :  { %v4260_v18 = vadd.f32 %v9145_v12, %v4259_v16  ;;  %v4596_v16 = vld [vmem:[%s11639_s3] sm:$0xff] }
 0x823   :  { %v4269_v20 = vmul.f32 %v4265_v15, %v4265_v15 }
 0x824   :  { %v4268_v6 = vmul.f32 %v4260_v18, %v4260_v18 }
 0x825   :  { %v4271_v21 = vmul.f32 %v4269_v20, %v4265_v15 }
 0x826   :  { %v4270_v22 = vmul.f32 %v4268_v6, %v4260_v18  ;;  %v4602_v6 = vld [vmem:[%s11639_s3 + $0x30] sm:$0xff] }
 0x827   :  { %v4273_v10 = vmul.f32 0.044715, %v4271_v21  ;;  %v4603_v21 = vld [vmem:[%s11639_s3 + $0x38] sm:$0xff] }
 0x828   :  { %v4272_v24 = vmul.f32 0.044715, %v4270_v22  ;;  %v10708_v22 = vpack.c.bf16 %v4603_v21, %v4602_v6  ;;  %v4636_v6 = vld [vmem:[%s11701_s15] sm:$0xff]  ;;  %v4637_v21 = vld [vmem:[%s11701_s15 + $0x8] sm:$0xff] }
 0x829   :  { %v4275_v25 = vadd.f32 %v4273_v10, %v4265_v15  ;;  %v4598_v10 = vld [vmem:[%s11639_s3 + $0x10] sm:$0xff] }
 0x82a   :  { %v4274_v14 = vadd.f32 %v4272_v24, %v4260_v18  ;;  %v4599_v24 = vld [vmem:[%s11639_s3 + $0x18] sm:$0xff] }
 0x82b   :  { %v4277_v26 = vmul.f32 0.7978846, %v4275_v25  ;;  %v10702_v25 = vpack.c.bf16 %v4599_v24, %v4598_v10  ;;  %v10747_v10 = vpack.c.bf16 %v4637_v21, %v4636_v6  ;;  %v4642_v24 = vld [vmem:[%s11701_s15 + $0x30] sm:$0xff]  ;;  %v4688_v6 = vld [vmem:[%s11786_s19 + $0x60] sm:$0xff]  ;;  %v4689_v21 = vld [vmem:[%s11786_s19 + $0x68] sm:$0xff] }
 0x82c   :  { %v4276_v19 = vmul.f32 0.7978846, %v4274_v14 }
 0x82d   :  { %10972 = vtanh.f32 %v4277_v26 }
 0x82e   :  { %10974 = vtanh.f32 %v4276_v19 }
 0x837   :  { %v10973_v29 = vpop.eup %10972 }
 0x838   :  { %v10975_v23 = vpop.eup %10974  ;;  %v4281_v30 = vadd.f32 1.0, %v10973_v29 }
 0x839   :  { %v4280_v28 = vadd.f32 1.0, %v10975_v23 }
 0x83a   :  { %v4283_v31 = vmul.f32 0.5, %v4281_v30 }
 0x83b   :  { %v4282_v32 = vmul.f32 0.5, %v4280_v28 }
 0x83c   :  { %v4285_v33 = vmul.f32 %v4283_v31, %v4265_v15  ;;  %v9157_v31 = vld [vmem:[%s9035_s7] ss:$0 sm:$0xff]  ;;  %s9050_s7 = sld [smem:[%s12187_s0 + %s11065_s4]]  }
 0x83d   :  { %v4284_v44 = vmul.f32 %v4282_v32, %v4260_v18  ;;  %v4597_v18 = vld [vmem:[%s11639_s3 + $0x8] sm:$0xff] }
 0x83e   :  { %v10699_v20 = vpack.c.bf16 %v4597_v18, %v4596_v16  ;;  %v4640_v18 = vld [vmem:[%s11701_s15 + $0x20] sm:$0xff] }
 0x83f   :  { %10062 = vmatprep.mubr.msk.f32.mxu1 %vm4292_vm3, %v4284_v44 }
 0x840   :  { %10063 = vmatmul.mubr.msk.f32.vlgmr.msra.gmra.mrb[50].mxu1 %vm4292_vm3, %v4285_v33  ;;  %v4608_v33 = vld [vmem:[%s11639_s3 + $0x60] sm:$0xff] }
 0x841   :  { %10089 = vmatprep.mubr.msk.f32.mxu1 %vm11026_vm1, %v11027_v27  ;;  %10700 = vmatpush3.bf16.msra.mxu1 %v10699_v20  ;;  %v4641_v20 = vld [vmem:[%s11701_s15 + $0x28] sm:$0xff] }
 0x842   :  { %10701 = vmatprep.subr.bf16.mxu1 %v11025_v17 }
 0x845   :  { %10703 = vmatpush3.bf16.msra.mxu1 %v10702_v25  ;;  %v4643_v25 = vld [vmem:[%s11701_s15 + $0x38] sm:$0xff] }
 0x846   :  { %10710 = vmatprep.subr.bf16.mxu1 %v11025_v17 }
 0x913   :  { %v10064_v37 = vpop.f32.mrb[50].mxu1 }
 0x914   :  { %v4365_v38 = vpop.f32.mrb[51].mxu1  ;;  %v4371_v40 = vadd.f32 %v10064_v37, %v9148_v36  ;;  %v4605_v37 = vld [vmem:[%s11639_s3 + $0x48] sm:$0xff] }
 0x915   :  { %v4366_v39 = vadd.f32 %v9148_v36, %v4365_v38  ;;  %v4604_v36 = vld [vmem:[%s11639_s3 + $0x40] sm:$0xff] }
 0x917   :  { %10073 = vmatprep.mubr.msk.f32.mxu0 %vm220_vm0, %v4366_v39 }
 0x918   :  { %10074 = vmatmul.mubr.msk.f32.vlgmr.msra.gmra.mrb[48].mxu0 %vm220_vm0, %v4371_v40 }
 0x919   :  { %10077 = vmatpush3.msra.mxu0 %v414_v41 }
 0x91a   :  { %10704 = vmatprep.subr.bf16.mxu0 %v11025_v17 }
 0x9eb   :  { %v10075_v45 = vpop.f32.mrb[48].mxu0 }
 0x9ec   :  { %v4458_v46 = vadd.f32 %v10075_v45, %v9151_v42  ;;  %v4452_v47 = vpop.f32.mrb[49].mxu0  ;;  %v4610_v45 = vld [vmem:[%s11639_s3 + $0x70] sm:$0xff] }
 0x9ed   :  { %v4453_v48 = vadd.f32 %v9151_v42, %v4452_v47  ;;  %v10711_v42 = vpack.c.bf16 %v4605_v37, %v4604_v36 }
 0x9ee   :  { %v4462_v51 = vmax.f32 %v4458_v46, 0.0  ;;  %v4611_v46 = vld [vmem:[%s11639_s3 + $0x78] sm:$0xff] }
 0x9ef   :  { %v4461_v50 = vmax.f32 %v4453_v48, 0.0  ;;  %v4606_v48 = vld [vmem:[%s11639_s3 + $0x50] sm:$0xff] }
 0x9f1   :  { %10078 = vmatprep.mubr.msk.f32.mxu0 %vm2258_vm2, %v4461_v50  ;;  %v4607_v50 = vld [vmem:[%s11639_s3 + $0x58] sm:$0xff] }
 0x9f2   :  { %10079 = vmatmul.mubr.msk.f32.vlgmr.msra.gmra.mrb[50].mxu0 %vm2258_vm2, %v4462_v51  ;;  %v10720_v51 = vpack.c.bf16 %v4611_v46, %v4610_v45 }
 0x9f3   :  { %10100 = vmatprep.mubr.msk.f32.mxu0 %vm11026_vm1, %v11027_v27 }
 0xac5   :  { %v10080_v54 = vpop.f32.mrb[50].mxu0 }
 0xac6   :  { %v4547_v55 = vadd.f32 %v10080_v54, %v9154_v52  ;;  %v4541_v57 = vpop.f32.mrb[51].mxu0  ;;  %v4616_v54 = vld [vmem:[%s11639_s3 + $0xa0] sm:$0xff] }
 0xac7   :  { %v4542_v59 = vadd.f32 %v9154_v52, %v4541_v57  ;;  %v10714_v52 = vpack.c.bf16 %v4607_v50, %v4606_v48  ;;  %v4612_v57 = vld [vmem:[%s11639_s3 + $0x80] sm:$0xff]  ;;  %v4658_v48 = vld [vmem:[%s11701_s15 + $0xb0] sm:$0xff]  ;;  %v4659_v50 = vld [vmem:[%s11701_s15 + $0xb8] sm:$0xff] }
 0xac8   :  { %v4551_v60 = vadd.f32 %v4547_v55, %v4371_v40  ;;  %v10717_v40 = vpack.c.bf16 %v4609_v53, %v4608_v33  ;;  %v4617_v55 = vld [vmem:[%s11639_s3 + $0xa8] sm:$0xff]  ;;  %v4650_v33 = vld [vmem:[%s11701_s15 + $0x70] sm:$0xff]  ;;  %v4651_v53 = vld [vmem:[%s11701_s15 + $0x78] sm:$0xff] }
 0xac9   :  { %v4550_v61 = vadd.f32 %v4542_v59, %v4366_v39  ;;  %v4613_v59 = vld [vmem:[%s11639_s3 + $0x88] sm:$0xff]  ;;  %v10768_v36 = vpack.c.bf16 %v4651_v53, %v4650_v33 }
 0xaca   :  { %v4553_v62 = vadd.f32 %v4551_v60, %v11587_v58  ;;  %v10729_v60 = vpack.c.bf16 %v4617_v55, %v4616_v54  ;;  %v10780_v54 = vpack.c.bf16 %v4659_v50, %v4658_v48 }
 0xacb   :  { %v4552_v63 = vadd.f32 %v4550_v61, %v11583_v56  ;;  %v4600_v56 = vld [vmem:[%s11639_s3 + $0x20] sm:$0xff]  ;;  %v10723_v61 = vpack.c.bf16 %v4613_v59, %v4612_v57  ;;  %v4665_v59 = vld [vmem:[%s11701_s15 + $0xe8] sm:$0xff] }
 0xacc   :  { %v4557_v0 = vsel %vm220_vm0, %v4553_v62, 0.0  ;;  %v10705_v15 = vpack.c.bf16 %v4601_v13, %v4600_v56  ;;  %v4622_v56 = vld [vmem:[%s11639_s3 + $0xd0] sm:$0xff]  ;;  %v4623_v13 = vld [vmem:[%s11639_s3 + $0xd8] sm:$0xff]  ;;  %v4664_v57 = vld [vmem:[%s11701_s15 + $0xe0] sm:$0xff] }
 0xacd   :  { %4558 = vadd.xlane.f32.xlu1 %v4557_v0  ;;  %v4554_v1 = vsel %vm220_vm0, %v4552_v63, 0.0  ;;  %v4614_v0 = vld [vmem:[%s11639_s3 + $0x90] sm:$0xff]  ;;  %v10738_v16 = vpack.c.bf16 %v4623_v13, %v4622_v56  ;;  %v4683_v13 = vld [vmem:[%s11786_s19 + $0x38] sm:$0xff] }
 0xace   :  { %4555 = vadd.xlane.f32.xlu0 %v4554_v1  ;;  %10706 = vmatpush3.bf16.msra.mxu0 %v10705_v15  ;;  %v4615_v1 = vld [vmem:[%s11639_s3 + $0x98] sm:$0xff]  ;;  %v4682_v56 = vld [vmem:[%s11786_s19 + $0x30] sm:$0xff] }
 0xacf   :  { %10707 = vmatprep.subr.bf16.mxu0 %v11025_v17 }
 0xad2   :  { %10709 = vmatpush3.bf16.msra.mxu0 %v10708_v22  ;;  %v10753_v22 = vpack.c.bf16 %v4641_v20, %v4640_v18  ;;  %v10804_v18 = vpack.c.bf16 %v4683_v13, %v4682_v56  ;;  %v9175_v56 = vld [vmem:[%s11908_s23] ss:$0 sm:$0xff] }
 0xad3   :  { %10716 = vmatprep.subr.bf16.mxu0 %v11025_v17 }
 0xb5a   :  { %v4559_v2 = vpop.xlane.xlu1 %4558 }
 0xb5b   :  { %v4561_v3 = vmul.f32 0.03125, %v4559_v2  ;;  %v4556_v4 = vpop.xlane.xlu0 %4555 }
 0xb5c   :  { %v4560_v5 = vmul.f32 0.03125, %v4556_v4  ;;  %v4624_v4 = vld [vmem:[%s11639_s3 + $0xe0] sm:$0xff] }
 0xb5d   :  { %v4563_v7 = vsub.f32 %v4553_v62, %v4561_v3  ;;  %v4618_v62 = vld [vmem:[%s11639_s3 + $0xb0] sm:$0xff]  ;;  %v10726_v3 = vpack.c.bf16 %v4615_v1, %v4614_v0  ;;  %v4667_v1 = vld [vmem:[%s11701_s15 + $0xf8] sm:$0xff] }
 0xb5e   :  { %v4562_v8 = vsub.f32 %v4552_v63, %v4560_v5  ;;  %v4619_v63 = vld [vmem:[%s11639_s3 + $0xb8] sm:$0xff]  ;;  %v4625_v5 = vld [vmem:[%s11639_s3 + $0xe8] sm:$0xff]  ;;  %v4666_v0 = vld [vmem:[%s11701_s15 + $0xf0] sm:$0xff] }
 0xb5f   :  { %v4565_v9 = vmul.f32 %v4563_v7, %v4563_v7  ;;  %v10732_v2 = vpack.c.bf16 %v4619_v63, %v4618_v62  ;;  %v10789_v62 = vpack.c.bf16 %v4665_v59, %v4664_v57 }
 0xb60   :  { %v4564_v11 = vmul.f32 %v4562_v8, %v4562_v8 }
 0xb61   :  { %v4569_v12 = vsel %vm220_vm0, %v4565_v9, 0.0  ;;  %v10741_v9 = vpack.c.bf16 %v4625_v5, %v4624_v4  ;;  %v10792_v4 = vpack.c.bf16 %v4667_v1, %v4666_v0 }
 0xb62   :  { %4570 = vadd.xlane.f32.xlu1 %v4569_v12  ;;  %v4566_v58 = vsel %vm220_vm0, %v4564_v11, 0.0  ;;  %v4626_v12 = vld [vmem:[%s11639_s3 + $0xf0] sm:$0xff] }
 0xb63   :  { %4567 = vadd.xlane.f32.xlu0 %v4566_v58  ;;  %v4627_v58 = vld [vmem:[%s11639_s3 + $0xf8] sm:$0xff] }
 0xb64   :  { %v10744_v15 = vpack.c.bf16 %v4627_v58, %v4626_v12 }
 0xbef   :  { %v4571_v14 = vpop.xlane.xlu1 %4570 }
 0xbf0   :  { %v4573_v26 = vmul.f32 0.03125, %v4571_v14  ;;  %v4568_v19 = vpop.xlane.xlu0 %4567  ;;  %v4638_v14 = vld [vmem:[%s11701_s15 + $0x10] sm:$0xff] }
 0xbf1   :  { %v4572_v29 = vmul.f32 0.03125, %v4568_v19  ;;  %v10756_v19 = vpack.c.bf16 %v4643_v25, %v4642_v24  ;;  %v10813_v24 = vpack.c.bf16 %v4689_v21, %v4688_v6  ;;  %v9159_v6 = vld [vmem:[%s11915_s27] ss:$0 sm:$0xff] }
 0xbf2   :  { %v4575_v23 = vadd.f32 1e-05, %v4573_v26  ;;  %v4639_v26 = vld [vmem:[%s11701_s15 + $0x18] sm:$0xff] }
 0xbf3   :  { %v4574_v30 = vadd.f32 1e-05, %v4572_v29  ;;  %v10750_v29 = vpack.c.bf16 %v4639_v26, %v4638_v14  ;;  %v4690_v14 = vld [vmem:[%s11786_s19 + $0x70] sm:$0xff]  ;;  %v4691_v26 = vld [vmem:[%s11786_s19 + $0x78] sm:$0xff] }
 0xbf4   :  { %10976 = vrsqrt.f32 %v4575_v23  ;;  %v4648_v23 = vld [vmem:[%s11701_s15 + $0x60] sm:$0xff] }
 0xbf5   :  { %10978 = vrsqrt.f32 %v4574_v30  ;;  %v4649_v30 = vld [vmem:[%s11701_s15 + $0x68] sm:$0xff] }
 0xbfe   :  { %v10977_v28 = vpop.eup %10976 }
 0xbff   :  { %v10979_v32 = vpop.eup %10978  ;;  %v4579_v44 = vmul.f32 %v10977_v28, %v4563_v7  ;;  %v4620_v7 = vld [vmem:[%s11639_s3 + $0xc0] sm:$0xff] }
 0xc00   :  { %v4578_v35 = vmul.f32 %v10979_v32, %v4562_v8  ;;  %v4621_v8 = vld [vmem:[%s11639_s3 + $0xc8] sm:$0xff]  ;;  %v4644_v28 = vld [vmem:[%s11701_s15 + $0x40] sm:$0xff]  ;;  %v10765_v32 = vpack.c.bf16 %v4649_v30, %v4648_v23  ;;  %v10816_v23 = vpack.c.bf16 %v4691_v26, %v4690_v14  ;;  %s9048_s3 = sld [smem:[%s12187_s0 + %s11064_s30]]  }
 0xc01   :  { %v4587_v38 = vmul.f32 %v9157_v31, %v4579_v44  ;;  %v10735_v11 = vpack.c.bf16 %v4621_v8, %v4620_v7  ;;  %v4680_v7 = vld [vmem:[%s11786_s19 + $0x20] sm:$0xff]  ;;  %v4681_v8 = vld [vmem:[%s11786_s19 + $0x28] sm:$0xff] }
 0xc02   :  { %v4586_v39 = vmul.f32 %v9157_v31, %v4578_v35  ;;  %v4645_v31 = vld [vmem:[%s11701_s15 + $0x48] sm:$0xff]  ;;  %v4647_v35 = vld [vmem:[%s11701_s15 + $0x58] sm:$0xff]  ;;  %v10801_v12 = vpack.c.bf16 %v4681_v8, %v4680_v7  ;;  %v9177_v14 = vld [vmem:[%s11908_s23 + $0x2] ss:$0 sm:$0xff] }
 0xc03   :  { %v11663_v41 = vadd.f32 %v9158_v34, %v4587_v38  ;;  %v10759_v44 = vpack.c.bf16 %v4645_v31, %v4644_v28  ;;  %v4656_v38 = vld [vmem:[%s11701_s15 + $0xa0] sm:$0xff]  ;;  %v4697_v31 = vld [vmem:[%s11786_s19 + $0xa8] sm:$0xff] }
 0xc04   :  { %v11667_v47 = vadd.f32 %v9158_v34, %v4586_v39  ;;  %v4646_v34 = vld [vmem:[%s11701_s15 + $0x50] sm:$0xff]  ;;  %v4657_v39 = vld [vmem:[%s11701_s15 + $0xa8] sm:$0xff]  ;;  %v4696_v28 = vld [vmem:[%s11786_s19 + $0xa0] sm:$0xff] }
 0xc05   :  { %10101 = vmatmul.mubr.msk.f32.vlgmr.msra.gmra.mrb[52].mxu0 %vm220_vm0, %v11663_v41  ;;  %v10762_v37 = vpack.c.bf16 %v4647_v35, %v4646_v34  ;;  %v10777_v45 = vpack.c.bf16 %v4657_v39, %v4656_v38  ;;  %v10825_v33 = vpack.c.bf16 %v4697_v31, %v4696_v28  ;;  %v4698_v34 = vld [vmem:[%s11786_s19 + $0xb0] sm:$0xff]  ;;  %v4699_v35 = vld [vmem:[%s11786_s19 + $0xb8] sm:$0xff]  ;;  %v9161_v28 = vld [vmem:[%s11915_s27 + $0x2] ss:$0 sm:$0xff] }
 0xc06   :  { %10718 = vmatpush3.bf16.msra.mxu0 %v10717_v40  ;;  %10090 = vmatmul.mubr.msk.f32.vlgmr.msra.gmra.mrb[52].mxu1 %vm220_vm0, %v11667_v47  ;;  %v4652_v40 = vld [vmem:[%s11701_s15 + $0x80] sm:$0xff]  ;;  %v10828_v38 = vpack.c.bf16 %v4699_v35, %v4698_v34 }
 0xc07   :  { %10712 = vmatpush3.bf16.msra.mxu1 %v10711_v42  ;;  %10719 = vmatprep.subr.bf16.mxu0 %v11025_v17  ;;  %v4653_v42 = vld [vmem:[%s11701_s15 + $0x88] sm:$0xff]  ;;  %v9179_v34 = vld [vmem:[%s11908_s23 + $0x4] ss:$0 sm:$0xff] }
 0xc08   :  { %10713 = vmatprep.subr.bf16.mxu1 %v11025_v17  ;;  %10122 = vmatprep.mubr.msk.f32.mxu0 %vm11026_vm1, %v11027_v27  ;;  %v10771_v46 = vpack.c.bf16 %v4653_v42, %v4652_v40  ;;  %v4704_v40 = vld [vmem:[%s11786_s19 + $0xe0] sm:$0xff]  ;;  %v4705_v42 = vld [vmem:[%s11786_s19 + $0xe8] sm:$0xff] }
 0xc09   :  { %10111 = vmatprep.mubr.msk.f32.mxu1 %vm11026_vm1, %v11027_v27  ;;  %v10837_v48 = vpack.c.bf16 %v4705_v42, %v4704_v40  ;;  %v9163_v40 = vld [vmem:[%s11915_s27 + $0x4] ss:$0 sm:$0xff] }
 0xc0a   :  { %10721 = vmatpush3.bf16.msra.mxu0 %v10720_v51  ;;  %v4654_v51 = vld [vmem:[%s11701_s15 + $0x90] sm:$0xff] }
 0xc0b   :  { %10715 = vmatpush3.bf16.msra.mxu1 %v10714_v52  ;;  %10728 = vmatprep.subr.bf16.mxu0 %v11025_v17  ;;  %v4655_v52 = vld [vmem:[%s11701_s15 + $0x98] sm:$0xff] }
 0xc0c   :  { %10722 = vmatprep.subr.bf16.mxu1 %v11025_v17  ;;  %v10774_v55 = vpack.c.bf16 %v4655_v52, %v4654_v51  ;;  %v4706_v51 = vld [vmem:[%s11786_s19 + $0xf0] sm:$0xff]  ;;  %v4707_v52 = vld [vmem:[%s11786_s19 + $0xf8] sm:$0xff] }
 0xc0d   :  { %10123 = vmatmul.mubr.msk.f32.vlgmr.msra.gmra.mrb[54].mxu0 %vm220_vm0, %v11663_v41  ;;  %v10840_v57 = vpack.c.bf16 %v4707_v52, %v4706_v51  ;;  %v9181_v51 = vld [vmem:[%s11908_s23 + $0x6] ss:$0 sm:$0xff] }
 0xc0e   :  { %10112 = vmatmul.mubr.msk.f32.vlgmr.msra.gmra.mrb[54].mxu1 %vm220_vm0, %v11667_v47  ;;  %10730 = vmatpush3.bf16.msra.mxu0 %v10729_v60  ;;  %v4660_v60 = vld [vmem:[%s11701_s15 + $0xc0] sm:$0xff] }
 0xc0f   :  { %10724 = vmatpush3.bf16.msra.mxu1 %v10723_v61  ;;  %10731 = vmatprep.subr.bf16.mxu0 %v11025_v17  ;;  %v4661_v61 = vld [vmem:[%s11701_s15 + $0xc8] sm:$0xff] }
 0xc10   :  { %10725 = vmatprep.subr.bf16.mxu1 %v11025_v17  ;;  %10144 = vmatprep.mubr.msk.f32.mxu0 %vm11026_vm1, %v11027_v27  ;;  %v10783_v63 = vpack.c.bf16 %v4661_v61, %v4660_v60 }
 0xc11   :  { %10133 = vmatprep.mubr.msk.f32.mxu1 %vm11026_vm1, %v11027_v27 }
 0xc12   :  { %10733 = vmatpush3.bf16.msra.mxu0 %v10732_v2  ;;  %v4662_v2 = vld [vmem:[%s11701_s15 + $0xd0] sm:$0xff] }
 0xc13   :  { %10727 = vmatpush3.bf16.msra.mxu1 %v10726_v3  ;;  %10740 = vmatprep.subr.bf16.mxu0 %v11025_v17  ;;  %v4663_v3 = vld [vmem:[%s11701_s15 + $0xd8] sm:$0xff]  ;;  %s9052_s15 = sld [smem:[%s12187_s0 + %s11067_s12]]  }
 0xc14   :  { %10734 = vmatprep.subr.bf16.mxu1 %v11025_v17  ;;  %v10786_v5 = vpack.c.bf16 %v4663_v3, %v4662_v2 }
 0xc15   :  { %10145 = vmatmul.mubr.msk.f32.vlgmr.msra.gmra.mrb[56].mxu0 %vm220_vm0, %v11663_v41 }
 0xc16   :  { %10134 = vmatmul.mubr.msk.f32.vlgmr.msra.gmra.mrb[56].mxu1 %vm220_vm0, %v11667_v47  ;;  %10742 = vmatpush3.bf16.msra.mxu0 %v10741_v9  ;;  %v4676_v9 = vld [vmem:[%s11786_s19] sm:$0xff] }
 0xc17   :  { %10736 = vmatpush3.bf16.msra.mxu1 %v10735_v11  ;;  %10743 = vmatprep.subr.bf16.mxu0 %v11025_v17  ;;  %v4677_v11 = vld [vmem:[%s11786_s19 + $0x8] sm:$0xff] }
 0xc18   :  { %10737 = vmatprep.subr.bf16.mxu1 %v11025_v17  ;;  %10166 = vmatprep.mubr.msk.f32.mxu0 %vm11026_vm1, %v11027_v27  ;;  %v10795_v58 = vpack.c.bf16 %v4677_v11, %v4676_v9 }
 0xc19   :  { %10155 = vmatprep.mubr.msk.f32.mxu1 %vm11026_vm1, %v11027_v27 }
 0xc1a   :  { %10745 = vmatpush3.bf16.msra.mxu0 %v10744_v15  ;;  %v4678_v15 = vld [vmem:[%s11786_s19 + $0x10] sm:$0xff] }
 0xc1b   :  { %10739 = vmatpush3.bf16.msra.mxu1 %v10738_v16  ;;  %10752 = vmatprep.subr.bf16.mxu0 %v11025_v17  ;;  %v4679_v16 = vld [vmem:[%s11786_s19 + $0x18] sm:$0xff] }
 0xc1c   :  { %10746 = vmatprep.subr.bf16.mxu1 %v11025_v17  ;;  %v10798_v20 = vpack.c.bf16 %v4679_v16, %v4678_v15  ;;  %v9160_v15 = vld [vmem:[%s11915_s27 + $0x1] ss:$0 sm:$0xff] }
 0xc1d   :  { %10167 = vmatmul.mubr.msk.f32.vlgmr.msra.gmra.mrb[58].mxu0 %vm220_vm0, %v11663_v41 }
 0xc1e   :  { %10156 = vmatmul.mubr.msk.f32.vlgmr.msra.gmra.mrb[58].mxu1 %vm220_vm0, %v11667_v47  ;;  %10754 = vmatpush3.bf16.msra.mxu0 %v10753_v22  ;;  %v4684_v22 = vld [vmem:[%s11786_s19 + $0x40] sm:$0xff] }
 0xc1f   :  { %10748 = vmatpush3.bf16.msra.mxu1 %v10747_v10  ;;  %10755 = vmatprep.subr.bf16.mxu0 %v11025_v17  ;;  %v4685_v10 = vld [vmem:[%s11786_s19 + $0x48] sm:$0xff] }
 0xc20   :  { %10749 = vmatprep.subr.bf16.mxu1 %v11025_v17  ;;  %10188 = vmatprep.mubr.msk.f32.mxu0 %vm11026_vm1, %v11027_v27  ;;  %v10807_v25 = vpack.c.bf16 %v4685_v10, %v4684_v22 }
 0xc21   :  { %10177 = vmatprep.mubr.msk.f32.mxu1 %vm11026_vm1, %v11027_v27 }
 0xc22   :  { %10757 = vmatpush3.bf16.msra.mxu0 %v10756_v19  ;;  %v4686_v19 = vld [vmem:[%s11786_s19 + $0x50] sm:$0xff] }
 0xc23   :  { %10751 = vmatpush3.bf16.msra.mxu1 %v10750_v29  ;;  %10764 = vmatprep.subr.bf16.mxu0 %v11025_v17  ;;  %v4687_v29 = vld [vmem:[%s11786_s19 + $0x58] sm:$0xff] }
 0xc24   :  { %10758 = vmatprep.subr.bf16.mxu1 %v11025_v17  ;;  %v10810_v30 = vpack.c.bf16 %v4687_v29, %v4686_v19  ;;  %v9162_v19 = vld [vmem:[%s11915_s27 + $0x3] ss:$0 sm:$0xff] }
 0xc25   :  { %10189 = vmatmul.mubr.msk.f32.vlgmr.msra.gmra.mrb[60].mxu0 %vm220_vm0, %v11663_v41 }
 0xc26   :  { %10178 = vmatmul.mubr.msk.f32.vlgmr.msra.gmra.mrb[60].mxu1 %vm220_vm0, %v11667_v47  ;;  %10766 = vmatpush3.bf16.msra.mxu0 %v10765_v32  ;;  %v4692_v32 = vld [vmem:[%s11786_s19 + $0x80] sm:$0xff] }
 0xc27   :  { %10760 = vmatpush3.bf16.msra.mxu1 %v10759_v44  ;;  %10767 = vmatprep.subr.bf16.mxu0 %v11025_v17  ;;  %v4693_v44 = vld [vmem:[%s11786_s19 + $0x88] sm:$0xff] }
 0xc28   :  { %10761 = vmatprep.subr.bf16.mxu1 %v11025_v17  ;;  %10210 = vmatprep.mubr.msk.f32.mxu0 %vm11026_vm1, %v11027_v27  ;;  %v10819_v53 = vpack.c.bf16 %v4693_v44, %v4692_v32 }
 0xc29   :  { %10199 = vmatprep.mubr.msk.f32.mxu1 %vm11026_vm1, %v11027_v27 }
 0xc2a   :  { %10769 = vmatpush3.bf16.msra.mxu0 %v10768_v36  ;;  %v4694_v36 = vld [vmem:[%s11786_s19 + $0x90] sm:$0xff] }
 0xc2b   :  { %10763 = vmatpush3.bf16.msra.mxu1 %v10762_v37  ;;  %10776 = vmatprep.subr.bf16.mxu0 %v11025_v17  ;;  %v4695_v37 = vld [vmem:[%s11786_s19 + $0x98] sm:$0xff] }
 0xc2c   :  { %10770 = vmatprep.subr.bf16.mxu1 %v11025_v17  ;;  %v10822_v39 = vpack.c.bf16 %v4695_v37, %v4694_v36  ;;  %v9164_v36 = vld [vmem:[%s11915_s27 + $0x5] ss:$0 sm:$0xff] }
 0xc2d   :  { %10211 = vmatmul.mubr.msk.f32.vlgmr.msra.gmra.mrb[62].mxu0 %vm220_vm0, %v11663_v41 }
 0xc2e   :  { %10200 = vmatmul.mubr.msk.f32.vlgmr.msra.gmra.mrb[62].mxu1 %vm220_vm0, %v11667_v47  ;;  %10778 = vmatpush3.bf16.msra.mxu0 %v10777_v45  ;;  %v4700_v45 = vld [vmem:[%s11786_s19 + $0xc0] sm:$0xff] }
 0xc2f   :  { %10772 = vmatpush3.bf16.msra.mxu1 %v10771_v46  ;;  %10779 = vmatprep.subr.bf16.mxu0 %v11025_v17  ;;  %v4701_v46 = vld [vmem:[%s11786_s19 + $0xc8] sm:$0xff] }
 0xc30   :  { %10773 = vmatprep.subr.bf16.mxu1 %v11025_v17  ;;  %10232 = vmatprep.mubr.msk.f32.mxu0 %vm11026_vm1, %v11027_v27  ;;  %v10831_v50 = vpack.c.bf16 %v4701_v46, %v4700_v45 }
 0xc31   :  { %10221 = vmatprep.mubr.msk.f32.mxu1 %vm11026_vm1, %v11027_v27 }
 0xc32   :  { %10781 = vmatpush3.bf16.msra.mxu0 %v10780_v54  ;;  %v4702_v54 = vld [vmem:[%s11786_s19 + $0xd0] sm:$0xff] }
 0xc33   :  { %10775 = vmatpush3.bf16.msra.mxu1 %v10774_v55  ;;  %10788 = vmatprep.subr.bf16.mxu0 %v11025_v17  ;;  %v4703_v55 = vld [vmem:[%s11786_s19 + $0xd8] sm:$0xff]  ;;  %s9054_s19 = sld [smem:[%s12187_s0 + %s11068_s16]]  }
 0xc34   :  { %10782 = vmatprep.subr.bf16.mxu1 %v11025_v17  ;;  %v10834_v59 = vpack.c.bf16 %v4703_v55, %v4702_v54  ;;  %v9166_v54 = vld [vmem:[%s11915_s27 + $0x7] ss:$0 sm:$0xff] }
 0xc35   :  { %10233 = vmatmul.mubr.msk.f32.vlgmr.msra.gmra.mrb[64].mxu0 %vm220_vm0, %v11663_v41 }
 0xc36   :  { %10222 = vmatmul.mubr.msk.f32.vlgmr.msra.gmra.mrb[64].mxu1 %vm220_vm0, %v11667_v47  ;;  %10790 = vmatpush3.bf16.msra.mxu0 %v10789_v62 }
 0xc37   :  { %10784 = vmatpush3.bf16.msra.mxu1 %v10783_v63  ;;  %10791 = vmatprep.subr.bf16.mxu0 %v11025_v17 }
 0xc38   :  { %10785 = vmatprep.subr.bf16.mxu1 %v11025_v17  ;;  %10254 = vmatprep.mubr.msk.f32.mxu0 %vm11026_vm1, %v11027_v27 }
 0xc39   :  { %10243 = vmatprep.mubr.msk.f32.mxu1 %vm11026_vm1, %v11027_v27 }
 0xc3a   :  { %10793 = vmatpush3.bf16.msra.mxu0 %v10792_v4 }
 0xc3b   :  { %10787 = vmatpush3.bf16.msra.mxu1 %v10786_v5  ;;  %10800 = vmatprep.subr.bf16.mxu0 %v11025_v17 }
 0xc3c   :  { %10794 = vmatprep.subr.bf16.mxu1 %v11025_v17 }
 0xc3d   :  { %10255 = vmatmul.mubr.msk.f32.vlgmr.msra.gmra.mrb[66].mxu0 %vm220_vm0, %v11663_v41 }
 0xc3e   :  { %10244 = vmatmul.mubr.msk.f32.vlgmr.msra.gmra.mrb[66].mxu1 %vm220_vm0, %v11667_v47  ;;  %10802 = vmatpush3.bf16.msra.mxu0 %v10801_v12 }
 0xc3f   :  { %10796 = vmatpush3.bf16.msra.mxu1 %v10795_v58  ;;  %10803 = vmatprep.subr.bf16.mxu0 %v11025_v17  ;;  %v9176_v58 = vld [vmem:[%s11908_s23 + $0x1] ss:$0 sm:$0xff] }
 0xc40   :  { %10797 = vmatprep.subr.bf16.mxu1 %v11025_v17  ;;  %10276 = vmatprep.mubr.msk.f32.mxu0 %vm11026_vm1, %v11027_v27 }
 0xc41   :  { %10265 = vmatprep.mubr.msk.f32.mxu1 %vm11026_vm1, %v11027_v27 }
 0xc42   :  { %10805 = vmatpush3.bf16.msra.mxu0 %v10804_v18 }
 0xc43   :  { %10799 = vmatpush3.bf16.msra.mxu1 %v10798_v20  ;;  %10812 = vmatprep.subr.bf16.mxu0 %v11025_v17 }
 0xc44   :  { %10806 = vmatprep.subr.bf16.mxu1 %v11025_v17 }
 0xc45   :  { %10277 = vmatmul.mubr.msk.f32.vlgmr.msra.gmra.mrb[68].mxu0 %vm220_vm0, %v11663_v41 }
 0xc46   :  { %10266 = vmatmul.mubr.msk.f32.vlgmr.msra.gmra.mrb[68].mxu1 %vm220_vm0, %v11667_v47  ;;  %10814 = vmatpush3.bf16.msra.mxu0 %v10813_v24 }
 0xc47   :  { %10808 = vmatpush3.bf16.msra.mxu1 %v10807_v25  ;;  %10815 = vmatprep.subr.bf16.mxu0 %v11025_v17  ;;  %v9178_v25 = vld [vmem:[%s11908_s23 + $0x3] ss:$0 sm:$0xff] }
 0xc48   :  { %10809 = vmatprep.subr.bf16.mxu1 %v11025_v17  ;;  %10298 = vmatprep.mubr.msk.f32.mxu0 %vm11026_vm1, %v11027_v27 }
 0xc49   :  { %10287 = vmatprep.mubr.msk.f32.mxu1 %vm11026_vm1, %v11027_v27 }
 0xc4a   :  { %10817 = vmatpush3.bf16.msra.mxu0 %v10816_v23 }
 0xc4b   :  { %10811 = vmatpush3.bf16.msra.mxu1 %v10810_v30  ;;  %10824 = vmatprep.subr.bf16.mxu0 %v11025_v17 }
 0xc4c   :  { %10818 = vmatprep.subr.bf16.mxu1 %v11025_v17 }
 0xc4d   :  { %10299 = vmatmul.mubr.msk.f32.vlgmr.msra.gmra.mrb[70].mxu0 %vm220_vm0, %v11663_v41 }
 0xc4e   :  { %10288 = vmatmul.mubr.msk.f32.vlgmr.msra.gmra.mrb[70].mxu1 %vm220_vm0, %v11667_v47  ;;  %10826 = vmatpush3.bf16.msra.mxu0 %v10825_v33 }
 0xc4f   :  { %10820 = vmatpush3.bf16.msra.mxu1 %v10819_v53  ;;  %10827 = vmatprep.subr.bf16.mxu0 %v11025_v17  ;;  %v9180_v53 = vld [vmem:[%s11908_s23 + $0x5] ss:$0 sm:$0xff] }
 0xc50   :  { %10821 = vmatprep.subr.bf16.mxu1 %v11025_v17  ;;  %10320 = vmatprep.mubr.msk.f32.mxu0 %vm11026_vm1, %v11027_v27 }
 0xc51   :  { %10309 = vmatprep.mubr.msk.f32.mxu1 %vm11026_vm1, %v11027_v27 }
 0xc52   :  { %10829 = vmatpush3.bf16.msra.mxu0 %v10828_v38 }
 0xc53   :  { %10823 = vmatpush3.bf16.msra.mxu1 %v10822_v39  ;;  %10836 = vmatprep.subr.bf16.mxu0 %v11025_v17 }
 0xc54   :  { %10830 = vmatprep.subr.bf16.mxu1 %v11025_v17 }
 0xc55   :  { %10321 = vmatmul.mubr.msk.f32.vlgmr.msra.gmra.mrb[72].mxu0 %vm220_vm0, %v11663_v41 }
 0xc56   :  { %10310 = vmatmul.mubr.msk.f32.vlgmr.msra.gmra.mrb[72].mxu1 %vm220_vm0, %v11667_v47  ;;  %10838 = vmatpush3.bf16.msra.mxu0 %v10837_v48 }
 0xc57   :  { %10832 = vmatpush3.bf16.msra.mxu1 %v10831_v50  ;;  %10839 = vmatprep.subr.bf16.mxu0 %v11025_v17  ;;  %v9182_v50 = vld [vmem:[%s11908_s23 + $0x7] ss:$0 sm:$0xff]  ;;  %s9057_s23 = sld [smem:[%s12187_s0 + %s11069_s20]]  }
 0xc58   :  { %10833 = vmatprep.subr.bf16.mxu1 %v11025_v17  ;;  %10342 = vmatprep.mubr.msk.f32.mxu0 %vm11026_vm1, %v11027_v27 }
 0xc59   :  { %10331 = vmatprep.mubr.msk.f32.mxu1 %vm11026_vm1, %v11027_v27 }
 0xc5a   :  { %10841 = vmatpush3.bf16.msra.mxu0 %v10840_v57 }
 0xc5b   :  { %10835 = vmatpush3.bf16.msra.mxu1 %v10834_v59  ;;  %10350 = vmatprep.subr.mxu0 %v11027_v27 }
 0xc5c   :  { %10345 = vmatprep.subr.mxu1 %v11027_v27 }
 0xc5d   :  { %10343 = vmatmul.mubr.msk.f32.vlgmr.msra.gmra.mrb[74].mxu0 %vm220_vm0, %v11663_v41 }
 0xc5e   :  { %10332 = vmatmul.mubr.msk.f32.vlgmr.msra.gmra.mrb[74].mxu1 %vm220_vm0, %v11667_v47  ;;  %10352 = vmatprep.mubr.msk.f32.mxu0 %vm11026_vm1, %v11027_v27 }
 0xc5f   :  { %10347 = vmatprep.mubr.msk.f32.mxu1 %vm11026_vm1, %v11027_v27 }
 0xcd8   :  { %v4940_v17 = vpop.f32.mrb[52].mxu0 }
 0xcd9   :  { %v4867_v60 = vpop.f32.mrb[52].mxu1  ;;  %v10102_v61 = vpop.f32.mrb[53].mxu0  ;;  %v4941_v10 = vadd.f32 %v9160_v15, %v4940_v17  ;;  %v9165_v17 = vld [vmem:[%s11915_s27 + $0x6] ss:$0 sm:$0xff]  ;;  %s9055_s27 = sld [smem:[%s12187_s0 + %s11070_s24]]  }
 0xcda   :  { %v10091_v62 = vpop.f32.mrb[53].mxu1  ;;  %v4868_v24 = vadd.f32 %v9159_v6, %v4867_v60 }
 0xce0   :  { %v5080_v63 = vpop.f32.mrb[54].mxu0 }
 0xce1   :  { %v5010_v0 = vpop.f32.mrb[54].mxu1  ;;  %v10124_v1 = vpop.f32.mrb[55].mxu0  ;;  %v5081_v44 = vadd.f32 %v9162_v19, %v5080_v63 }
 0xce2   :  { %v10113_v2 = vpop.f32.mrb[55].mxu1  ;;  %v5011_v33 = vadd.f32 %v9161_v28, %v5010_v0  ;;  %v9192_v0 = vld [vmem:[%s11962_s1 + $0x1] ss:$0 sm:$0xff]  ;;  %v9191_v1 = vld [vmem:[%s11962_s1] ss:$0 sm:$0xff] }
 0xce8   :  { %v11901_v3 = vpop.f32.mrb[56].mxu0 }
 0xce9   :  { %v11903_v4 = vpop.f32.mrb[56].mxu1  ;;  %v10146_v5 = vpop.f32.mrb[57].mxu0  ;;  %v5221_v46 = vadd.f32 %v9164_v36, %v11901_v3 }
 0xcea   :  { %v10135_v7 = vpop.f32.mrb[57].mxu1  ;;  %v5151_v48 = vadd.f32 %v9163_v40, %v11903_v4 }
 0xcf0   :  { %v11910_v8 = vpop.f32.mrb[58].mxu0 }
 0xcf1   :  { %v11917_v9 = vpop.f32.mrb[58].mxu1  ;;  %v10168_v11 = vpop.f32.mrb[59].mxu0  ;;  %v5361_v62 = vadd.f32 %v9166_v54, %v11910_v8 }
 0xcf2   :  { %v10157_v12 = vpop.f32.mrb[59].mxu1  ;;  %v5291_v63 = vadd.f32 %v9165_v17, %v11917_v9  ;;  %v9194_v9 = vld [vmem:[%s11962_s1 + $0x3] ss:$0 sm:$0xff]  ;;  %v9193_v11 = vld [vmem:[%s11962_s1 + $0x2] ss:$0 sm:$0xff] }
 0xcf8   :  { %v5548_v13 = vpop.f32.mrb[60].mxu0 }
 0xcf9   :  { %v5549_v16 = vadd.f32 %v9176_v58, %v5548_v13  ;;  %v5478_v18 = vpop.f32.mrb[60].mxu1  ;;  %v10190_v20 = vpop.f32.mrb[61].mxu0 }
 0xcfa   :  { %v5479_v21 = vadd.f32 %v9175_v56, %v5478_v18  ;;  %v10179_v22 = vpop.f32.mrb[61].mxu1  ;;  %v9196_v18 = vld [vmem:[%s11962_s1 + $0x5] ss:$0 sm:$0xff]  ;;  %v9195_v20 = vld [vmem:[%s11962_s1 + $0x4] ss:$0 sm:$0xff] }
 0xcfb   :  { %10351 = vmatpush3.xpose.msk.msra.mxu0 %vm2258_vm2, %v5549_v16 }
 0xcfc   :  { %10346 = vmatpush3.xpose.msk.msra.mxu1 %vm2258_vm2, %v5479_v21  ;;  %10360 = vmatprep.subr.mxu0 %v11027_v27 }
 0xcfd   :  { %10355 = vmatprep.subr.mxu1 %v11027_v27 }
 0xcfe   :  { %10353 = vmatmul.mubr.msk.f32.vlgmr.msra.gmra.mrb[76].mxu0 %vm2258_vm2, %v4941_v10 }
 0xcff   :  { %10348 = vmatmul.mubr.msk.f32.vlgmr.msra.gmra.mrb[76].mxu1 %vm2258_vm2, %v4868_v24  ;;  %10362 = vmatprep.mubr.msk.f32.mxu0 %vm11026_vm1, %v11027_v27 }
 0xd00   :  { %v5688_v26 = vpop.f32.mrb[62].mxu0  ;;  %10357 = vmatprep.mubr.msk.f32.mxu1 %vm11026_vm1, %v11027_v27 }
 0xd01   :  { %v5689_v29 = vadd.f32 %v9178_v25, %v5688_v26  ;;  %v5618_v23 = vpop.f32.mrb[62].mxu1  ;;  %v10212_v30 = vpop.f32.mrb[63].mxu0  ;;  %v9197_v26 = vld [vmem:[%s11962_s1 + $0x6] ss:$0 sm:$0xff] }
 0xd02   :  { %v5619_v31 = vadd.f32 %v9177_v14, %v5618_v23  ;;  %v10201_v32 = vpop.f32.mrb[63].mxu1  ;;  %v9198_v14 = vld [vmem:[%s11962_s1 + $0x7] ss:$0 sm:$0xff]  ;;  %s9056_s1 = sld [smem:[%s12187_s0 + %s11071_s28]]  }
 0xd03   :  { %10361 = vmatpush3.xpose.msk.msra.mxu0 %vm2258_vm2, %v5689_v29 }
 0xd04   :  { %10356 = vmatpush3.xpose.msk.msra.mxu1 %vm2258_vm2, %v5619_v31  ;;  %10370 = vmatprep.subr.mxu0 %v11027_v27 }
 0xd05   :  { %10365 = vmatprep.subr.mxu1 %v11027_v27 }
 0xd06   :  { %10363 = vmatmul.mubr.msk.f32.vlgmr.msra.gmra.mrb[78].mxu0 %vm2258_vm2, %v5081_v44 }
 0xd07   :  { %10358 = vmatmul.mubr.msk.f32.vlgmr.msra.gmra.mrb[78].mxu1 %vm2258_vm2, %v5011_v33  ;;  %10372 = vmatprep.mubr.msk.f32.mxu0 %vm11026_vm1, %v11027_v27 }
 0xd08   :  { %v5828_v35 = vpop.f32.mrb[64].mxu0  ;;  %10367 = vmatprep.mubr.msk.f32.mxu1 %vm11026_vm1, %v11027_v27 }
 0xd09   :  { %v5829_v37 = vadd.f32 %v9180_v53, %v5828_v35  ;;  %v5758_v38 = vpop.f32.mrb[64].mxu1  ;;  %v10234_v39 = vpop.f32.mrb[65].mxu0 }
 0xd0a   :  { %v5759_v42 = vadd.f32 %v9179_v34, %v5758_v38  ;;  %v10223_v45 = vpop.f32.mrb[65].mxu1 }
 0xd0b   :  { %10371 = vmatpush3.xpose.msk.msra.mxu0 %vm2258_vm2, %v5829_v37 }
 0xd0c   :  { %10366 = vmatpush3.xpose.msk.msra.mxu1 %vm2258_vm2, %v5759_v42  ;;  %10380 = vmatprep.subr.mxu0 %v11027_v27 }
 0xd0d   :  { %10375 = vmatprep.subr.mxu1 %v11027_v27 }
 0xd0e   :  { %10373 = vmatmul.mubr.msk.f32.vlgmr.msra.gmra.mrb[80].mxu0 %vm2258_vm2, %v5221_v46 }
 0xd0f   :  { %10368 = vmatmul.mubr.msk.f32.vlgmr.msra.gmra.mrb[80].mxu1 %vm2258_vm2, %v5151_v48  ;;  %10382 = vmatprep.mubr.msk.f32.mxu0 %vm11026_vm1, %v11027_v27 }
 0xd10   :  { %v5968_v52 = vpop.f32.mrb[66].mxu0  ;;  %10377 = vmatprep.mubr.msk.f32.mxu1 %vm11026_vm1, %v11027_v27 }
 0xd11   :  { %v5969_v55 = vadd.f32 %v9182_v50, %v5968_v52  ;;  %v5898_v57 = vpop.f32.mrb[66].mxu1  ;;  %v10256_v59 = vpop.f32.mrb[67].mxu0 }
 0xd12   :  { %v5899_v60 = vadd.f32 %v9181_v51, %v5898_v57  ;;  %v10245_v61 = vpop.f32.mrb[67].mxu1 }
 0xd13   :  { %10381 = vmatpush3.xpose.msk.msra.mxu0 %vm2258_vm2, %v5969_v55 }
 0xd14   :  { %10376 = vmatpush3.xpose.msk.msra.mxu1 %vm2258_vm2, %v5899_v60  ;;  %10390 = vmatprep.subr.mxu0 %v11027_v27 }
 0xd15   :  { %10385 = vmatprep.subr.mxu1 %v11027_v27 }
 0xd16   :  { %10383 = vmatmul.mubr.msk.f32.vlgmr.msra.gmra.mrb[82].mxu0 %vm2258_vm2, %v5361_v62 }
 0xd17   :  { %10378 = vmatmul.mubr.msk.f32.vlgmr.msra.gmra.mrb[82].mxu1 %vm2258_vm2, %v5291_v63  ;;  %10392 = vmatprep.mubr.msk.f32.mxu0 %vm11026_vm1, %v11027_v27 }
 0xd18   :  { %v6156_v2 = vpop.f32.mrb[68].mxu0  ;;  %10387 = vmatprep.mubr.msk.f32.mxu1 %vm11026_vm1, %v11027_v27 }
 0xd19   :  { %v6157_v3 = vadd.f32 %v9192_v0, %v6156_v2  ;;  %v6086_v4 = vpop.f32.mrb[68].mxu1  ;;  %v10278_v5 = vpop.f32.mrb[69].mxu0 }
 0xd1a   :  { %v6087_v7 = vadd.f32 %v9191_v1, %v6086_v4  ;;  %v10267_v8 = vpop.f32.mrb[69].mxu1 }
 0xd1b   :  { %10391 = vmatpush3.msra.mxu0 %v6157_v3 }
 0xd1c   :  { %10386 = vmatpush3.msra.mxu1 %v6087_v7  ;;  %10400 = vmatprep.subr.mxu0 %v11027_v27 }
 0xd1d   :  { %10395 = vmatprep.subr.mxu1 %v11027_v27 }
 0xd20   :  { %v6296_v12 = vpop.f32.mrb[70].mxu0 }
 0xd21   :  { %v11990_v58 = vadd.f32 %v9194_v9, %v6296_v12  ;;  %v6226_v56 = vpop.f32.mrb[70].mxu1  ;;  %v10300_v13 = vpop.f32.mrb[71].mxu0 }
 0xd22   :  { %v11992_v15 = vadd.f32 %v9193_v11, %v6226_v56  ;;  %v10289_v16 = vpop.f32.mrb[71].mxu1 }
 0xd28   :  { %v6436_v6 = vpop.f32.mrb[72].mxu0 }
 0xd29   :  { %v11996_v21 = vadd.f32 %v9196_v18, %v6436_v6  ;;  %v6366_v22 = vpop.f32.mrb[72].mxu1  ;;  %v10322_v10 = vpop.f32.mrb[73].mxu0 }
 0xd2a   :  { %v11998_v24 = vadd.f32 %v9195_v20, %v6366_v22  ;;  %v10311_v25 = vpop.f32.mrb[73].mxu1 }
 0xd30   :  { %v6576_v19 = vpop.f32.mrb[74].mxu0 }
 0xd31   :  { %v12002_v29 = vadd.f32 %v9198_v14, %v6576_v19  ;;  %v6506_v23 = vpop.f32.mrb[74].mxu1  ;;  %v10344_v30 = vpop.f32.mrb[75].mxu0 }
 0xd32   :  { %v12004_v28 = vadd.f32 %v9197_v26, %v6506_v23  ;;  %v10333_v31 = vpop.f32.mrb[75].mxu1 }
 0xdd1   :  { %v6728_v32 = vpop.f32.mrb[76].mxu0 }
 0xdd2   :  { %v6729_v44 = vadd.f32 %v6728_v32, %v11465_v49  ;;  %v6652_v33 = vpop.f32.mrb[76].mxu1  ;;  %v10354_v53 = vpop.f32.mrb[77].mxu0 }
 0xdd3   :  { %v6653_v34 = vadd.f32 %v6652_v33, %v11462_v43  ;;  %v10349_v35 = vpop.f32.mrb[77].mxu1 }
 0xdd4   :  { %v7191_v36 = vsel %vm2258_vm2, %v6729_v44, -inf }
 0xdd5   :  { %7192 = vmax.xlane.f32.xlu1 %v7191_v36  ;;  %v7188_v37 = vsel %vm2258_vm2, %v6653_v34, -inf }
 0xdd6   :  { %7189 = vmax.xlane.f32.xlu0 %v7188_v37 }
 0xdd9   :  { %v6880_v38 = vpop.f32.mrb[78].mxu0 }
 0xdda   :  { %v6881_v39 = vadd.f32 %v6880_v38, %v11465_v49  ;;  %v6804_v40 = vpop.f32.mrb[78].mxu1  ;;  %v10364_v42 = vpop.f32.mrb[79].mxu0 }
 0xddb   :  { %v6805_v45 = vadd.f32 %v6804_v40, %v11462_v43  ;;  %v10359_v46 = vpop.f32.mrb[79].mxu1 }
 0xddc   :  { %v7197_v48 = vsel %vm2258_vm2, %v6881_v39, -inf }
 0xddd   :  { %7198 = vmax.xlane.f32.xlu1 %v7197_v48  ;;  %v7194_v50 = vsel %vm2258_vm2, %v6805_v45, -inf }
 0xdde   :  { %7195 = vmax.xlane.f32.xlu0 %v7194_v50 }
 0xde1   :  { %v7032_v51 = vpop.f32.mrb[80].mxu0 }
 0xde2   :  { %v7033_v52 = vadd.f32 %v7032_v51, %v11465_v49  ;;  %v6956_v54 = vpop.f32.mrb[80].mxu1  ;;  %v10374_v55 = vpop.f32.mrb[81].mxu0 }
 0xde3   :  { %v6957_v57 = vadd.f32 %v6956_v54, %v11462_v43  ;;  %v10369_v59 = vpop.f32.mrb[81].mxu1 }
 0xde4   :  { %v7203_v17 = vsel %vm2258_vm2, %v7033_v52, -inf }
 0xde5   :  { %7204 = vmax.xlane.f32.xlu1 %v7203_v17  ;;  %v7200_v60 = vsel %vm2258_vm2, %v6957_v57, -inf }
 0xde6   :  { %7201 = vmax.xlane.f32.xlu0 %v7200_v60 }
 0xde9   :  { %v7184_v61 = vpop.f32.mrb[82].mxu0 }
 0xdea   :  { %v7185_v62 = vadd.f32 %v7184_v61, %v11465_v49  ;;  %v7108_v63 = vpop.f32.mrb[82].mxu1  ;;  %v10384_v0 = vpop.f32.mrb[83].mxu0 }
 0xdeb   :  { %v7109_v1 = vadd.f32 %v7108_v63, %v11462_v43  ;;  %v10379_v2 = vpop.f32.mrb[83].mxu1 }
 0xdec   :  { %v7209_v3 = vsel %vm2258_vm2, %v7185_v62, -inf }
 0xded   :  { %7210 = vmax.xlane.f32.xlu1 %v7209_v3  ;;  %v7206_v4 = vsel %vm2258_vm2, %v7109_v1, -inf }
 0xdee   :  { %7207 = vmax.xlane.f32.xlu0 %v7206_v4 }
 0xe62   :  { %v7193_v5 = vpop.xlane.xlu1 %7192 }
 0xe63   :  { %v7213_v7 = vsub.f32 %v6729_v44, %v7193_v5  ;;  %v7190_v8 = vpop.xlane.xlu0 %7189 }
 0xe64   :  { %v7212_v9 = vsub.f32 %v6653_v34, %v7190_v8 }
 0xe65   :  { %v7222_v11 = vmul.f32 1.442695, %v7213_v7 }
 0xe66   :  { %v7220_v12 = vmul.f32 1.442695, %v7212_v9 }
 0xe67   :  { %10980 = vpow2.f32 %v7222_v11 }
 0xe68   :  { %10982 = vpow2.f32 %v7220_v12  ;;  %v4719_v12 = vld [vmem:[%s12069_s5 + $0x18] sm:$0xff] }
 0xe6a   :  { %v7199_v49 = vpop.xlane.xlu1 %7198 }
 0xe6b   :  { %v7215_v56 = vsub.f32 %v6881_v39, %v7199_v49  ;;  %v7196_v13 = vpop.xlane.xlu0 %7195 }
 0xe6c   :  { %v7214_v16 = vsub.f32 %v6805_v45, %v7196_v13 }
 0xe6d   :  { %v7226_v43 = vmul.f32 1.442695, %v7215_v56  ;;  %v4718_v56 = vld [vmem:[%s12069_s5 + $0x10] sm:$0xff] }
 0xe6e   :  { %v7224_v18 = vmul.f32 1.442695, %v7214_v16 }
 0xe6f   :  { %10984 = vpow2.f32 %v7226_v43 }
 0xe70   :  { %10986 = vpow2.f32 %v7224_v18  ;;  %v4721_v18 = vld [vmem:[%s12069_s5 + $0x28] sm:$0xff] }
 0xe71   :  { %v10981_v20 = vpop.eup %10980 }
 0xe72   :  { %v10983_v6 = vpop.eup %10982  ;;  %v7205_v22 = vpop.xlane.xlu1 %7204  ;;  %v7239_v10 = vsel %vm2258_vm2, %v10981_v20, 0.0 }
 0xe73   :  { %v7217_v25 = vsub.f32 %v7033_v52, %v7205_v22  ;;  %7240 = vadd.xlane.f32.xlu1 %v7239_v10  ;;  %v7202_v14 = vpop.xlane.xlu0 %7201  ;;  %v7236_v26 = vsel %vm2258_vm2, %v10983_v6, 0.0 }
 0xe74   :  { %v7216_v19 = vsub.f32 %v6957_v57, %v7202_v14  ;;  %7237 = vadd.xlane.f32.xlu0 %v7236_v26  ;;  %v4723_v14 = vld [vmem:[%s12069_s5 + $0x38] sm:$0xff] }
 0xe75   :  { %v7230_v23 = vmul.f32 1.442695, %v7217_v25 }
 0xe76   :  { %v7228_v30 = vmul.f32 1.442695, %v7216_v19  ;;  %v4722_v19 = vld [vmem:[%s12069_s5 + $0x30] sm:$0xff] }
 0xe77   :  { %10988 = vpow2.f32 %v7230_v23 }
 0xe78   :  { %10990 = vpow2.f32 %v7228_v30 }
 0xe79   :  { %v10985_v31 = vpop.eup %10984 }
 0xe7a   :  { %v10987_v32 = vpop.eup %10986  ;;  %v7211_v44 = vpop.xlane.xlu1 %7210  ;;  %v7245_v33 = vsel %vm2258_vm2, %v10985_v31, 0.0 }
 0xe7b   :  { %v7219_v53 = vsub.f32 %v7185_v62, %v7211_v44  ;;  %7246 = vadd.xlane.f32.xlu1 %v7245_v33  ;;  %v7208_v34 = vpop.xlane.xlu0 %7207  ;;  %v7242_v35 = vsel %vm2258_vm2, %v10987_v32, 0.0 }
 0xe7c   :  { %v7218_v36 = vsub.f32 %v7109_v1, %v7208_v34  ;;  %7243 = vadd.xlane.f32.xlu0 %v7242_v35 }
 0xe7d   :  { %v7234_v37 = vmul.f32 1.442695, %v7219_v53 }
 0xe7e   :  { %v7232_v38 = vmul.f32 1.442695, %v7218_v36 }
 0xe7f   :  { %10992 = vpow2.f32 %v7234_v37 }
 0xe80   :  { %10994 = vpow2.f32 %v7232_v38 }
 0xe81   :  { %v10989_v39 = vpop.eup %10988 }
 0xe82   :  { %v10991_v40 = vpop.eup %10990  ;;  %v7251_v42 = vsel %vm2258_vm2, %v10989_v39, 0.0 }
 0xe83   :  { %7252 = vadd.xlane.f32.xlu1 %v7251_v42  ;;  %v7248_v45 = vsel %vm2258_vm2, %v10991_v40, 0.0 }
 0xe84   :  { %7249 = vadd.xlane.f32.xlu0 %v7248_v45 }
 0xe89   :  { %v10993_v46 = vpop.eup %10992 }
 0xe8a   :  { %v10995_v48 = vpop.eup %10994  ;;  %v7257_v50 = vsel %vm2258_vm2, %v10993_v46, 0.0 }
 0xe8b   :  { %7258 = vadd.xlane.f32.xlu1 %v7257_v50  ;;  %v7254_v51 = vsel %vm2258_vm2, %v10995_v48, 0.0 }
 0xe8c   :  { %7255 = vadd.xlane.f32.xlu0 %v7254_v51 }
 0xf00   :  { %v7241_v52 = vpop.xlane.xlu1 %7240 }
 0xf01   :  { %10996 = vrcp.f32 %v7241_v52  ;;  %v7238_v54 = vpop.xlane.xlu0 %7237 }
 0xf02   :  { %10998 = vrcp.f32 %v7238_v54 }
 0xf08   :  { %v7247_v55 = vpop.xlane.xlu1 %7246 }
 0xf09   :  { %11000 = vrcp.f32 %v7247_v55  ;;  %v7244_v57 = vpop.xlane.xlu0 %7243  ;;  %v9239_v55 = vld [vmem:[%s9044_s9] ss:$0 sm:$0xff]  ;;  %s9059_s9 = sld [smem:[%s12187_s0 + %s11073_s6]]  }
 0xf0a   :  { %11002 = vrcp.f32 %v7244_v57 }
 0xf0b   :  { %v10997_v59 = vpop.eup %10996 }
 0xf0c   :  { %v10999_v17 = vpop.eup %10998  ;;  %v7269_v60 = vmul.f32 %v10997_v59, %v10981_v20 }
 0xf0d   :  { %v7268_v61 = vmul.f32 %v10999_v17, %v10983_v6  ;;  %v4720_v6 = vld [vmem:[%s12069_s5 + $0x20] sm:$0xff] }
 0xf0e   :  { %10393 = vmatmul.mubr.msk.f32.vlgmr.msra.gmra.mrb[84].mxu0 %vm2258_vm2, %v7269_v60 }
 0xf0f   :  { %10401 = vmatpush3.msra.mxu0 %v11990_v58  ;;  %10388 = vmatmul.mubr.msk.f32.vlgmr.msra.gmra.mrb[84].mxu1 %vm2258_vm2, %v7268_v61 }
 0xf10   :  { %10396 = vmatpush3.msra.mxu1 %v11992_v15  ;;  %v7253_v62 = vpop.xlane.xlu1 %7252  ;;  %10402 = vmatprep.mubr.msk.f32.mxu0 %vm11026_vm1, %v11027_v27 }
 0xf11   :  { %11004 = vrcp.f32 %v7253_v62  ;;  %v7250_v63 = vpop.xlane.xlu0 %7249  ;;  %10410 = vmatprep.subr.mxu0 %v11027_v27  ;;  %10397 = vmatprep.mubr.msk.f32.mxu1 %vm11026_vm1, %v11027_v27 }
 0xf12   :  { %11006 = vrcp.f32 %v7250_v63  ;;  %10405 = vmatprep.subr.mxu1 %v11027_v27 }
 0xf13   :  { %v11001_v0 = vpop.eup %11000 }
 0xf14   :  { %v11003_v58 = vpop.eup %11002  ;;  %v7271_v1 = vmul.f32 %v11001_v0, %v10985_v31 }
 0xf15   :  { %v7270_v2 = vmul.f32 %v11003_v58, %v10987_v32 }
 0xf16   :  { %10403 = vmatmul.mubr.msk.f32.vlgmr.msra.gmra.mrb[86].mxu0 %vm2258_vm2, %v7271_v1 }
 0xf17   :  { %10411 = vmatpush3.msra.mxu0 %v11996_v21  ;;  %10398 = vmatmul.mubr.msk.f32.vlgmr.msra.gmra.mrb[86].mxu1 %vm2258_vm2, %v7270_v2 }
 0xf18   :  { %10406 = vmatpush3.msra.mxu1 %v11998_v24  ;;  %v7259_v15 = vpop.xlane.xlu1 %7258  ;;  %10412 = vmatprep.mubr.msk.f32.mxu0 %vm11026_vm1, %v11027_v27 }
 0xf19   :  { %11008 = vrcp.f32 %v7259_v15  ;;  %v7256_v3 = vpop.xlane.xlu0 %7255  ;;  %10420 = vmatprep.subr.mxu0 %v11027_v27  ;;  %10407 = vmatprep.mubr.msk.f32.mxu1 %vm11026_vm1, %v11027_v27 }
 0xf1a   :  { %11010 = vrcp.f32 %v7256_v3  ;;  %10415 = vmatprep.subr.mxu1 %v11027_v27 }
 0xf1b   :  { %v11005_v4 = vpop.eup %11004 }
 0xf1c   :  { %v11007_v21 = vpop.eup %11006  ;;  %v7273_v5 = vmul.f32 %v11005_v4, %v10989_v39 }
 0xf1d   :  { %v7272_v7 = vmul.f32 %v11007_v21, %v10991_v40 }
 0xf1e   :  { %10413 = vmatmul.mubr.msk.f32.vlgmr.msra.gmra.mrb[88].mxu0 %vm2258_vm2, %v7273_v5 }
 0xf1f   :  { %10421 = vmatpush3.msra.mxu0 %v12002_v29  ;;  %10408 = vmatmul.mubr.msk.f32.vlgmr.msra.gmra.mrb[88].mxu1 %vm2258_vm2, %v7272_v7  ;;  %v4717_v29 = vld [vmem:[%s12069_s5 + $0x8] sm:$0xff] }
 0xf20   :  { %10416 = vmatpush3.msra.mxu1 %v12004_v28  ;;  %10422 = vmatprep.mubr.msk.f32.mxu0 %vm11026_vm1, %v11027_v27  ;;  %v4716_v28 = vld [vmem:[%s12069_s5] sm:$0xff]  ;;  %s9058_s5 = sld [smem:[%s12187_s0 + %s11072_s2]]  }
 0xf21   :  { %10417 = vmatprep.mubr.msk.f32.mxu1 %vm11026_vm1, %v11027_v27  ;;  %10430 = vmatprep.subr.mxu0 %v11027_v27 }
 0xf22   :  { %10425 = vmatprep.subr.mxu1 %v11027_v27 }
 0xf23   :  { %v11009_v24 = vpop.eup %11008 }
 0xf24   :  { %v11011_v8 = vpop.eup %11010  ;;  %v7275_v9 = vmul.f32 %v11009_v24, %v10993_v46 }
 0xf25   :  { %v7274_v11 = vmul.f32 %v11011_v8, %v10995_v48 }
 0xf26   :  { %10423 = vmatmul.mubr.msk.f32.vlgmr.msra.gmra.mrb[90].mxu0 %vm2258_vm2, %v7275_v9 }
 0xf27   :  { %10418 = vmatmul.mubr.msk.f32.vlgmr.msra.gmra.mrb[90].mxu1 %vm2258_vm2, %v7274_v11  ;;  %10432 = vmatprep.mubr.msk.f32.mxu0 %vm11026_vm1, %v11027_v27 }
 0xf28   :  { %10427 = vmatprep.mubr.msk.f32.mxu1 %vm11026_vm1, %v11027_v27  ;;  %10431 = vmatpush3.msra.mxu0 %v4717_v29  ;;  %v4728_v29 = vld [vmem:[%s9047_s13 + $0x8] sm:$0xff] }
 0xf29   :  { %10426 = vmatpush3.msra.mxu1 %v4716_v28  ;;  %10440 = vmatprep.subr.mxu0 %v11027_v27 }
 0xf2a   :  { %10435 = vmatprep.subr.mxu1 %v11027_v27 }
 0xfe1   :  { %v7418_v49 = vpop.f32.mrb[84].mxu0 }
 0xfe2   :  { %v7345_v13 = vpop.f32.mrb[84].mxu1  ;;  %v10394_v16 = vpop.f32.mrb[85].mxu0  ;;  %10433 = vmatmul.mubr.msk.f32.vlgmr.msra.gmra.mrb[92].mxu0 %vm2258_vm2, %v7418_v49  ;;  %v4730_v49 = vld [vmem:[%s9047_s13 + $0x18] sm:$0xff] }
 0xfe3   :  { %v10389_v43 = vpop.f32.mrb[85].mxu1  ;;  %10428 = vmatmul.mubr.msk.f32.vlgmr.msra.gmra.mrb[92].mxu1 %vm2258_vm2, %v7345_v13  ;;  %10441 = vmatpush3.msra.mxu0 %v4719_v12  ;;  %v4729_v12 = vld [vmem:[%s9047_s13 + $0x10] sm:$0xff] }
 0xfe4   :  { %10442 = vmatprep.mubr.msk.f32.mxu0 %vm11026_vm1, %v11027_v27  ;;  %10436 = vmatpush3.msra.mxu1 %v4718_v56  ;;  %v10846_v56 = vpack.c.bf16 %v4730_v49, %v4729_v12  ;;  %v4746_v49 = vld [vmem:[%s9053_s11] sm:$0xff] }
 0xfe5   :  { %10437 = vmatprep.mubr.msk.f32.mxu1 %vm11026_vm1, %v11027_v27  ;;  %10450 = vmatprep.subr.mxu0 %v11027_v27 }
 0xfe6   :  { %10445 = vmatprep.subr.mxu1 %v11027_v27 }
 0xfe9   :  { %v7564_v20 = vpop.f32.mrb[86].mxu0 }
 0xfea   :  { %v7491_v22 = vpop.f32.mrb[86].mxu1  ;;  %v10404_v10 = vpop.f32.mrb[87].mxu0  ;;  %10443 = vmatmul.mubr.msk.f32.vlgmr.msra.gmra.mrb[94].mxu0 %vm2258_vm2, %v7564_v20 }
 0xfeb   :  { %v10399_v25 = vpop.f32.mrb[87].mxu1  ;;  %10438 = vmatmul.mubr.msk.f32.vlgmr.msra.gmra.mrb[94].mxu1 %vm2258_vm2, %v7491_v22  ;;  %10451 = vmatpush3.msra.mxu0 %v4721_v18  ;;  %v9240_v10 = vld [vmem:[%s9045_s17] ss:$0 sm:$0xff] }
 0xfec   :  { %10452 = vmatprep.mubr.msk.f32.mxu0 %vm11026_vm1, %v11027_v27  ;;  %10446 = vmatpush3.msra.mxu1 %v4720_v6 }
 0xfed   :  { %10447 = vmatprep.mubr.msk.f32.mxu1 %vm11026_vm1, %v11027_v27  ;;  %10455 = vmatprep.subr.mxu1 %v11027_v27 }
 0xfee   :  { %10460 = vmatprep.subr.mxu0 %v11027_v27 }
 0xff1   :  { %v7710_v26 = vpop.f32.mrb[88].mxu0 }
 0xff2   :  { %v7637_v23 = vpop.f32.mrb[88].mxu1  ;;  %v10414_v30 = vpop.f32.mrb[89].mxu0  ;;  %10453 = vmatmul.mubr.msk.f32.vlgmr.msra.gmra.mrb[96].mxu0 %vm2258_vm2, %v7710_v26 }
 0xff3   :  { %v10409_v31 = vpop.f32.mrb[89].mxu1  ;;  %10448 = vmatmul.mubr.msk.f32.vlgmr.msra.gmra.mrb[96].mxu1 %vm2258_vm2, %v7637_v23  ;;  %10461 = vmatpush3.msra.mxu0 %v4723_v14 }
 0xff4   :  { %10456 = vmatpush3.msra.mxu1 %v4722_v19  ;;  %10462 = vmatprep.mubr.msk.f32.mxu0 %vm11026_vm1, %v11027_v27  ;;  %v9241_v19 = vld [vmem:[%s9046_s21] ss:$0 sm:$0xff] }
 0xff5   :  { %10457 = vmatprep.mubr.msk.f32.mxu1 %vm11026_vm1, %v11027_v27 }
 0xff9   :  { %v7856_v32 = vpop.f32.mrb[90].mxu0 }
 0xffa   :  { %v7783_v44 = vpop.f32.mrb[90].mxu1  ;;  %v10424_v33 = vpop.f32.mrb[91].mxu0  ;;  %10463 = vmatmul.mubr.msk.f32.vlgmr.msra.gmra.mrb[98].mxu0 %vm2258_vm2, %v7856_v32 }
 0xffb   :  { %v10419_v53 = vpop.f32.mrb[91].mxu1  ;;  %10458 = vmatmul.mubr.msk.f32.vlgmr.msra.gmra.mrb[98].mxu1 %vm2258_vm2, %v7783_v44  ;;  %v4732_v44 = vld [vmem:[%s9049_s25] sm:$0xff]  ;;  %v4733_v33 = vld [vmem:[%s9049_s25 + $0x8] sm:$0xff] }
 0xffc   :  { %v10850_v53 = vpack.c.bf16 %v4733_v33, %v4732_v44 }
 0xffe   :  { %10851 = vmatprep.subr.bf16.mxu0 %v10850_v53 }
 0xfff   :  { %10853 = vmatpush3.bf16.msra.mxu0 %v10850_v53 }
0x10b5   :  { %v8002_v34 = vpop.f32.mrb[92].mxu0 }
0x10b6   :  { %v7929_v35 = vpop.f32.mrb[92].mxu1  ;;  %v10434_v36 = vpop.f32.mrb[93].mxu0 }
0x10b7   :  { %v10429_v37 = vpop.f32.mrb[93].mxu1 }
0x10b8   :  { %v4736_v37 = vld [vmem:[%s9049_s25 + $0x20] sm:$0xff] }
0x10bd   :  { %v8148_v38 = vpop.f32.mrb[94].mxu0 }
0x10be   :  { %v8445_v39 = vadd.f32 %v8148_v38, %v8002_v34  ;;  %v8075_v40 = vpop.f32.mrb[94].mxu1  ;;  %v10444_v42 = vpop.f32.mrb[95].mxu0  ;;  %v4734_v34 = vld [vmem:[%s9049_s25 + $0x10] sm:$0xff]  ;;  %v4737_v38 = vld [vmem:[%s9049_s25 + $0x28] sm:$0xff] }
0x10bf   :  { %v8444_v45 = vadd.f32 %v8075_v40, %v7929_v35  ;;  %v10439_v46 = vpop.f32.mrb[95].mxu1  ;;  %v4735_v35 = vld [vmem:[%s9049_s25 + $0x18] sm:$0xff]  ;;  %v4738_v40 = vld [vmem:[%s9049_s25 + $0x30] sm:$0xff] }
0x10c0   :  { %v10854_v36 = vpack.c.bf16 %v4735_v35, %v4734_v34  ;;  %v4739_v42 = vld [vmem:[%s9049_s25 + $0x38] sm:$0xff]  ;;  %v4741_v46 = vld [vmem:[%s12137_s29] sm:$0xff] }
0x10c2   :  { %10855 = vmatprep.subr.bf16.mxu0 %v10854_v36 }
0x10c3   :  { %10857 = vmatpush3.bf16.msra.mxu0 %v10854_v36 }
0x10c5   :  { %v8294_v48 = vpop.f32.mrb[96].mxu0 }
0x10c6   :  { %v8447_v27 = vadd.f32 %v8445_v39, %v8294_v48  ;;  %v8221_v50 = vpop.f32.mrb[96].mxu1  ;;  %v10454_v51 = vpop.f32.mrb[97].mxu0  ;;  %v10858_v39 = vpack.c.bf16 %v4737_v38, %v4736_v37  ;;  %v4742_v48 = vld [vmem:[%s12137_s29 + $0x8] sm:$0xff] }
0x10c7   :  { %v8446_v52 = vadd.f32 %v8444_v45, %v8221_v50  ;;  %v10449_v54 = vpop.f32.mrb[97].mxu1  ;;  %v10862_v45 = vpack.c.bf16 %v4739_v42, %v4738_v40  ;;  %v9242_v50 = vld [vmem:[%s9048_s3] ss:$0 sm:$0xff] }
0x10c8   :  { %10859 = vmatprep.subr.bf16.mxu0 %v10858_v39 }
0x10c9   :  { %10861 = vmatpush3.bf16.msra.mxu0 %v10858_v39 }
0x10ca   :  { %10863 = vmatprep.subr.bf16.mxu0 %v10862_v45 }
0x10cd   :  { %v8440_v57 = vpop.f32.mrb[98].mxu0  ;;  %10865 = vmatpush3.bf16.msra.mxu0 %v10862_v45 }
0x10ce   :  { %v8449_v59 = vadd.f32 %v8447_v27, %v8440_v57  ;;  %v8367_v17 = vpop.f32.mrb[98].mxu1  ;;  %v10464_v60 = vpop.f32.mrb[99].mxu0  ;;  %v10866_v27 = vpack.c.bf16 %v4742_v48, %v4741_v46  ;;  %v8917_v46 = vld [vmem:[%s9057_s23 + $0x8] sm:$0xff] }
0x10cf   :  { %v8448_v61 = vadd.f32 %v8446_v52, %v8367_v17  ;;  %v10459_v62 = vpop.f32.mrb[99].mxu1 }
0x10d0   :  { %v8457_v63 = vadd.f32 %v9239_v55, %v8449_v59 }
0x10d1   :  { %v8456_v0 = vadd.f32 %v9239_v55, %v8448_v61 }
0x10d2   :  { %v8459_v58 = vadd.f32 %v8457_v63, %v11663_v41 }
0x10d3   :  { %v8458_v1 = vadd.f32 %v8456_v0, %v11667_v47  ;;  %v4727_v47 = vld [vmem:[%s9047_s13] sm:$0xff] }
0x10d4   :  { %v8463_v2 = vsel %vm220_vm0, %v8459_v58, 0.0  ;;  %v10842_v28 = vpack.c.bf16 %v4728_v29, %v4727_v47 }
0x10d5   :  { %8464 = vadd.xlane.f32.xlu1 %v8463_v2  ;;  %v8460_v15 = vsel %vm220_vm0, %v8458_v1, 0.0 }
0x10d6   :  { %8461 = vadd.xlane.f32.xlu0 %v8460_v15  ;;  %10843 = vmatprep.subr.bf16.mxu1 %v10842_v28 }
0x10d7   :  { %10845 = vmatpush3.bf16.msra.mxu1 %v10842_v28 }
0x10d8   :  { %10847 = vmatprep.subr.bf16.mxu1 %v10846_v56 }
0x10db   :  { %10849 = vmatpush3.bf16.msra.mxu1 %v10846_v56  ;;  %v9248_v56 = vld [vmem:[%s9052_s15] ss:$0 sm:$0xff] }
0x10dc   :  { %10867 = vmatprep.subr.bf16.mxu1 %v10866_v27 }
0x1162   :  { %v8465_v3 = vpop.xlane.xlu1 %8464 }
0x1163   :  { %v8467_v4 = vmul.f32 0.03125, %v8465_v3  ;;  %v8462_v21 = vpop.xlane.xlu0 %8461 }
0x1164   :  { %v8466_v5 = vmul.f32 0.03125, %v8462_v21 }
0x1165   :  { %v8469_v7 = vsub.f32 %v8459_v58, %v8467_v4 }
0x1166   :  { %v8468_v24 = vsub.f32 %v8458_v1, %v8466_v5 }
0x1167   :  { %v8471_v8 = vmul.f32 %v8469_v7, %v8469_v7 }
0x1168   :  { %v8470_v9 = vmul.f32 %v8468_v24, %v8468_v24 }
0x1169   :  { %v8475_v11 = vsel %vm220_vm0, %v8471_v8, 0.0  ;;  %v4743_v8 = vld [vmem:[%s12137_s29 + $0x10] sm:$0xff] }
0x116a   :  { %8476 = vadd.xlane.f32.xlu1 %v8475_v11  ;;  %v8472_v41 = vsel %vm220_vm0, %v8470_v9, 0.0  ;;  %v4744_v9 = vld [vmem:[%s12137_s29 + $0x18] sm:$0xff] }
0x116b   :  { %8473 = vadd.xlane.f32.xlu0 %v8472_v41  ;;  %v10870_v11 = vpack.c.bf16 %v4744_v9, %v4743_v8  ;;  %v9245_v41 = vld [vmem:[%s9050_s7] ss:$0 sm:$0xff] }
0x11f7   :  { %v8477_v13 = vpop.xlane.xlu1 %8476 }
0x11f8   :  { %v8479_v16 = vmul.f32 0.03125, %v8477_v13  ;;  %v8474_v43 = vpop.xlane.xlu0 %8473 }
0x11f9   :  { %v8478_v18 = vmul.f32 0.03125, %v8474_v43 }
0x11fa   :  { %v8481_v20 = vadd.f32 1e-05, %v8479_v16 }
0x11fb   :  { %v8480_v6 = vadd.f32 1e-05, %v8478_v18 }
0x11fc   :  { %11012 = vrsqrt.f32 %v8481_v20 }
0x11fd   :  { %11014 = vrsqrt.f32 %v8480_v6 }
0x1206   :  { %v11013_v22 = vpop.eup %11012 }
0x1207   :  { %v11015_v25 = vpop.eup %11014  ;;  %v8485_v14 = vmul.f32 %v11013_v22, %v8469_v7  ;;  %v9251_v22 = vld [vmem:[%s9054_s19] ss:$0 sm:$0xff] }
0x1208   :  { %v8484_v26 = vmul.f32 %v11015_v25, %v8468_v24 }
0x1209   :  { %v8493_v23 = vmul.f32 %v9240_v10, %v8485_v14 }
0x120a   :  { %v8492_v30 = vmul.f32 %v9240_v10, %v8484_v26 }
0x120b   :  { %v12125_v32 = vadd.f32 %v9241_v19, %v8493_v23 }
0x120c   :  { %v12123_v31 = vadd.f32 %v9241_v19, %v8492_v30 }
0x120e   :  { %10473 = vmatprep.mubr.msk.f32.mxu1 %vm220_vm0, %v12123_v31 }
0x120f   :  { %10474 = vmatmul.mubr.msk.f32.vlgmr.msra.gmra.mrb[100].mxu1 %vm220_vm0, %v12125_v32 }
0x1210   :  { %10869 = vmatpush3.bf16.msra.mxu1 %v10866_v27  ;;  %v8918_v27 = vld [vmem:[%s9057_s23 + $0x10] sm:$0xff] }
0x1211   :  { %10871 = vmatprep.subr.bf16.mxu1 %v10870_v11 }
0x1214   :  { %10873 = vmatpush3.bf16.msra.mxu1 %v10870_v11 }
0x1215   :  { %10506 = vmatprep.subr.mxu1 %v4746_v49 }
0x12e2   :  { %v10475_v51 = vpop.f32.mrb[100].mxu1 }
0x12e3   :  { %v8586_v52 = vadd.f32 %v10475_v51, %v9242_v50  ;;  %v8580_v54 = vpop.f32.mrb[101].mxu1 }
0x12e4   :  { %v8581_v55 = vadd.f32 %v9242_v50, %v8580_v54  ;;  %v8919_v50 = vld [vmem:[%s9057_s23 + $0x18] sm:$0xff] }
0x12e5   :  { %v8590_v57 = vmul.f32 %v8586_v52, %v8586_v52  ;;  %v10878_v51 = vpack.c.bf16 %v8919_v50, %v8918_v27 }
0x12e6   :  { %v8589_v59 = vmul.f32 %v8581_v55, %v8581_v55 }
0x12e7   :  { %v8592_v17 = vmul.f32 %v8590_v57, %v8586_v52 }
0x12e8   :  { %v8591_v60 = vmul.f32 %v8589_v59, %v8581_v55 }
0x12e9   :  { %v8594_v61 = vmul.f32 0.044715, %v8592_v17 }
0x12ea   :  { %v8593_v62 = vmul.f32 0.044715, %v8591_v60 }
0x12eb   :  { %v8596_v63 = vadd.f32 %v8594_v61, %v8586_v52  ;;  %v9254_v61 = vld [vmem:[%s9055_s27] ss:$0 sm:$0xff] }
0x12ec   :  { %v8595_v0 = vadd.f32 %v8593_v62, %v8581_v55 }
0x12ed   :  { %v8598_v58 = vmul.f32 0.7978846, %v8596_v63 }
0x12ee   :  { %v8597_v1 = vmul.f32 0.7978846, %v8595_v0 }
0x12ef   :  { %11016 = vtanh.f32 %v8598_v58  ;;  %v9255_v58 = vld [vmem:[%s9056_s1] ss:$0 sm:$0xff] }
0x12f0   :  { %11018 = vtanh.f32 %v8597_v1 }
0x12f9   :  { %v11017_v2 = vpop.eup %11016 }
0x12fa   :  { %v11019_v15 = vpop.eup %11018  ;;  %v8602_v3 = vadd.f32 1.0, %v11017_v2 }
0x12fb   :  { %v8601_v4 = vadd.f32 1.0, %v11019_v15 }
0x12fc   :  { %v8604_v21 = vmul.f32 0.5, %v8602_v3 }
0x12fd   :  { %v8603_v5 = vmul.f32 0.5, %v8601_v4  ;;  %v9256_v4 = vld [vmem:[%s9058_s5] ss:$0 sm:$0xff] }
0x12fe   :  { %v8606_v24 = vmul.f32 %v8604_v21, %v8586_v52 }
0x12ff   :  { %v8605_v7 = vmul.f32 %v8603_v5, %v8581_v55 }
0x1301   :  { %10492 = vmatprep.mubr.msk.f32.mxu0 %vm4292_vm3, %v8605_v7 }
0x1302   :  { %10493 = vmatmul.mubr.msk.f32.vlgmr.msra.gmra.mrb[100].mxu0 %vm4292_vm3, %v8606_v24 }
0x13d5   :  { %v10494_v47 = vpop.f32.mrb[100].mxu0 }
0x13d6   :  { %v8685_v29 = vpop.f32.mrb[101].mxu0  ;;  %v8691_v12 = vadd.f32 %v10494_v47, %v9245_v41 }
0x13d7   :  { %v8686_v28 = vadd.f32 %v9245_v41, %v8685_v29 }
0x13d9   :  { %10503 = vmatprep.mubr.msk.f32.mxu1 %vm220_vm0, %v8686_v28 }
0x13da   :  { %10504 = vmatmul.mubr.msk.f32.vlgmr.msra.gmra.mrb[102].mxu1 %vm220_vm0, %v8691_v12 }
0x13db   :  { %10507 = vmatpush3.msra.mxu1 %v4746_v49 }
0x14ad   :  { %v10505_v13 = vpop.f32.mrb[102].mxu1 }
0x14ae   :  { %v8778_v16 = vadd.f32 %v10505_v13, %v9248_v56  ;;  %v8772_v43 = vpop.f32.mrb[103].mxu1 }
0x14af   :  { %v8773_v18 = vadd.f32 %v9248_v56, %v8772_v43 }
0x14b0   :  { %v8782_v6 = vmax.f32 %v8778_v16, 0.0 }
0x14b1   :  { %v8781_v20 = vmax.f32 %v8773_v18, 0.0 }
0x14b3   :  { %10508 = vmatprep.mubr.msk.f32.mxu1 %vm2258_vm2, %v8781_v20 }
0x14b4   :  { %10509 = vmatmul.mubr.msk.f32.vlgmr.msra.gmra.mrb[104].mxu1 %vm2258_vm2, %v8782_v6 }
0x1587   :  { %v10510_v10 = vpop.f32.mrb[104].mxu1 }
0x1588   :  { %v8867_v25 = vadd.f32 %v10510_v10, %v9251_v22  ;;  %v8861_v14 = vpop.f32.mrb[105].mxu1 }
0x1589   :  { %v8862_v26 = vadd.f32 %v9251_v22, %v8861_v14 }
0x158a   :  { %v8871_v19 = vadd.f32 %v8867_v25, %v8691_v12 }
0x158b   :  { %v8870_v23 = vadd.f32 %v8862_v26, %v8686_v28 }
0x158c   :  { %v8873_v30 = vadd.f32 %v8871_v19, %v12125_v32 }
0x158d   :  { %v8872_v44 = vadd.f32 %v8870_v23, %v12123_v31  ;;  %v8916_v31 = vld [vmem:[%s9057_s23] sm:$0xff] }
0x158e   :  { %v8877_v33 = vsel %vm220_vm0, %v8873_v30, 0.0  ;;  %v10874_v48 = vpack.c.bf16 %v8917_v46, %v8916_v31 }
0x158f   :  { %8878 = vadd.xlane.f32.xlu1 %v8877_v33  ;;  %v8874_v53 = vsel %vm220_vm0, %v8872_v44, 0.0 }
0x1590   :  { %8875 = vadd.xlane.f32.xlu0 %v8874_v53  ;;  %10875 = vmatprep.subr.bf16.mxu0 %v10874_v48 }
0x1591   :  { %10877 = vmatpush3.bf16.msra.mxu0 %v10874_v48 }
0x1592   :  { %10879 = vmatprep.subr.bf16.mxu0 %v10878_v51 }
0x1595   :  { %10881 = vmatpush3.bf16.msra.mxu0 %v10878_v51 }
0x161c   :  { %v8879_v34 = vpop.xlane.xlu1 %8878 }
0x161d   :  { %v8881_v35 = vmul.f32 0.03125, %v8879_v34  ;;  %v8876_v36 = vpop.xlane.xlu0 %8875 }
0x161e   :  { %v8880_v37 = vmul.f32 0.03125, %v8876_v36 }
0x161f   :  { %v8883_v38 = vsub.f32 %v8873_v30, %v8881_v35 }
0x1620   :  { %v8882_v39 = vsub.f32 %v8872_v44, %v8880_v37 }
0x1621   :  { %v8885_v40 = vmul.f32 %v8883_v38, %v8883_v38 }
0x1622   :  { %v8884_v42 = vmul.f32 %v8882_v39, %v8882_v39 }
0x1623   :  { %v8889_v45 = vsel %vm220_vm0, %v8885_v40, 0.0 }
0x1624   :  { %8890 = vadd.xlane.f32.xlu1 %v8889_v45  ;;  %v8886_v32 = vsel %vm220_vm0, %v8884_v42, 0.0 }
0x1625   :  { %8887 = vadd.xlane.f32.xlu0 %v8886_v32 }
0x16b1   :  { %v8891_v52 = vpop.xlane.xlu1 %8890 }
0x16b2   :  { %v8893_v54 = vmul.f32 0.03125, %v8891_v52  ;;  %v8888_v55 = vpop.xlane.xlu0 %8887 }
0x16b3   :  { %v8892_v57 = vmul.f32 0.03125, %v8888_v55 }
0x16b4   :  { %v8895_v59 = vadd.f32 1e-05, %v8893_v54 }
0x16b5   :  { %v8894_v17 = vadd.f32 1e-05, %v8892_v57 }
0x16b6   :  { %11020 = vrsqrt.f32 %v8895_v59 }
0x16b7   :  { %11022 = vrsqrt.f32 %v8894_v17 }
0x16c0   :  { %v11021_v60 = vpop.eup %11020 }
0x16c1   :  { %v11023_v62 = vpop.eup %11022  ;;  %v8899_v63 = vmul.f32 %v11021_v60, %v8883_v38 }
0x16c2   :  { %v8898_v0 = vmul.f32 %v11023_v62, %v8882_v39 }
0x16c3   :  { %v8907_v1 = vmul.f32 %v9254_v61, %v8899_v63 }
0x16c4   :  { %v8906_v2 = vmul.f32 %v9254_v61, %v8898_v0 }
0x16c5   :  { %v8915_v3 = vadd.f32 %v9255_v58, %v8907_v1 }
0x16c6   :  { %v8914_v15 = vadd.f32 %v9255_v58, %v8906_v2 }
0x16c8   :  { %10519 = vmatprep.mubr.msk.f32.mxu0 %vm220_vm0, %v8914_v15 }
0x16c9   :  { %10520 = vmatmul.mubr.msk.f32.vlgmr.msra.gmra.mrb[102].mxu0 %vm220_vm0, %v8915_v3 }
0x179c   :  { %v10521_v21 = vpop.f32.mrb[102].mxu0 }
0x179d   :  { %v9005_v5 = vadd.f32 %v10521_v21, %v9256_v4  ;;  %v8999_v7 = vpop.f32.mrb[103].mxu0 }
0x179e   :  { %v9000_v24 = vadd.f32 %v9256_v4, %v8999_v7 }
0x179f   :  { %9009 = vst [vmem:[%s9059_s9 + $0x8] sm:$0xff] %v9005_v5 }
0x17a0   :  { %9008 = vst [vmem:[%s9059_s9] sm:$0xff] %v9000_v24 }

</bundles_post_ra>
